<compile_context>
chip_gen: v7x
topology: tpu7x:2x2x1
jax: 0.10.0
libtpu: 0.0.40
codegen_flags: <defaults>
</compile_context>

<pallas_src>
import math
from functools import partial

import jax
import jax.numpy as jnp
from jax.experimental import pallas as pl
from jax.experimental.pallas import tpu as pltpu

LATENCY = 1                            # t_latency of every Blocks module

_VMEM_LIMIT_CACHE = None


def _round_up(x, m):
    return ((x + m - 1) // m) * m


def _vmem_limit():
    """Scoped-VMEM cap derived from the device (v5e/v6e 128 MiB, v7x 64 MiB)."""
    global _VMEM_LIMIT_CACHE
    if _VMEM_LIMIT_CACHE is None:
        try:
            cap = int(pltpu.get_tpu_info().vmem_capacity_bytes)
        except Exception:
            cap = 64 * 1024 * 1024          # conservative fallback (v7x-sized)
        _VMEM_LIMIT_CACHE = min(int(cap * 0.8), 100 * 1024 * 1024)
    return _VMEM_LIMIT_CACHE


# ---------------------------------------------------------------------------
# 1. Tiled GEMM kernel: bf16 MXU, f32 accumulator, fused bias epilogue.
# ---------------------------------------------------------------------------
def _matmul_kernel(a_ref, b_ref, bias_ref, o_ref, acc_ref):
    k = pl.program_id(2)

    @pl.when(k == 0)
    def _():
        acc_ref[...] = jnp.zeros_like(acc_ref)

    acc_ref[...] += jnp.dot(a_ref[...], b_ref[...],
                            preferred_element_type=jnp.float32)

    @pl.when(k == pl.num_programs(2) - 1)
    def _():
        o_ref[...] = (acc_ref[...] + bias_ref[...]).astype(o_ref.dtype)


def pallas_matmul(a, w, bias=None, bm=256, bn=256, bk=1024,
                  out_dtype=jnp.float32):
    """a: (M, K), w: (K, N), bias: (N,) -> (M, N) in out_dtype."""
    M, K = a.shape
    K2, N = w.shape
    assert K == K2
    # size-robust tiles (also pads e.g. the N=10 logits up to a 128-lane tile)
    bm = min(bm, _round_up(M, 8))
    bn = min(bn, _round_up(N, 128))
    bk = min(bk, _round_up(K, 128))
    Mp, Np, Kp = _round_up(M, bm), _round_up(N, bn), _round_up(K, bk)

    a_p = jnp.pad(a.astype(jnp.bfloat16), ((0, Mp - M), (0, Kp - K)))
    w_p = jnp.pad(w.astype(jnp.bfloat16), ((0, Kp - K), (0, Np - N)))
    if bias is None:
        bias = jnp.zeros((N,), jnp.float32)
    bias_p = jnp.pad(bias.astype(jnp.float32), (0, Np - N)).reshape(1, Np)

    out = pl.pallas_call(
        _matmul_kernel,
        out_shape=jax.ShapeDtypeStruct((Mp, Np), out_dtype),
        grid_spec=pltpu.PrefetchScalarGridSpec(
            num_scalar_prefetch=0,
            grid=(Mp // bm, Np // bn, Kp // bk),
            in_specs=[pl.BlockSpec((bm, bk), lambda i, j, k: (i, k)),
                      pl.BlockSpec((bk, bn), lambda i, j, k: (k, j)),
                      pl.BlockSpec((1, bn), lambda i, j, k: (0, j))],
            out_specs=pl.BlockSpec((bm, bn), lambda i, j, k: (i, j)),
            scratch_shapes=[pltpu.VMEM((bm, bn), jnp.float32)]),
        compiler_params=pltpu.CompilerParams(
            dimension_semantics=("parallel", "parallel", "arbitrary"),
            vmem_limit_bytes=_vmem_limit()),
    )(a_p, w_p, bias_p)
    return out[:M, :N]


# ---------------------------------------------------------------------------
# 2. 3x3 conv (padding=1, no bias), channels-last.
#    Small Cin (<=32, incl. the Cin=3 first layer): im2col GEMM with K=9*Cin.
#    Large Cin: in-kernel shifted GEMMs, kw taps fused into K=3*Cin dots,
#    G images per grid step, single f32 accumulation, bf16 output.
# ---------------------------------------------------------------------------
def conv3x3_im2col(x, weight, out_dtype=jnp.bfloat16):
    """x: (TB, H, W, Cin), weight: (Cout, Cin, 3, 3) -> (TB, H, W, Cout)."""
    TB, H, W, Cin = x.shape
    Cout = weight.shape[0]
    xp = jnp.pad(x, ((0, 0), (1, 1), (1, 1), (0, 0)))
    cols = [xp[:, kh:kh + H, kw:kw + W, :]
            for kh in range(3) for kw in range(3)]
    patches = jnp.concatenate(cols, axis=-1).reshape(TB * H * W, 9 * Cin)
    # w_mat[(kh*3+kw)*Cin + cin, cout] = weight[cout, cin, kh, kw]
    w_mat = jnp.transpose(weight, (2, 3, 1, 0)).reshape(9 * Cin, Cout)
    y = pallas_matmul(patches, w_mat, bias=None, out_dtype=out_dtype)
    return y.reshape(TB, H, W, Cout)


def _conv3x3_kernel_big(x_ref, w_ref, o_ref, *, H, W, G):
    # x_ref : (G, (H+3)*Wp, Cin)  flattened zero-padded images (bf16)
    # w_ref : (3, 3*Cin, Cout)    kw-fused taps (bf16)
    # o_ref : (G, H*Wp, Cout)     conv output on the width-padded grid
    Wp = W + 2
    L = H * Wp
    for g in range(G):
        acc = None
        for kh in range(3):
            base = kh * Wp
            taps = jnp.concatenate(
                [x_ref[g, base + kw:base + kw + L, :] for kw in range(3)],
                axis=-1)                                     # (L, 3*Cin)
            contrib = jnp.dot(taps, w_ref[kh],
                              preferred_element_type=jnp.float32)
            acc = contrib if acc is None else acc + contrib
        o_ref[g] = acc.astype(o_ref.dtype)


def conv3x3_big(x, weight, out_dtype=jnp.bfloat16):
    TB, H, W, Cin = x.shape
    Cout = weight.shape[0]
    Wp = W + 2
    L = H * Wp
    # pad 1 top / 2 bottom rows and 1 left / 1 right column so every flattened
    # tap window (offset kh*Wp+kw, length H*Wp) stays strictly in bounds.
    xp = jnp.pad(x, ((0, 0), (1, 2), (1, 1), (0, 0))).astype(jnp.bfloat16)
    xf = xp.reshape(TB, (H + 3) * Wp, Cin)
    w3 = jnp.transpose(weight, (2, 3, 1, 0)).reshape(3, 3 * Cin, Cout)
    w3 = w3.astype(jnp.bfloat16)

    per_img = 2 * ((H + 3) * Wp * Cin * 2 + L * Cout * 2)   # dbuf in+out, bf16
    budget = _vmem_limit() // 3
    G = 1
    for cand in (8, 4, 2, 1):
        if TB % cand == 0 and cand * per_img <= budget:
            G = cand
            break

    out = pl.pallas_call(
        partial(_conv3x3_kernel_big, H=H, W=W, G=G),
        out_shape=jax.ShapeDtypeStruct((TB, L, Cout), out_dtype),
        grid_spec=pltpu.PrefetchScalarGridSpec(
            num_scalar_prefetch=0,
            grid=(TB // G,),
            in_specs=[pl.BlockSpec((G, (H + 3) * Wp, Cin),
                                   lambda i: (i, 0, 0),
                                   pipeline_mode=pl.Buffered(3)),
                      pl.BlockSpec((3, 3 * Cin, Cout), lambda i: (0, 0, 0))],
            out_specs=pl.BlockSpec((G, L, Cout), lambda i: (i, 0, 0))),
        compiler_params=pltpu.CompilerParams(
            dimension_semantics=("parallel",),
            vmem_limit_bytes=_vmem_limit()),
    )(xf, w3)
    # TODO(synk): write only the W valid columns inside the kernel instead of
    # this post-hoc bf16 crop of the 2 garbage width-padding columns.
    return out.reshape(TB, H, Wp, Cout)[:, :, :W, :]


def conv3x3(x, weight, out_dtype=jnp.bfloat16):
    if x.shape[-1] <= 32:
        return conv3x3_im2col(x, weight, out_dtype)
    return conv3x3_big(x, weight, out_dtype)


# ---------------------------------------------------------------------------
# 3. Blocks (block-ALIF) spiking-neuron layer.
#    Grid = (neuron tiles, temporal blocks); neuron axis "parallel", temporal
#    axis "arbitrary" (carried state in per-tile VMEM scratch).  Lanes carry
#    neurons, sublanes carry the (padded) batch so every vreg is full.
#    BatchNorm's affine is fused in via per-neuron scale/shift.
# ---------------------------------------------------------------------------
def _make_blocks_kernel(tb):
    def kernel(x_ref, scale_ref, shift_ref, beta_ref, b_ref, invp_ref,
               logp_ref, ppow_ref, out_ref,
               spikes_s, z_s, akern_s, intmem_s, vth_s, xcur_s, vinit_s):
        t = pl.program_id(1)                  # temporal block (carried state)
        scale = scale_ref[...]                # (1, tn)  fused BN scale (or 1)
        shift = shift_ref[...]                # (1, tn)  fused BN shift (or 0)
        beta = beta_ref[...]                  # (1, tn)
        b = b_ref[...]                        # (1, tn)
        inv_p = invp_ref[...]                 # (1, tn)  = 1/p
        log_p = logp_ref[...]                 # (1, tn)  = log(p)
        p_pows = ppow_ref[...]                # (tb, tn) = p^(k+1)

        # fused BatchNorm affine; all SNN math stays f32 (exact z == 1 test,
        # and v5e's VPU/EUP have no bf16 path anyway).
        x_norm = x_ref[0].astype(jnp.float32) * scale + shift  # (tb, Bp, tn)

        @pl.when(t == 0)
        def _():
            xcur_s[...] = x_norm
            vinit_s[...] = jnp.zeros_like(vinit_s)
            vth_s[...] = jnp.ones_like(vth_s)
            akern_s[...] = jnp.zeros_like(akern_s)

        @pl.when(t > 0)
        def _():
            spikes_prev = spikes_s[...]                     # (tb, Bp, tn)
            z_prev = z_s[...]                               # (tb, Bp, tn)
            akern_prev = akern_s[...]                       # (tb, Bp, tn)
            intmem_prev = intmem_s[...]                     # (Bp, tn)
            # spike_mask = spikes.amax(0) > 0
            mask_f = (jnp.max(spikes_prev, axis=0) > 0.0).astype(jnp.float32)
            # refractory carry-over: x_slice -= (z < mask) * x_slice
            xcur_s[...] = x_norm - jnp.where(z_prev < mask_f[None],
                                             x_norm, 0.0)
            # v_init = int_mem * ~spike_mask
            vinit_s[...] = intmem_prev * (1.0 - mask_f)
            # threshold adaptation (adapt=True; forward only)
            a_at_spike = jnp.sum(akern_prev * spikes_prev, axis=0) + inv_p
            decay_steps = jnp.sum((z_prev > 1.0).astype(jnp.float32), axis=0)
            new_a = a_at_spike * jnp.exp(decay_steps * log_p)   # p**decay
            a = akern_prev[tb - 1] * (1.0 - mask_f) + new_a * mask_f
            akern_new = p_pows[:, None, :] * a[None, :, :]      # (tb, Bp, tn)
            akern_s[...] = akern_new
            vth_s[...] = 1.0 + b[None, :, :] * akern_new

        xcur = xcur_s[...]                # (tb, Bp, tn)
        vinit = vinit_s[...]              # (Bp, tn)
        vth = vth_s[...]                  # (tb, Bp, tn)

        # Block.forward: leaky integration (grouped conv1d with beta kernel)
        mem = xcur[0] + beta * vinit
        membrane = [mem]
        for k in range(1, tb):
            mem = beta * mem + xcur[k]
            membrane.append(mem)

        # faulty spikes + phi-convolution  z[t] = sum_{s<=t} (t-s+1)*faulty[s]
        csum = jnp.zeros_like(mem)
        z_run = jnp.zeros_like(mem)
        z_rows = []
        for k in range(tb):
            faulty = (membrane[k] - vth[k] > 0.0).astype(jnp.float32)
            csum = csum + faulty
            z_run = z_run + csum
            z_rows.append(z_run)
        z_new = jnp.stack(z_rows, axis=0)                   # (tb, Bp, tn)
        # Block.g: keep only positions where z == 1 (first spike in block)
        spikes_new = jnp.where(z_new == 1.0, 1.0, 0.0).astype(jnp.float32)

        spikes_s[...] = spikes_new
        z_s[...] = z_new
        intmem_s[...] = membrane[tb - 1]
        out_ref[0] = spikes_new.astype(out_ref.dtype)

    return kernel


def blocks_forward(x, snn_beta, snn_p, snn_b, scale=None, shift=None,
                   t_latency=LATENCY, out_dtype=jnp.bfloat16):
    """Blocks.forward — x: (T, B, N) -> spikes (T, B, N) in out_dtype."""
    T, B, N = x.shape
    tb = t_latency + 1
    n_blocks = math.ceil(T / tb)
    t_pad = n_blocks * tb - T
    Bp = _round_up(B, 8)              # batch on sublanes: fill all 8 per vreg
    Np = _round_up(N, 128)

    # clamped parameter properties; p lower-bounded > 0 keeps 1/p, log p finite
    beta_c = jnp.clip(snn_beta, 0.001, 0.999).astype(jnp.float32)
    p_c = jnp.clip(jnp.abs(snn_p), 1e-6, 0.999).astype(jnp.float32)
    b_c = jnp.clip(jnp.abs(snn_b), 0.001, 1.0).astype(jnp.float32)
    if scale is None:
        scale = jnp.ones((N,), jnp.float32)
    if shift is None:
        shift = jnp.zeros((N,), jnp.float32)

    # Lane tile: biggest tile that keeps carried state + double-buffered I/O
    # inside the VMEM budget, but split into >= 2 neuron tiles when possible
    # so both v7x TensorCores get work along the "parallel" axis.
    itemsize_in = jnp.dtype(x.dtype).itemsize
    itemsize_out = jnp.dtype(out_dtype).itemsize
    per_lane = ((5 * tb + 2) * Bp * 4                          # f32 scratch
                + 2 * 2 * tb * Bp * (itemsize_in + itemsize_out)  # dbuf I/O
                + (6 + tb) * 4 * 2)                            # params
    budget = _vmem_limit() // 2
    tn_cap = max(128, (budget // per_lane) // 128 * 128)
    if Np <= tn_cap:
        tn = _round_up((Np + 1) // 2, 128) if Np >= 256 else Np
    else:
        tn = tn_cap
    Np2 = _round_up(Np, tn)

    xf = x
    if t_pad:
        xf = jnp.pad(xf, ((0, t_pad), (0, 0), (0, 0)))
    if Bp > B or Np2 > N:
        xf = jnp.pad(xf, ((0, 0), (0, Bp - B), (0, Np2 - N)))
    xr = xf.reshape(n_blocks, tb, Bp, Np2)

    def lane_vec(v, fill):   # (N,) -> (1, Np2), padded lanes get safe values
        return jnp.pad(v.astype(jnp.float32), (0, Np2 - N),
                       constant_values=fill).reshape(1, Np2)

    beta_f = lane_vec(beta_c, 0.5)
    b_f = lane_vec(b_c, 0.5)
    invp_f = lane_vec(1.0 / p_c, 1.0)
    logp_f = lane_vec(jnp.log(p_c), 0.0)
    scale_f = lane_vec(scale, 0.0)
    shift_f = lane_vec(shift, 0.0)
    ppow = jnp.stack([p_c ** (k + 1) for k in range(tb)], axis=0)
    ppow_f = jnp.pad(ppow, ((0, 0), (0, Np2 - N)), constant_values=0.5)

    par_spec = pl.BlockSpec((1, tn), lambda n, t: (0, n))
    io_spec = pl.BlockSpec((1, tb, Bp, tn), lambda n, t: (t, 0, 0, n))
    out = pl.pallas_call(
        _make_blocks_kernel(tb),
        out_shape=jax.ShapeDtypeStruct((n_blocks, tb, Bp, Np2), out_dtype),
        grid_spec=pltpu.PrefetchScalarGridSpec(
            num_scalar_prefetch=0,
            grid=(Np2 // tn, n_blocks),       # (neuron tiles, temporal blocks)
            in_specs=[io_spec,
                      par_spec, par_spec, par_spec, par_spec, par_spec,
                      par_spec,
                      pl.BlockSpec((tb, tn), lambda n, t: (0, n))],
            out_specs=io_spec,
            scratch_shapes=[pltpu.VMEM((tb, Bp, tn), jnp.float32),  # spikes
                            pltpu.VMEM((tb, Bp, tn), jnp.float32),  # z
                            pltpu.VMEM((tb, Bp, tn), jnp.float32),  # a_kernel
                            pltpu.VMEM((Bp, tn), jnp.float32),      # int_mem
                            pltpu.VMEM((tb, Bp, tn), jnp.float32),  # v_th
                            pltpu.VMEM((tb, Bp, tn), jnp.float32),  # x_cur
                            pltpu.VMEM((Bp, tn), jnp.float32)]),    # v_init
        compiler_params=pltpu.CompilerParams(
            dimension_semantics=("parallel", "arbitrary"),
            vmem_limit_bytes=_vmem_limit()),
    )(xr, scale_f, shift_f, beta_f, b_f, invp_f, logp_f, ppow_f)

    return out.reshape(n_blocks * tb, Bp, Np2)[:T, :B, :N]


# ---------------------------------------------------------------------------
# 4. Plain-JAX glue: BatchNorm statistics (affine fused into Blocks), 2x2 pool.
# ---------------------------------------------------------------------------
def bn_scale_shift(y, gamma, beta, eps=1e-5):
    """Training-mode BN folded into per-channel scale/shift; only the stats
    reduction stays in XLA — the affine is applied inside the Blocks kernel."""
    yf = y.astype(jnp.float32)
    mean = jnp.mean(yf, axis=(0, 1, 2))
    var = jnp.var(yf, axis=(0, 1, 2))           # biased, as in torch training
    scale = gamma * jax.lax.rsqrt(var + eps)
    shift = beta - mean * scale
    return scale, shift


def avgpool2x2_nhwc(x):
    TB, H, W, C = x.shape
    return x.reshape(TB, H // 2, 2, W // 2, 2, C).mean(axis=(2, 4))


# ---------------------------------------------------------------------------
# 5. Parameters (deterministic, synthetic) and the full forward pass.
# ---------------------------------------------------------------------------
def init_params(key, channels, spatial):
    params = {'conv': [], 'fc': {}}
    keys = jax.random.split(key, 8)
    kidx = 0
    in_ch = 3
    for stage in range(2):
        hw = (spatial // (2 ** stage)) ** 2
        n_snn = channels * hw
        for _ in range(3):
            wkey = keys[kidx]; kidx += 1
            fan_in = in_ch * 9
            w = jax.random.normal(wkey, (channels, in_ch, 3, 3),
                                  jnp.float32) * (2.0 / fan_in) ** 0.5
            params['conv'].append({
                'w': w,
                'gamma': jnp.ones((channels,), jnp.float32),
                'beta_bn': jnp.zeros((channels,), jnp.float32),
                'snn_beta': jnp.full((n_snn,), 0.99, jnp.float32),
                'snn_p': jnp.full((n_snn,), 0.99, jnp.float32),
                'snn_b': jnp.full((n_snn,), 1.8, jnp.float32),
            })
            in_ch = channels
    feat = channels * (spatial // 4) ** 2
    hid = feat // 4
    k1, k2, k3, k4 = jax.random.split(keys[kidx], 4)
    params['fc'] = {
        'w1': jax.random.normal(k1, (hid, feat), jnp.float32) / feat ** 0.5,
        'b1': jax.random.uniform(k2, (hid,), jnp.float32,
                                 -1.0 / feat ** 0.5, 1.0 / feat ** 0.5),
        'snn_beta': jnp.full((hid,), 0.99, jnp.float32),
        'snn_p': jnp.full((hid,), 0.99, jnp.float32),
        'snn_b': jnp.full((hid,), 1.8, jnp.float32),
        'w2': jax.random.normal(k3, (10, hid), jnp.float32) / hid ** 0.5,
        'b2': jax.random.uniform(k4, (10,), jnp.float32,
                                 -1.0 / hid ** 0.5, 1.0 / hid ** 0.5),
    }
    return params


def cifar10net_forward(params, x_seq):
    """x_seq: (T, B, 3, H, W) -> logits (T, B, 10)."""
    T, B = x_seq.shape[0], x_seq.shape[1]
    # channels-last internal layout: C on lanes; activations/spikes kept bf16
    # between kernels (spikes are exactly 0/1, so bf16 is lossless there).
    x = jnp.transpose(x_seq, (0, 1, 3, 4, 2))             # (T, B, H, W, C)
    for stage in range(2):
        for j in range(3):
            p = params['conv'][stage * 3 + j]
            H, W, Cin = x.shape[2], x.shape[3], x.shape[4]
            y = conv3x3(x.reshape(T * B, H, W, Cin), p['w'])        # bf16
            Co = y.shape[-1]
            # BatchNorm: stats in XLA, normalize+affine fused into Blocks.
            scale_c, shift_c = bn_scale_shift(y, p['gamma'], p['beta_bn'])
            scale_n = jnp.tile(scale_c, H * W)   # per-neuron, (h, w, c) order
            shift_n = jnp.tile(shift_c, H * W)
            # DynamicReshapeModule: (T,B,H,W,C) -> (T,B,N) -> Blocks -> back.
            s = blocks_forward(y.reshape(T, B, H * W * Co),
                               p['snn_beta'], p['snn_p'], p['snn_b'],
                               scale=scale_n, shift=shift_n)
            x = s.reshape(T, B, H, W, Co)
        # AvgPool2d(2, 2) over folded time/batch
        H, W, C_ = x.shape[2], x.shape[3], x.shape[4]
        x = avgpool2x2_nhwc(x.reshape(T * B, H, W, C_)).reshape(
            T, B, H // 2, W // 2, C_)

    # fc head: Flatten -> Linear -> Blocks -> Linear (bias fused in the GEMMs)
    H, W, C_ = x.shape[2], x.shape[3], x.shape[4]
    feat = x.reshape(T * B, H * W * C_)
    fc = params['fc']
    h = pallas_matmul(feat, fc['w1'].T, bias=fc['b1'], out_dtype=jnp.bfloat16)
    s = blocks_forward(h.reshape(T, B, -1),
                       fc['snn_beta'], fc['snn_p'], fc['snn_b'])
    out = pallas_matmul(s.reshape(T * B, -1), fc['w2'].T, bias=fc['b2'],
                        out_dtype=jnp.float32)
    return out.reshape(T, B, 10)


if __name__ == "__main__":
    key = jax.random.PRNGKey(0)
    T, B, channels, spatial = 8, 2, 4, 16
    pkey, xkey = jax.random.split(key)
    params = init_params(pkey, channels, spatial)
    x_seq = jax.random.normal(xkey, (T, B, 3, spatial, spatial), jnp.float32)

    fwd = jax.jit(cifar10net_forward)
    out = jax.block_until_ready(fwd(params, x_seq))
    assert out.shape == (T, B, 10)
    assert bool(jnp.all(jnp.isfinite(out)))
    print("KERNEL_OK")
</pallas_src>

<mosaic_0001>
module attributes {stable_mosaic.version = 11 : i64} {
  func.func @_matmul_kernel(%arg0: i32, %arg1: i32, %arg2: i32, %arg3: memref<256x128xbf16, #tpu.memory_space<vmem>>, %arg4: memref<128x128xbf16, #tpu.memory_space<vmem>>, %arg5: memref<1x128xf32, #tpu.memory_space<vmem>>, %arg6: memref<256x128xbf16, #tpu.memory_space<vmem>>, %arg7: memref<256x128xf32, #tpu.memory_space<vmem>>) attributes {dimension_semantics = [#tpu.dimension_semantics<parallel>, #tpu.dimension_semantics<parallel>, #tpu.dimension_semantics<arbitrary>], iteration_bounds = array<i64: 16, 1, 1>, scalar_prefetch = 0 : i64, scratch_operands = 1 : i64, tpu.core_type = #tpu.core_type<tc>, window_params = [{transform_indices = @transform_0, window_bounds = array<i64: 256, 128>}, {transform_indices = @transform_1, window_bounds = array<i64: 128, 128>}, {transform_indices = @transform_2, window_bounds = array<i64: 1, 128>}, {transform_indices = @transform_3, window_bounds = array<i64: 256, 128>}]} {
    %c0_i32 = arith.constant 0 : i32
    %0 = arith.cmpi eq, %arg2, %c0_i32 : i32
    %1 = arith.extui %0 : i1 to i32
    %c0_i32_0 = arith.constant 0 : i32
    %2 = arith.cmpi ne, %1, %c0_i32_0 : i32
    scf.if %2 {
      %cst_10 = arith.constant 0.000000e+00 : f32
      %12 = vector.broadcast %cst_10 : f32 to vector<256x128xf32>
      %c0_11 = arith.constant 0 : index
      %c0_12 = arith.constant 0 : index
      %13 = vector.load %arg7[%c0_11, %c0_12] : memref<256x128xf32, #tpu.memory_space<vmem>>, vector<256x128xf32>
      tpu.vector_store %arg7[%c0_11, %c0_12], %12 {strides = array<i32>} : memref<256x128xf32, #tpu.memory_space<vmem>>, vector<256x128xf32>,
    } else {
    }
    %c0 = arith.constant 0 : index
    %c0_1 = arith.constant 0 : index
    %3 = vector.load %arg7[%c0, %c0_1] : memref<256x128xf32, #tpu.memory_space<vmem>>, vector<256x128xf32>
    %c0_2 = arith.constant 0 : index
    %c0_3 = arith.constant 0 : index
    %4 = vector.load %arg3[%c0_2, %c0_3] : memref<256x128xbf16, #tpu.memory_space<vmem>>, vector<256x128xbf16>
    %c0_4 = arith.constant 0 : index
    %c0_5 = arith.constant 0 : index
    %5 = vector.load %arg4[%c0_4, %c0_5] : memref<128x128xbf16, #tpu.memory_space<vmem>>, vector<128x128xbf16>
    %cst = arith.constant dense<0.000000e+00> : vector<256x128xf32>
    %6 = tpu.matmul %4, %5, %cst {dimension_numbers = #tpu.dot_dimension_numbers<[1], [0], [0], [1], [0, 0, 1, 1], [], []>} : vector<256x128xbf16>, vector<128x128xbf16>, vector<256x128xf32> -> vector<256x128xf32>
    %7 = arith.addf %3, %6 : vector<256x128xf32>
    %c0_6 = arith.constant 0 : index
    %c0_7 = arith.constant 0 : index
    %8 = vector.load %arg7[%c0_6, %c0_7] : memref<256x128xf32, #tpu.memory_space<vmem>>, vector<256x128xf32>
    tpu.vector_store %arg7[%c0_6, %c0_7], %7 {strides = array<i32>} : memref<256x128xf32, #tpu.memory_space<vmem>>, vector<256x128xf32>,
    %c0_i32_8 = arith.constant 0 : i32
    %9 = arith.cmpi eq, %arg2, %c0_i32_8 : i32
    %10 = arith.extui %9 : i1 to i32
    %c0_i32_9 = arith.constant 0 : i32
    %11 = arith.cmpi ne, %10, %c0_i32_9 : i32
    scf.if %11 {
      %c0_10 = arith.constant 0 : index
      %c0_11 = arith.constant 0 : index
      %12 = vector.load %arg7[%c0_10, %c0_11] : memref<256x128xf32, #tpu.memory_space<vmem>>, vector<256x128xf32>
      %c0_12 = arith.constant 0 : index
      %c0_13 = arith.constant 0 : index
      %13 = vector.load %arg5[%c0_12, %c0_13] : memref<1x128xf32, #tpu.memory_space<vmem>>, vector<1x128xf32>
      %14 = vector.broadcast %13 : vector<1x128xf32> to vector<256x128xf32>
      %15 = arith.addf %12, %14 : vector<256x128xf32>
      %16 = arith.truncf %15 : vector<256x128xf32> to vector<256x128xbf16>
      %c0_14 = arith.constant 0 : index
      %c0_15 = arith.constant 0 : index
      %17 = vector.load %arg6[%c0_14, %c0_15] : memref<256x128xbf16, #tpu.memory_space<vmem>>, vector<256x128xbf16>
      tpu.vector_store %arg6[%c0_14, %c0_15], %16 {strides = array<i32>} : memref<256x128xbf16, #tpu.memory_space<vmem>>, vector<256x128xbf16>,
    } else {
    }
    return
  }
  func.func @transform_0(%arg0: i32, %arg1: i32, %arg2: i32) -> (i32, i32) {
    %c0_i32 = arith.constant 0 : i32
    return %arg0, %arg2 : i32, i32
  }
  func.func @transform_1(%arg0: i32, %arg1: i32, %arg2: i32) -> (i32, i32) {
    %c0_i32 = arith.constant 0 : i32
    return %arg2, %arg1 : i32, i32
  }
  func.func @transform_2(%arg0: i32, %arg1: i32, %arg2: i32) -> (i32, i32) {
    %c0_i32 = arith.constant 0 : i32
    %c0_i32_0 = arith.constant 0 : i32
    return %c0_i32, %arg1 : i32, i32
  }
  func.func @transform_3(%arg0: i32, %arg1: i32, %arg2: i32) -> (i32, i32) {
    %c0_i32 = arith.constant 0 : i32
    return %arg0, %arg1 : i32, i32
  }
}

module attributes {stable_mosaic.version = 11 : i64} {
  func.func @kernel(%arg0: i32, %arg1: i32, %arg2: memref<1x2x8x512xbf16, #tpu.memory_space<vmem>>, %arg3: memref<1x512xf32, #tpu.memory_space<vmem>>, %arg4: memref<1x512xf32, #tpu.memory_space<vmem>>, %arg5: memref<1x512xf32, #tpu.memory_space<vmem>>, %arg6: memref<1x512xf32, #tpu.memory_space<vmem>>, %arg7: memref<1x512xf32, #tpu.memory_space<vmem>>, %arg8: memref<1x512xf32, #tpu.memory_space<vmem>>, %arg9: memref<2x512xf32, #tpu.memory_space<vmem>>, %arg10: memref<1x2x8x512xbf16, #tpu.memory_space<vmem>>, %arg11: memref<2x8x512xf32, #tpu.memory_space<vmem>>, %arg12: memref<2x8x512xf32, #tpu.memory_space<vmem>>, %arg13: memref<2x8x512xf32, #tpu.memory_space<vmem>>, %arg14: memref<8x512xf32, #tpu.memory_space<vmem>>, %arg15: memref<2x8x512xf32, #tpu.memory_space<vmem>>, %arg16: memref<2x8x512xf32, #tpu.memory_space<vmem>>, %arg17: memref<8x512xf32, #tpu.memory_space<vmem>>) attributes {dimension_semantics = [#tpu.dimension_semantics<parallel>, #tpu.dimension_semantics<arbitrary>], iteration_bounds = array<i64: 2, 4>, scalar_prefetch = 0 : i64, scratch_operands = 7 : i64, tpu.core_type = #tpu.core_type<tc>, window_params = [{transform_indices = @transform_0, window_bounds = array<i64: 1, 2, 8, 512>}, {transform_indices = @transform_1, window_bounds = array<i64: 1, 512>}, {transform_indices = @transform_2, window_bounds = array<i64: 1, 512>}, {transform_indices = @transform_3, window_bounds = array<i64: 1, 512>}, {transform_indices = @transform_4, window_bounds = array<i64: 1, 512>}, {transform_indices = @transform_5, window_bounds = array<i64: 1, 512>}, {transform_indices = @transform_6, window_bounds = array<i64: 1, 512>}, {transform_indices = @transform_7, window_bounds = array<i64: 2, 512>}, {transform_indices = @transform_8, window_bounds = array<i64: 1, 2, 8, 512>}]} {
    %c0 = arith.constant 0 : index
    %c0_0 = arith.constant 0 : index
    %0 = vector.load %arg3[%c0, %c0_0] : memref<1x512xf32, #tpu.memory_space<vmem>>, vector<1x512xf32>
    %c0_1 = arith.constant 0 : index
    %c0_2 = arith.constant 0 : index
    %1 = vector.load %arg4[%c0_1, %c0_2] : memref<1x512xf32, #tpu.memory_space<vmem>>, vector<1x512xf32>
    %c0_3 = arith.constant 0 : index
    %c0_4 = arith.constant 0 : index
    %2 = vector.load %arg5[%c0_3, %c0_4] : memref<1x512xf32, #tpu.memory_space<vmem>>, vector<1x512xf32>
    %c0_5 = arith.constant 0 : index
    %c0_6 = arith.constant 0 : index
    %3 = vector.load %arg6[%c0_5, %c0_6] : memref<1x512xf32, #tpu.memory_space<vmem>>, vector<1x512xf32>
    %c0_7 = arith.constant 0 : index
    %c0_8 = arith.constant 0 : index
    %4 = vector.load %arg7[%c0_7, %c0_8] : memref<1x512xf32, #tpu.memory_space<vmem>>, vector<1x512xf32>
    %c0_9 = arith.constant 0 : index
    %c0_10 = arith.constant 0 : index
    %5 = vector.load %arg8[%c0_9, %c0_10] : memref<1x512xf32, #tpu.memory_space<vmem>>, vector<1x512xf32>
    %c0_11 = arith.constant 0 : index
    %c0_12 = arith.constant 0 : index
    %6 = vector.load %arg9[%c0_11, %c0_12] : memref<2x512xf32, #tpu.memory_space<vmem>>, vector<2x512xf32>
    %c0_13 = arith.constant 0 : index
    %c0_14 = arith.constant 0 : index
    %c0_15 = arith.constant 0 : index
    %c0_16 = arith.constant 0 : index
    %7 = vector.load %arg2[%c0_13, %c0_14, %c0_15, %c0_16] : memref<1x2x8x512xbf16, #tpu.memory_space<vmem>>, vector<1x2x8x512xbf16>
    %8 = vector.shape_cast %7 : vector<1x2x8x512xbf16> to vector<2x8x512xbf16>
    %9 = arith.extf %8 : vector<2x8x512xbf16> to vector<2x8x512xf32>
    %10 = vector.shape_cast %0 : vector<1x512xf32> to vector<1x1x512xf32>
    %11 = vector.broadcast %10 : vector<1x1x512xf32> to vector<2x8x512xf32>
    %12 = arith.mulf %9, %11 : vector<2x8x512xf32>
    %13 = vector.shape_cast %1 : vector<1x512xf32> to vector<1x1x512xf32>
    %14 = vector.broadcast %13 : vector<1x1x512xf32> to vector<2x8x512xf32>
    %15 = arith.addf %12, %14 : vector<2x8x512xf32>
    %c0_i32 = arith.constant 0 : i32
    %16 = arith.cmpi eq, %arg1, %c0_i32 : i32
    %17 = arith.extui %16 : i1 to i32
    %c0_i32_17 = arith.constant 0 : i32
    %18 = arith.cmpi ne, %17, %c0_i32_17 : i32
    scf.if %18 {
      %c0_46 = arith.constant 0 : index
      %c0_47 = arith.constant 0 : index
      %c0_48 = arith.constant 0 : index
      %70 = vector.load %arg16[%c0_46, %c0_47, %c0_48] : memref<2x8x512xf32, #tpu.memory_space<vmem>>, vector<2x8x512xf32>
      tpu.vector_store %arg16[%c0_46, %c0_47, %c0_48], %15 {strides = array<i32>} : memref<2x8x512xf32, #tpu.memory_space<vmem>>, vector<2x8x512xf32>,
      %cst_49 = arith.constant 0.000000e+00 : f32
      %71 = vector.broadcast %cst_49 : f32 to vector<8x512xf32>
      %c0_50 = arith.constant 0 : index
      %c0_51 = arith.constant 0 : index
      %72 = vector.load %arg17[%c0_50, %c0_51] : memref<8x512xf32, #tpu.memory_space<vmem>>, vector<8x512xf32>
      tpu.vector_store %arg17[%c0_50, %c0_51], %71 {strides = array<i32>} : memref<8x512xf32, #tpu.memory_space<vmem>>, vector<8x512xf32>,
      %cst_52 = arith.constant 1.000000e+00 : f32
      %73 = vector.broadcast %cst_52 : f32 to vector<2x8x512xf32>
      %c0_53 = arith.constant 0 : index
      %c0_54 = arith.constant 0 : index
      %c0_55 = arith.constant 0 : index
      %74 = vector.load %arg15[%c0_53, %c0_54, %c0_55] : memref<2x8x512xf32, #tpu.memory_space<vmem>>, vector<2x8x512xf32>
      tpu.vector_store %arg15[%c0_53, %c0_54, %c0_55], %73 {strides = array<i32>} : memref<2x8x512xf32, #tpu.memory_space<vmem>>, vector<2x8x512xf32>,
      %cst_56 = arith.constant 0.000000e+00 : f32
      %75 = vector.broadcast %cst_56 : f32 to vector<2x8x512xf32>
      %c0_57 = arith.constant 0 : index
      %c0_58 = arith.constant 0 : index
      %c0_59 = arith.constant 0 : index
      %76 = vector.load %arg13[%c0_57, %c0_58, %c0_59] : memref<2x8x512xf32, #tpu.memory_space<vmem>>, vector<2x8x512xf32>
      tpu.vector_store %arg13[%c0_57, %c0_58, %c0_59], %75 {strides = array<i32>} : memref<2x8x512xf32, #tpu.memory_space<vmem>>, vector<2x8x512xf32>,
    } else {
    }
    %c0_i32_18 = arith.constant 0 : i32
    %19 = arith.cmpi sgt, %arg1, %c0_i32_18 : i32
    %20 = arith.extui %19 : i1 to i32
    %c0_i32_19 = arith.constant 0 : i32
    %21 = arith.cmpi ne, %20, %c0_i32_19 : i32
    scf.if %21 {
      %c0_46 = arith.constant 0 : index
      %c0_47 = arith.constant 0 : index
      %c0_48 = arith.constant 0 : index
      %70 = vector.load %arg11[%c0_46, %c0_47, %c0_48] : memref<2x8x512xf32, #tpu.memory_space<vmem>>, vector<2x8x512xf32>
      %c0_49 = arith.constant 0 : index
      %c0_50 = arith.constant 0 : index
      %c0_51 = arith.constant 0 : index
      %71 = vector.load %arg12[%c0_49, %c0_50, %c0_51] : memref<2x8x512xf32, #tpu.memory_space<vmem>>, vector<2x8x512xf32>
      %c0_52 = arith.constant 0 : index
      %c0_53 = arith.constant 0 : index
      %c0_54 = arith.constant 0 : index
      %72 = vector.load %arg13[%c0_52, %c0_53, %c0_54] : memref<2x8x512xf32, #tpu.memory_space<vmem>>, vector<2x8x512xf32>
      %c0_55 = arith.constant 0 : index
      %c0_56 = arith.constant 0 : index
      %73 = vector.load %arg14[%c0_55, %c0_56] : memref<8x512xf32, #tpu.memory_space<vmem>>, vector<8x512xf32>
      %cst_57 = arith.constant dense<0xFF800000> : vector<8x512xf32>
      %74 = vector.multi_reduction <maximumf>, %70, %cst_57 [0] : vector<2x8x512xf32> to vector<8x512xf32>
      %cst_58 = arith.constant 0.000000e+00 : f32
      %75 = vector.broadcast %cst_58 : f32 to vector<8x512xf32>
      %76 = arith.cmpf ogt, %74, %75 : vector<8x512xf32>
      %77 = arith.extui %76 : vector<8x512xi1> to vector<8x512xi32>
      %78 = arith.sitofp %77 : vector<8x512xi32> to vector<8x512xf32>
      %79 = vector.shape_cast %78 : vector<8x512xf32> to vector<1x8x512xf32>
      %80 = vector.broadcast %79 : vector<1x8x512xf32> to vector<2x8x512xf32>
      %81 = arith.cmpf olt, %71, %80 : vector<2x8x512xf32>
      %cst_59 = arith.constant 0.000000e+00 : f32
      %82 = vector.broadcast %cst_59 : f32 to vector<2x8x512xf32>
      %83 = arith.select %81, %15, %82 : vector<2x8x512xi1>, vector<2x8x512xf32>
      %84 = arith.subf %15, %83 : vector<2x8x512xf32>
      %c0_60 = arith.constant 0 : index
      %c0_61 = arith.constant 0 : index
      %c0_62 = arith.constant 0 : index
      %85 = vector.load %arg16[%c0_60, %c0_61, %c0_62] : memref<2x8x512xf32, #tpu.memory_space<vmem>>, vector<2x8x512xf32>
      tpu.vector_store %arg16[%c0_60, %c0_61, %c0_62], %84 {strides = array<i32>} : memref<2x8x512xf32, #tpu.memory_space<vmem>>, vector<2x8x512xf32>,
      %cst_63 = arith.constant 1.000000e+00 : f32
      %86 = vector.broadcast %cst_63 : f32 to vector<8x512xf32>
      %87 = arith.subf %86, %78 : vector<8x512xf32>
      %88 = arith.mulf %73, %87 : vector<8x512xf32>
      %c0_64 = arith.constant 0 : index
      %c0_65 = arith.constant 0 : index
      %89 = vector.load %arg17[%c0_64, %c0_65] : memref<8x512xf32, #tpu.memory_space<vmem>>, vector<8x512xf32>
      tpu.vector_store %arg17[%c0_64, %c0_65], %88 {strides = array<i32>} : memref<8x512xf32, #tpu.memory_space<vmem>>, vector<8x512xf32>,
      %90 = arith.mulf %72, %70 : vector<2x8x512xf32>
      %cst_66 = arith.constant dense<0.000000e+00> : vector<8x512xf32>
      %91 = vector.multi_reduction <add>, %90, %cst_66 [0] : vector<2x8x512xf32> to vector<8x512xf32>
      %92 = vector.broadcast %4 : vector<1x512xf32> to vector<8x512xf32>
      %93 = arith.addf %91, %92 : vector<8x512xf32>
      %cst_67 = arith.constant 1.000000e+00 : f32
      %94 = vector.broadcast %cst_67 : f32 to vector<2x8x512xf32>
      %95 = arith.cmpf ogt, %71, %94 : vector<2x8x512xf32>
      %96 = arith.extui %95 : vector<2x8x512xi1> to vector<2x8x512xi32>
      %97 = arith.sitofp %96 : vector<2x8x512xi32> to vector<2x8x512xf32>
      %cst_68 = arith.constant dense<0.000000e+00> : vector<8x512xf32>
      %98 = vector.multi_reduction <add>, %97, %cst_68 [0] : vector<2x8x512xf32> to vector<8x512xf32>
      %99 = vector.broadcast %5 : vector<1x512xf32> to vector<8x512xf32>
      %100 = arith.mulf %98, %99 : vector<8x512xf32>
      %101 = math.exp %100 : vector<8x512xf32>
      %102 = arith.mulf %93, %101 : vector<8x512xf32>
      %103 = vector.extract_strided_slice %72 {offsets = [1, 0, 0], sizes = [1, 8, 512], strides = [1, 1, 1]} : vector<2x8x512xf32> to vector<1x8x512xf32>
      %104 = vector.shape_cast %103 : vector<1x8x512xf32> to vector<8x512xf32>
      %cst_69 = arith.constant 1.000000e+00 : f32
      %105 = vector.broadcast %cst_69 : f32 to vector<8x512xf32>
      %106 = arith.subf %105, %78 : vector<8x512xf32>
      %107 = arith.mulf %104, %106 : vector<8x512xf32>
      %108 = arith.mulf %102, %78 : vector<8x512xf32>
      %109 = arith.addf %107, %108 : vector<8x512xf32>
      %110 = vector.shape_cast %6 : vector<2x512xf32> to vector<2x1x512xf32>
      %111 = vector.shape_cast %109 : vector<8x512xf32> to vector<1x8x512xf32>
      %112 = vector.broadcast %110 : vector<2x1x512xf32> to vector<2x8x512xf32>
      %113 = vector.broadcast %111 : vector<1x8x512xf32> to vector<2x8x512xf32>
      %114 = arith.mulf %112, %113 : vector<2x8x512xf32>
      %c0_70 = arith.constant 0 : index
      %c0_71 = arith.constant 0 : index
      %c0_72 = arith.constant 0 : index
      %115 = vector.load %arg13[%c0_70, %c0_71, %c0_72] : memref<2x8x512xf32, #tpu.memory_space<vmem>>, vector<2x8x512xf32>
      tpu.vector_store %arg13[%c0_70, %c0_71, %c0_72], %114 {strides = array<i32>} : memref<2x8x512xf32, #tpu.memory_space<vmem>>, vector<2x8x512xf32>,
      %116 = vector.shape_cast %3 : vector<1x512xf32> to vector<1x1x512xf32>
      %117 = vector.broadcast %116 : vector<1x1x512xf32> to vector<2x8x512xf32>
      %118 = arith.mulf %117, %114 : vector<2x8x512xf32>
      %cst_73 = arith.constant 1.000000e+00 : f32
      %119 = vector.broadcast %cst_73 : f32 to vector<2x8x512xf32>
      %120 = arith.addf %119, %118 : vector<2x8x512xf32>
      %c0_74 = arith.constant 0 : index
      %c0_75 = arith.constant 0 : index
      %c0_76 = arith.constant 0 : index
      %121 = vector.load %arg15[%c0_74, %c0_75, %c0_76] : memref<2x8x512xf32, #tpu.memory_space<vmem>>, vector<2x8x512xf32>
      tpu.vector_store %arg15[%c0_74, %c0_75, %c0_76], %120 {strides = array<i32>} : memref<2x8x512xf32, #tpu.memory_space<vmem>>, vector<2x8x512xf32>,
    } else {
    }
    %c0_20 = arith.constant 0 : index
    %c0_21 = arith.constant 0 : index
    %c0_22 = arith.constant 0 : index
    %22 = vector.load %arg16[%c0_20, %c0_21, %c0_22] : memref<2x8x512xf32, #tpu.memory_space<vmem>>, vector<2x8x512xf32>
    %c0_23 = arith.constant 0 : index
    %c0_24 = arith.constant 0 : index
    %23 = vector.load %arg17[%c0_23, %c0_24] : memref<8x512xf32, #tpu.memory_space<vmem>>, vector<8x512xf32>
    %c0_25 = arith.constant 0 : index
    %c0_26 = arith.constant 0 : index
    %c0_27 = arith.constant 0 : index
    %24 = vector.load %arg15[%c0_25, %c0_26, %c0_27] : memref<2x8x512xf32, #tpu.memory_space<vmem>>, vector<2x8x512xf32>
    %25 = vector.extract_strided_slice %22 {offsets = [0, 0, 0], sizes = [1, 8, 512], strides = [1, 1, 1]} : vector<2x8x512xf32> to vector<1x8x512xf32>
    %26 = vector.shape_cast %25 : vector<1x8x512xf32> to vector<8x512xf32>
    %27 = vector.broadcast %2 : vector<1x512xf32> to vector<8x512xf32>
    %28 = arith.mulf %27, %23 : vector<8x512xf32>
    %29 = arith.addf %26, %28 : vector<8x512xf32>
    %30 = vector.broadcast %2 : vector<1x512xf32> to vector<8x512xf32>
    %31 = arith.mulf %30, %29 : vector<8x512xf32>
    %32 = vector.extract_strided_slice %22 {offsets = [1, 0, 0], sizes = [1, 8, 512], strides = [1, 1, 1]} : vector<2x8x512xf32> to vector<1x8x512xf32>
    %33 = vector.shape_cast %32 : vector<1x8x512xf32> to vector<8x512xf32>
    %34 = arith.addf %31, %33 : vector<8x512xf32>
    %cst = arith.constant 0.000000e+00 : f32
    %35 = vector.broadcast %cst : f32 to vector<8x512xf32>
    %cst_28 = arith.constant 0.000000e+00 : f32
    %36 = vector.broadcast %cst_28 : f32 to vector<8x512xf32>
    %37 = vector.extract_strided_slice %24 {offsets = [0, 0, 0], sizes = [1, 8, 512], strides = [1, 1, 1]} : vector<2x8x512xf32> to vector<1x8x512xf32>
    %38 = vector.shape_cast %37 : vector<1x8x512xf32> to vector<8x512xf32>
    %39 = arith.subf %29, %38 : vector<8x512xf32>
    %cst_29 = arith.constant 0.000000e+00 : f32
    %40 = vector.broadcast %cst_29 : f32 to vector<8x512xf32>
    %41 = arith.cmpf ogt, %39, %40 : vector<8x512xf32>
    %42 = arith.extui %41 : vector<8x512xi1> to vector<8x512xi32>
    %43 = arith.sitofp %42 : vector<8x512xi32> to vector<8x512xf32>
    %44 = arith.addf %35, %43 : vector<8x512xf32>
    %45 = arith.addf %36, %44 : vector<8x512xf32>
    %46 = vector.extract_strided_slice %24 {offsets = [1, 0, 0], sizes = [1, 8, 512], strides = [1, 1, 1]} : vector<2x8x512xf32> to vector<1x8x512xf32>
    %47 = vector.shape_cast %46 : vector<1x8x512xf32> to vector<8x512xf32>
    %48 = arith.subf %34, %47 : vector<8x512xf32>
    %cst_30 = arith.constant 0.000000e+00 : f32
    %49 = vector.broadcast %cst_30 : f32 to vector<8x512xf32>
    %50 = arith.cmpf ogt, %48, %49 : vector<8x512xf32>
    %51 = arith.extui %50 : vector<8x512xi1> to vector<8x512xi32>
    %52 = arith.sitofp %51 : vector<8x512xi32> to vector<8x512xf32>
    %53 = arith.addf %44, %52 : vector<8x512xf32>
    %54 = arith.addf %45, %53 : vector<8x512xf32>
    %55 = vector.shape_cast %45 : vector<8x512xf32> to vector<1x8x512xf32>
    %56 = vector.shape_cast %54 : vector<8x512xf32> to vector<1x8x512xf32>
    %57 = tpu.concatenate %55, %56 in 0 : vector<1x8x512xf32>, vector<1x8x512xf32> -> vector<2x8x512xf32>
    %cst_31 = arith.constant 1.000000e+00 : f32
    %58 = vector.broadcast %cst_31 : f32 to vector<2x8x512xf32>
    %59 = arith.cmpf oeq, %57, %58 : vector<2x8x512xf32>
    %cst_32 = arith.constant 1.000000e+00 : f32
    %cst_33 = arith.constant 0.000000e+00 : f32
    %60 = vector.broadcast %cst_32 : f32 to vector<2x8x512xf32>
    %61 = vector.broadcast %cst_33 : f32 to vector<2x8x512xf32>
    %62 = arith.select %59, %60, %61 : vector<2x8x512xi1>, vector<2x8x512xf32>
    %c0_34 = arith.constant 0 : index
    %c0_35 = arith.constant 0 : index
    %c0_36 = arith.constant 0 : index
    %63 = vector.load %arg11[%c0_34, %c0_35, %c0_36] : memref<2x8x512xf32, #tpu.memory_space<vmem>>, vector<2x8x512xf32>
    tpu.vector_store %arg11[%c0_34, %c0_35, %c0_36], %62 {strides = array<i32>} : memref<2x8x512xf32, #tpu.memory_space<vmem>>, vector<2x8x512xf32>,
    %c0_37 = arith.constant 0 : index
    %c0_38 = arith.constant 0 : index
    %c0_39 = arith.constant 0 : index
    %64 = vector.load %arg12[%c0_37, %c0_38, %c0_39] : memref<2x8x512xf32, #tpu.memory_space<vmem>>, vector<2x8x512xf32>
    tpu.vector_store %arg12[%c0_37, %c0_38, %c0_39], %57 {strides = array<i32>} : memref<2x8x512xf32, #tpu.memory_space<vmem>>, vector<2x8x512xf32>,
    %c0_40 = arith.constant 0 : index
    %c0_41 = arith.constant 0 : index
    %65 = vector.load %arg14[%c0_40, %c0_41] : memref<8x512xf32, #tpu.memory_space<vmem>>, vector<8x512xf32>
    tpu.vector_store %arg14[%c0_40, %c0_41], %34 {strides = array<i32>} : memref<8x512xf32, #tpu.memory_space<vmem>>, vector<8x512xf32>,
    %66 = arith.truncf %62 : vector<2x8x512xf32> to vector<2x8x512xbf16>
    %c0_42 = arith.constant 0 : index
    %c0_43 = arith.constant 0 : index
    %c0_44 = arith.constant 0 : index
    %c0_45 = arith.constant 0 : index
    %67 = vector.load %arg10[%c0_42, %c0_43, %c0_44, %c0_45] : memref<1x2x8x512xbf16, #tpu.memory_space<vmem>>, vector<1x2x8x512xbf16>
    %68 = vector.shape_cast %67 : vector<1x2x8x512xbf16> to vector<2x8x512xbf16>
    %69 = vector.shape_cast %66 : vector<2x8x512xbf16> to vector<1x2x8x512xbf16>
    tpu.vector_store %arg10[%c0_42, %c0_43, %c0_44, %c0_45], %69 {strides = array<i32>} : memref<1x2x8x512xbf16, #tpu.memory_space<vmem>>, vector<1x2x8x512xbf16>,
    return
  }
  func.func @transform_0(%arg0: i32, %arg1: i32) -> (i32, i32, i32, i32) {
    %c0_i32 = arith.constant 0 : i32
    %c0_i32_0 = arith.constant 0 : i32
    %c0_i32_1 = arith.constant 0 : i32
    return %arg1, %c0_i32, %c0_i32_0, %arg0 : i32, i32, i32, i32
  }
  func.func @transform_1(%arg0: i32, %arg1: i32) -> (i32, i32) {
    %c0_i32 = arith.constant 0 : i32
    %c0_i32_0 = arith.constant 0 : i32
    return %c0_i32, %arg0 : i32, i32
  }
  func.func @transform_2(%arg0: i32, %arg1: i32) -> (i32, i32) {
    %c0_i32 = arith.constant 0 : i32
    %c0_i32_0 = arith.constant 0 : i32
    return %c0_i32, %arg0 : i32, i32
  }
  func.func @transform_3(%arg0: i32, %arg1: i32) -> (i32, i32) {
    %c0_i32 = arith.constant 0 : i32
    %c0_i32_0 = arith.constant 0 : i32
    return %c0_i32, %arg0 : i32, i32
  }
  func.func @transform_4(%arg0: i32, %arg1: i32) -> (i32, i32) {
    %c0_i32 = arith.constant 0 : i32
    %c0_i32_0 = arith.constant 0 : i32
    return %c0_i32, %arg0 : i32, i32
  }
  func.func @transform_5(%arg0: i32, %arg1: i32) -> (i32, i32) {
    %c0_i32 = arith.constant 0 : i32
    %c0_i32_0 = arith.constant 0 : i32
    return %c0_i32, %arg0 : i32, i32
  }
  func.func @transform_6(%arg0: i32, %arg1: i32) -> (i32, i32) {
    %c0_i32 = arith.constant 0 : i32
    %c0_i32_0 = arith.constant 0 : i32
    return %c0_i32, %arg0 : i32, i32
  }
  func.func @transform_7(%arg0: i32, %arg1: i32) -> (i32, i32) {
    %c0_i32 = arith.constant 0 : i32
    %c0_i32_0 = arith.constant 0 : i32
    return %c0_i32, %arg0 : i32, i32
  }
  func.func @transform_8(%arg0: i32, %arg1: i32) -> (i32, i32, i32, i32) {
    %c0_i32 = arith.constant 0 : i32
    %c0_i32_0 = arith.constant 0 : i32
    %c0_i32_1 = arith.constant 0 : i32
    return %arg1, %c0_i32, %c0_i32_0, %arg0 : i32, i32, i32, i32
  }
}

module attributes {stable_mosaic.version = 11 : i64} {
  func.func @_matmul_kernel(%arg0: i32, %arg1: i32, %arg2: i32, %arg3: memref<256x128xbf16, #tpu.memory_space<vmem>>, %arg4: memref<128x128xbf16, #tpu.memory_space<vmem>>, %arg5: memref<1x128xf32, #tpu.memory_space<vmem>>, %arg6: memref<256x128xbf16, #tpu.memory_space<vmem>>, %arg7: memref<256x128xf32, #tpu.memory_space<vmem>>) attributes {dimension_semantics = [#tpu.dimension_semantics<parallel>, #tpu.dimension_semantics<parallel>, #tpu.dimension_semantics<arbitrary>], iteration_bounds = array<i64: 4, 1, 1>, scalar_prefetch = 0 : i64, scratch_operands = 1 : i64, tpu.core_type = #tpu.core_type<tc>, window_params = [{transform_indices = @transform_0, window_bounds = array<i64: 256, 128>}, {transform_indices = @transform_1, window_bounds = array<i64: 128, 128>}, {transform_indices = @transform_2, window_bounds = array<i64: 1, 128>}, {transform_indices = @transform_3, window_bounds = array<i64: 256, 128>}]} {
    %c0_i32 = arith.constant 0 : i32
    %0 = arith.cmpi eq, %arg2, %c0_i32 : i32
    %1 = arith.extui %0 : i1 to i32
    %c0_i32_0 = arith.constant 0 : i32
    %2 = arith.cmpi ne, %1, %c0_i32_0 : i32
    scf.if %2 {
      %cst_10 = arith.constant 0.000000e+00 : f32
      %12 = vector.broadcast %cst_10 : f32 to vector<256x128xf32>
      %c0_11 = arith.constant 0 : index
      %c0_12 = arith.constant 0 : index
      %13 = vector.load %arg7[%c0_11, %c0_12] : memref<256x128xf32, #tpu.memory_space<vmem>>, vector<256x128xf32>
      tpu.vector_store %arg7[%c0_11, %c0_12], %12 {strides = array<i32>} : memref<256x128xf32, #tpu.memory_space<vmem>>, vector<256x128xf32>,
    } else {
    }
    %c0 = arith.constant 0 : index
    %c0_1 = arith.constant 0 : index
    %3 = vector.load %arg7[%c0, %c0_1] : memref<256x128xf32, #tpu.memory_space<vmem>>, vector<256x128xf32>
    %c0_2 = arith.constant 0 : index
    %c0_3 = arith.constant 0 : index
    %4 = vector.load %arg3[%c0_2, %c0_3] : memref<256x128xbf16, #tpu.memory_space<vmem>>, vector<256x128xbf16>
    %c0_4 = arith.constant 0 : index
    %c0_5 = arith.constant 0 : index
    %5 = vector.load %arg4[%c0_4, %c0_5] : memref<128x128xbf16, #tpu.memory_space<vmem>>, vector<128x128xbf16>
    %cst = arith.constant dense<0.000000e+00> : vector<256x128xf32>
    %6 = tpu.matmul %4, %5, %cst {dimension_numbers = #tpu.dot_dimension_numbers<[1], [0], [0], [1], [0, 0, 1, 1], [], []>} : vector<256x128xbf16>, vector<128x128xbf16>, vector<256x128xf32> -> vector<256x128xf32>
    %7 = arith.addf %3, %6 : vector<256x128xf32>
    %c0_6 = arith.constant 0 : index
    %c0_7 = arith.constant 0 : index
    %8 = vector.load %arg7[%c0_6, %c0_7] : memref<256x128xf32, #tpu.memory_space<vmem>>, vector<256x128xf32>
    tpu.vector_store %arg7[%c0_6, %c0_7], %7 {strides = array<i32>} : memref<256x128xf32, #tpu.memory_space<vmem>>, vector<256x128xf32>,
    %c0_i32_8 = arith.constant 0 : i32
    %9 = arith.cmpi eq, %arg2, %c0_i32_8 : i32
    %10 = arith.extui %9 : i1 to i32
    %c0_i32_9 = arith.constant 0 : i32
    %11 = arith.cmpi ne, %10, %c0_i32_9 : i32
    scf.if %11 {
      %c0_10 = arith.constant 0 : index
      %c0_11 = arith.constant 0 : index
      %12 = vector.load %arg7[%c0_10, %c0_11] : memref<256x128xf32, #tpu.memory_space<vmem>>, vector<256x128xf32>
      %c0_12 = arith.constant 0 : index
      %c0_13 = arith.constant 0 : index
      %13 = vector.load %arg5[%c0_12, %c0_13] : memref<1x128xf32, #tpu.memory_space<vmem>>, vector<1x128xf32>
      %14 = vector.broadcast %13 : vector<1x128xf32> to vector<256x128xf32>
      %15 = arith.addf %12, %14 : vector<256x128xf32>
      %16 = arith.truncf %15 : vector<256x128xf32> to vector<256x128xbf16>
      %c0_14 = arith.constant 0 : index
      %c0_15 = arith.constant 0 : index
      %17 = vector.load %arg6[%c0_14, %c0_15] : memref<256x128xbf16, #tpu.memory_space<vmem>>, vector<256x128xbf16>
      tpu.vector_store %arg6[%c0_14, %c0_15], %16 {strides = array<i32>} : memref<256x128xbf16, #tpu.memory_space<vmem>>, vector<256x128xbf16>,
    } else {
    }
    return
  }
  func.func @transform_0(%arg0: i32, %arg1: i32, %arg2: i32) -> (i32, i32) {
    %c0_i32 = arith.constant 0 : i32
    return %arg0, %arg2 : i32, i32
  }
  func.func @transform_1(%arg0: i32, %arg1: i32, %arg2: i32) -> (i32, i32) {
    %c0_i32 = arith.constant 0 : i32
    return %arg2, %arg1 : i32, i32
  }
  func.func @transform_2(%arg0: i32, %arg1: i32, %arg2: i32) -> (i32, i32) {
    %c0_i32 = arith.constant 0 : i32
    %c0_i32_0 = arith.constant 0 : i32
    return %c0_i32, %arg1 : i32, i32
  }
  func.func @transform_3(%arg0: i32, %arg1: i32, %arg2: i32) -> (i32, i32) {
    %c0_i32 = arith.constant 0 : i32
    return %arg0, %arg1 : i32, i32
  }
}

module attributes {stable_mosaic.version = 11 : i64} {
  func.func @kernel(%arg0: i32, %arg1: i32, %arg2: memref<1x2x8x128xbf16, #tpu.memory_space<vmem>>, %arg3: memref<1x128xf32, #tpu.memory_space<vmem>>, %arg4: memref<1x128xf32, #tpu.memory_space<vmem>>, %arg5: memref<1x128xf32, #tpu.memory_space<vmem>>, %arg6: memref<1x128xf32, #tpu.memory_space<vmem>>, %arg7: memref<1x128xf32, #tpu.memory_space<vmem>>, %arg8: memref<1x128xf32, #tpu.memory_space<vmem>>, %arg9: memref<2x128xf32, #tpu.memory_space<vmem>>, %arg10: memref<1x2x8x128xbf16, #tpu.memory_space<vmem>>, %arg11: memref<2x8x128xf32, #tpu.memory_space<vmem>>, %arg12: memref<2x8x128xf32, #tpu.memory_space<vmem>>, %arg13: memref<2x8x128xf32, #tpu.memory_space<vmem>>, %arg14: memref<8x128xf32, #tpu.memory_space<vmem>>, %arg15: memref<2x8x128xf32, #tpu.memory_space<vmem>>, %arg16: memref<2x8x128xf32, #tpu.memory_space<vmem>>, %arg17: memref<8x128xf32, #tpu.memory_space<vmem>>) attributes {dimension_semantics = [#tpu.dimension_semantics<parallel>, #tpu.dimension_semantics<arbitrary>], iteration_bounds = array<i64: 2, 4>, scalar_prefetch = 0 : i64, scratch_operands = 7 : i64, tpu.core_type = #tpu.core_type<tc>, window_params = [{transform_indices = @transform_0, window_bounds = array<i64: 1, 2, 8, 128>}, {transform_indices = @transform_1, window_bounds = array<i64: 1, 128>}, {transform_indices = @transform_2, window_bounds = array<i64: 1, 128>}, {transform_indices = @transform_3, window_bounds = array<i64: 1, 128>}, {transform_indices = @transform_4, window_bounds = array<i64: 1, 128>}, {transform_indices = @transform_5, window_bounds = array<i64: 1, 128>}, {transform_indices = @transform_6, window_bounds = array<i64: 1, 128>}, {transform_indices = @transform_7, window_bounds = array<i64: 2, 128>}, {transform_indices = @transform_8, window_bounds = array<i64: 1, 2, 8, 128>}]} {
    %c0 = arith.constant 0 : index
    %c0_0 = arith.constant 0 : index
    %0 = vector.load %arg3[%c0, %c0_0] : memref<1x128xf32, #tpu.memory_space<vmem>>, vector<1x128xf32>
    %c0_1 = arith.constant 0 : index
    %c0_2 = arith.constant 0 : index
    %1 = vector.load %arg4[%c0_1, %c0_2] : memref<1x128xf32, #tpu.memory_space<vmem>>, vector<1x128xf32>
    %c0_3 = arith.constant 0 : index
    %c0_4 = arith.constant 0 : index
    %2 = vector.load %arg5[%c0_3, %c0_4] : memref<1x128xf32, #tpu.memory_space<vmem>>, vector<1x128xf32>
    %c0_5 = arith.constant 0 : index
    %c0_6 = arith.constant 0 : index
    %3 = vector.load %arg6[%c0_5, %c0_6] : memref<1x128xf32, #tpu.memory_space<vmem>>, vector<1x128xf32>
    %c0_7 = arith.constant 0 : index
    %c0_8 = arith.constant 0 : index
    %4 = vector.load %arg7[%c0_7, %c0_8] : memref<1x128xf32, #tpu.memory_space<vmem>>, vector<1x128xf32>
    %c0_9 = arith.constant 0 : index
    %c0_10 = arith.constant 0 : index
    %5 = vector.load %arg8[%c0_9, %c0_10] : memref<1x128xf32, #tpu.memory_space<vmem>>, vector<1x128xf32>
    %c0_11 = arith.constant 0 : index
    %c0_12 = arith.constant 0 : index
    %6 = vector.load %arg9[%c0_11, %c0_12] : memref<2x128xf32, #tpu.memory_space<vmem>>, vector<2x128xf32>
    %c0_13 = arith.constant 0 : index
    %c0_14 = arith.constant 0 : index
    %c0_15 = arith.constant 0 : index
    %c0_16 = arith.constant 0 : index
    %7 = vector.load %arg2[%c0_13, %c0_14, %c0_15, %c0_16] : memref<1x2x8x128xbf16, #tpu.memory_space<vmem>>, vector<1x2x8x128xbf16>
    %8 = vector.shape_cast %7 : vector<1x2x8x128xbf16> to vector<2x8x128xbf16>
    %9 = arith.extf %8 : vector<2x8x128xbf16> to vector<2x8x128xf32>
    %10 = vector.shape_cast %0 : vector<1x128xf32> to vector<1x1x128xf32>
    %11 = vector.broadcast %10 : vector<1x1x128xf32> to vector<2x8x128xf32>
    %12 = arith.mulf %9, %11 : vector<2x8x128xf32>
    %13 = vector.shape_cast %1 : vector<1x128xf32> to vector<1x1x128xf32>
    %14 = vector.broadcast %13 : vector<1x1x128xf32> to vector<2x8x128xf32>
    %15 = arith.addf %12, %14 : vector<2x8x128xf32>
    %c0_i32 = arith.constant 0 : i32
    %16 = arith.cmpi eq, %arg1, %c0_i32 : i32
    %17 = arith.extui %16 : i1 to i32
    %c0_i32_17 = arith.constant 0 : i32
    %18 = arith.cmpi ne, %17, %c0_i32_17 : i32
    scf.if %18 {
      %c0_46 = arith.constant 0 : index
      %c0_47 = arith.constant 0 : index
      %c0_48 = arith.constant 0 : index
      %70 = vector.load %arg16[%c0_46, %c0_47, %c0_48] : memref<2x8x128xf32, #tpu.memory_space<vmem>>, vector<2x8x128xf32>
      tpu.vector_store %arg16[%c0_46, %c0_47, %c0_48], %15 {strides = array<i32>} : memref<2x8x128xf32, #tpu.memory_space<vmem>>, vector<2x8x128xf32>,
      %cst_49 = arith.constant 0.000000e+00 : f32
      %71 = vector.broadcast %cst_49 : f32 to vector<8x128xf32>
      %c0_50 = arith.constant 0 : index
      %c0_51 = arith.constant 0 : index
      %72 = vector.load %arg17[%c0_50, %c0_51] : memref<8x128xf32, #tpu.memory_space<vmem>>, vector<8x128xf32>
      tpu.vector_store %arg17[%c0_50, %c0_51], %71 {strides = array<i32>} : memref<8x128xf32, #tpu.memory_space<vmem>>, vector<8x128xf32>,
      %cst_52 = arith.constant 1.000000e+00 : f32
      %73 = vector.broadcast %cst_52 : f32 to vector<2x8x128xf32>
      %c0_53 = arith.constant 0 : index
      %c0_54 = arith.constant 0 : index
      %c0_55 = arith.constant 0 : index
      %74 = vector.load %arg15[%c0_53, %c0_54, %c0_55] : memref<2x8x128xf32, #tpu.memory_space<vmem>>, vector<2x8x128xf32>
      tpu.vector_store %arg15[%c0_53, %c0_54, %c0_55], %73 {strides = array<i32>} : memref<2x8x128xf32, #tpu.memory_space<vmem>>, vector<2x8x128xf32>,
      %cst_56 = arith.constant 0.000000e+00 : f32
      %75 = vector.broadcast %cst_56 : f32 to vector<2x8x128xf32>
      %c0_57 = arith.constant 0 : index
      %c0_58 = arith.constant 0 : index
      %c0_59 = arith.constant 0 : index
      %76 = vector.load %arg13[%c0_57, %c0_58, %c0_59] : memref<2x8x128xf32, #tpu.memory_space<vmem>>, vector<2x8x128xf32>
      tpu.vector_store %arg13[%c0_57, %c0_58, %c0_59], %75 {strides = array<i32>} : memref<2x8x128xf32, #tpu.memory_space<vmem>>, vector<2x8x128xf32>,
    } else {
    }
    %c0_i32_18 = arith.constant 0 : i32
    %19 = arith.cmpi sgt, %arg1, %c0_i32_18 : i32
    %20 = arith.extui %19 : i1 to i32
    %c0_i32_19 = arith.constant 0 : i32
    %21 = arith.cmpi ne, %20, %c0_i32_19 : i32
    scf.if %21 {
      %c0_46 = arith.constant 0 : index
      %c0_47 = arith.constant 0 : index
      %c0_48 = arith.constant 0 : index
      %70 = vector.load %arg11[%c0_46, %c0_47, %c0_48] : memref<2x8x128xf32, #tpu.memory_space<vmem>>, vector<2x8x128xf32>
      %c0_49 = arith.constant 0 : index
      %c0_50 = arith.constant 0 : index
      %c0_51 = arith.constant 0 : index
      %71 = vector.load %arg12[%c0_49, %c0_50, %c0_51] : memref<2x8x128xf32, #tpu.memory_space<vmem>>, vector<2x8x128xf32>
      %c0_52 = arith.constant 0 : index
      %c0_53 = arith.constant 0 : index
      %c0_54 = arith.constant 0 : index
      %72 = vector.load %arg13[%c0_52, %c0_53, %c0_54] : memref<2x8x128xf32, #tpu.memory_space<vmem>>, vector<2x8x128xf32>
      %c0_55 = arith.constant 0 : index
      %c0_56 = arith.constant 0 : index
      %73 = vector.load %arg14[%c0_55, %c0_56] : memref<8x128xf32, #tpu.memory_space<vmem>>, vector<8x128xf32>
      %cst_57 = arith.constant dense<0xFF800000> : vector<8x128xf32>
      %74 = vector.multi_reduction <maximumf>, %70, %cst_57 [0] : vector<2x8x128xf32> to vector<8x128xf32>
      %cst_58 = arith.constant 0.000000e+00 : f32
      %75 = vector.broadcast %cst_58 : f32 to vector<8x128xf32>
      %76 = arith.cmpf ogt, %74, %75 : vector<8x128xf32>
      %77 = arith.extui %76 : vector<8x128xi1> to vector<8x128xi32>
      %78 = arith.sitofp %77 : vector<8x128xi32> to vector<8x128xf32>
      %79 = vector.shape_cast %78 : vector<8x128xf32> to vector<1x8x128xf32>
      %80 = vector.broadcast %79 : vector<1x8x128xf32> to vector<2x8x128xf32>
      %81 = arith.cmpf olt, %71, %80 : vector<2x8x128xf32>
      %cst_59 = arith.constant 0.000000e+00 : f32
      %82 = vector.broadcast %cst_59 : f32 to vector<2x8x128xf32>
      %83 = arith.select %81, %15, %82 : vector<2x8x128xi1>, vector<2x8x128xf32>
      %84 = arith.subf %15, %83 : vector<2x8x128xf32>
      %c0_60 = arith.constant 0 : index
      %c0_61 = arith.constant 0 : index
      %c0_62 = arith.constant 0 : index
      %85 = vector.load %arg16[%c0_60, %c0_61, %c0_62] : memref<2x8x128xf32, #tpu.memory_space<vmem>>, vector<2x8x128xf32>
      tpu.vector_store %arg16[%c0_60, %c0_61, %c0_62], %84 {strides = array<i32>} : memref<2x8x128xf32, #tpu.memory_space<vmem>>, vector<2x8x128xf32>,
      %cst_63 = arith.constant 1.000000e+00 : f32
      %86 = vector.broadcast %cst_63 : f32 to vector<8x128xf32>
      %87 = arith.subf %86, %78 : vector<8x128xf32>
      %88 = arith.mulf %73, %87 : vector<8x128xf32>
      %c0_64 = arith.constant 0 : index
      %c0_65 = arith.constant 0 : index
      %89 = vector.load %arg17[%c0_64, %c0_65] : memref<8x128xf32, #tpu.memory_space<vmem>>, vector<8x128xf32>
      tpu.vector_store %arg17[%c0_64, %c0_65], %88 {strides = array<i32>} : memref<8x128xf32, #tpu.memory_space<vmem>>, vector<8x128xf32>,
      %90 = arith.mulf %72, %70 : vector<2x8x128xf32>
      %cst_66 = arith.constant dense<0.000000e+00> : vector<8x128xf32>
      %91 = vector.multi_reduction <add>, %90, %cst_66 [0] : vector<2x8x128xf32> to vector<8x128xf32>
      %92 = vector.broadcast %4 : vector<1x128xf32> to vector<8x128xf32>
      %93 = arith.addf %91, %92 : vector<8x128xf32>
      %cst_67 = arith.constant 1.000000e+00 : f32
      %94 = vector.broadcast %cst_67 : f32 to vector<2x8x128xf32>
      %95 = arith.cmpf ogt, %71, %94 : vector<2x8x128xf32>
      %96 = arith.extui %95 : vector<2x8x128xi1> to vector<2x8x128xi32>
      %97 = arith.sitofp %96 : vector<2x8x128xi32> to vector<2x8x128xf32>
      %cst_68 = arith.constant dense<0.000000e+00> : vector<8x128xf32>
      %98 = vector.multi_reduction <add>, %97, %cst_68 [0] : vector<2x8x128xf32> to vector<8x128xf32>
      %99 = vector.broadcast %5 : vector<1x128xf32> to vector<8x128xf32>
      %100 = arith.mulf %98, %99 : vector<8x128xf32>
      %101 = math.exp %100 : vector<8x128xf32>
      %102 = arith.mulf %93, %101 : vector<8x128xf32>
      %103 = vector.extract_strided_slice %72 {offsets = [1, 0, 0], sizes = [1, 8, 128], strides = [1, 1, 1]} : vector<2x8x128xf32> to vector<1x8x128xf32>
      %104 = vector.shape_cast %103 : vector<1x8x128xf32> to vector<8x128xf32>
      %cst_69 = arith.constant 1.000000e+00 : f32
      %105 = vector.broadcast %cst_69 : f32 to vector<8x128xf32>
      %106 = arith.subf %105, %78 : vector<8x128xf32>
      %107 = arith.mulf %104, %106 : vector<8x128xf32>
      %108 = arith.mulf %102, %78 : vector<8x128xf32>
      %109 = arith.addf %107, %108 : vector<8x128xf32>
      %110 = vector.shape_cast %6 : vector<2x128xf32> to vector<2x1x128xf32>
      %111 = vector.shape_cast %109 : vector<8x128xf32> to vector<1x8x128xf32>
      %112 = vector.broadcast %110 : vector<2x1x128xf32> to vector<2x8x128xf32>
      %113 = vector.broadcast %111 : vector<1x8x128xf32> to vector<2x8x128xf32>
      %114 = arith.mulf %112, %113 : vector<2x8x128xf32>
      %c0_70 = arith.constant 0 : index
      %c0_71 = arith.constant 0 : index
      %c0_72 = arith.constant 0 : index
      %115 = vector.load %arg13[%c0_70, %c0_71, %c0_72] : memref<2x8x128xf32, #tpu.memory_space<vmem>>, vector<2x8x128xf32>
      tpu.vector_store %arg13[%c0_70, %c0_71, %c0_72], %114 {strides = array<i32>} : memref<2x8x128xf32, #tpu.memory_space<vmem>>, vector<2x8x128xf32>,
      %116 = vector.shape_cast %3 : vector<1x128xf32> to vector<1x1x128xf32>
      %117 = vector.broadcast %116 : vector<1x1x128xf32> to vector<2x8x128xf32>
      %118 = arith.mulf %117, %114 : vector<2x8x128xf32>
      %cst_73 = arith.constant 1.000000e+00 : f32
      %119 = vector.broadcast %cst_73 : f32 to vector<2x8x128xf32>
      %120 = arith.addf %119, %118 : vector<2x8x128xf32>
      %c0_74 = arith.constant 0 : index
      %c0_75 = arith.constant 0 : index
      %c0_76 = arith.constant 0 : index
      %121 = vector.load %arg15[%c0_74, %c0_75, %c0_76] : memref<2x8x128xf32, #tpu.memory_space<vmem>>, vector<2x8x128xf32>
      tpu.vector_store %arg15[%c0_74, %c0_75, %c0_76], %120 {strides = array<i32>} : memref<2x8x128xf32, #tpu.memory_space<vmem>>, vector<2x8x128xf32>,
    } else {
    }
    %c0_20 = arith.constant 0 : index
    %c0_21 = arith.constant 0 : index
    %c0_22 = arith.constant 0 : index
    %22 = vector.load %arg16[%c0_20, %c0_21, %c0_22] : memref<2x8x128xf32, #tpu.memory_space<vmem>>, vector<2x8x128xf32>
    %c0_23 = arith.constant 0 : index
    %c0_24 = arith.constant 0 : index
    %23 = vector.load %arg17[%c0_23, %c0_24] : memref<8x128xf32, #tpu.memory_space<vmem>>, vector<8x128xf32>
    %c0_25 = arith.constant 0 : index
    %c0_26 = arith.constant 0 : index
    %c0_27 = arith.constant 0 : index
    %24 = vector.load %arg15[%c0_25, %c0_26, %c0_27] : memref<2x8x128xf32, #tpu.memory_space<vmem>>, vector<2x8x128xf32>
    %25 = vector.extract_strided_slice %22 {offsets = [0, 0, 0], sizes = [1, 8, 128], strides = [1, 1, 1]} : vector<2x8x128xf32> to vector<1x8x128xf32>
    %26 = vector.shape_cast %25 : vector<1x8x128xf32> to vector<8x128xf32>
    %27 = vector.broadcast %2 : vector<1x128xf32> to vector<8x128xf32>
    %28 = arith.mulf %27, %23 : vector<8x128xf32>
    %29 = arith.addf %26, %28 : vector<8x128xf32>
    %30 = vector.broadcast %2 : vector<1x128xf32> to vector<8x128xf32>
    %31 = arith.mulf %30, %29 : vector<8x128xf32>
    %32 = vector.extract_strided_slice %22 {offsets = [1, 0, 0], sizes = [1, 8, 128], strides = [1, 1, 1]} : vector<2x8x128xf32> to vector<1x8x128xf32>
    %33 = vector.shape_cast %32 : vector<1x8x128xf32> to vector<8x128xf32>
    %34 = arith.addf %31, %33 : vector<8x128xf32>
    %cst = arith.constant 0.000000e+00 : f32
    %35 = vector.broadcast %cst : f32 to vector<8x128xf32>
    %cst_28 = arith.constant 0.000000e+00 : f32
    %36 = vector.broadcast %cst_28 : f32 to vector<8x128xf32>
    %37 = vector.extract_strided_slice %24 {offsets = [0, 0, 0], sizes = [1, 8, 128], strides = [1, 1, 1]} : vector<2x8x128xf32> to vector<1x8x128xf32>
    %38 = vector.shape_cast %37 : vector<1x8x128xf32> to vector<8x128xf32>
    %39 = arith.subf %29, %38 : vector<8x128xf32>
    %cst_29 = arith.constant 0.000000e+00 : f32
    %40 = vector.broadcast %cst_29 : f32 to vector<8x128xf32>
    %41 = arith.cmpf ogt, %39, %40 : vector<8x128xf32>
    %42 = arith.extui %41 : vector<8x128xi1> to vector<8x128xi32>
    %43 = arith.sitofp %42 : vector<8x128xi32> to vector<8x128xf32>
    %44 = arith.addf %35, %43 : vector<8x128xf32>
    %45 = arith.addf %36, %44 : vector<8x128xf32>
    %46 = vector.extract_strided_slice %24 {offsets = [1, 0, 0], sizes = [1, 8, 128], strides = [1, 1, 1]} : vector<2x8x128xf32> to vector<1x8x128xf32>
    %47 = vector.shape_cast %46 : vector<1x8x128xf32> to vector<8x128xf32>
    %48 = arith.subf %34, %47 : vector<8x128xf32>
    %cst_30 = arith.constant 0.000000e+00 : f32
    %49 = vector.broadcast %cst_30 : f32 to vector<8x128xf32>
    %50 = arith.cmpf ogt, %48, %49 : vector<8x128xf32>
    %51 = arith.extui %50 : vector<8x128xi1> to vector<8x128xi32>
    %52 = arith.sitofp %51 : vector<8x128xi32> to vector<8x128xf32>
    %53 = arith.addf %44, %52 : vector<8x128xf32>
    %54 = arith.addf %45, %53 : vector<8x128xf32>
    %55 = vector.shape_cast %45 : vector<8x128xf32> to vector<1x8x128xf32>
    %56 = vector.shape_cast %54 : vector<8x128xf32> to vector<1x8x128xf32>
    %57 = tpu.concatenate %55, %56 in 0 : vector<1x8x128xf32>, vector<1x8x128xf32> -> vector<2x8x128xf32>
    %cst_31 = arith.constant 1.000000e+00 : f32
    %58 = vector.broadcast %cst_31 : f32 to vector<2x8x128xf32>
    %59 = arith.cmpf oeq, %57, %58 : vector<2x8x128xf32>
    %cst_32 = arith.constant 1.000000e+00 : f32
    %cst_33 = arith.constant 0.000000e+00 : f32
    %60 = vector.broadcast %cst_32 : f32 to vector<2x8x128xf32>
    %61 = vector.broadcast %cst_33 : f32 to vector<2x8x128xf32>
    %62 = arith.select %59, %60, %61 : vector<2x8x128xi1>, vector<2x8x128xf32>
    %c0_34 = arith.constant 0 : index
    %c0_35 = arith.constant 0 : index
    %c0_36 = arith.constant 0 : index
    %63 = vector.load %arg11[%c0_34, %c0_35, %c0_36] : memref<2x8x128xf32, #tpu.memory_space<vmem>>, vector<2x8x128xf32>
    tpu.vector_store %arg11[%c0_34, %c0_35, %c0_36], %62 {strides = array<i32>} : memref<2x8x128xf32, #tpu.memory_space<vmem>>, vector<2x8x128xf32>,
    %c0_37 = arith.constant 0 : index
    %c0_38 = arith.constant 0 : index
    %c0_39 = arith.constant 0 : index
    %64 = vector.load %arg12[%c0_37, %c0_38, %c0_39] : memref<2x8x128xf32, #tpu.memory_space<vmem>>, vector<2x8x128xf32>
    tpu.vector_store %arg12[%c0_37, %c0_38, %c0_39], %57 {strides = array<i32>} : memref<2x8x128xf32, #tpu.memory_space<vmem>>, vector<2x8x128xf32>,
    %c0_40 = arith.constant 0 : index
    %c0_41 = arith.constant 0 : index
    %65 = vector.load %arg14[%c0_40, %c0_41] : memref<8x128xf32, #tpu.memory_space<vmem>>, vector<8x128xf32>
    tpu.vector_store %arg14[%c0_40, %c0_41], %34 {strides = array<i32>} : memref<8x128xf32, #tpu.memory_space<vmem>>, vector<8x128xf32>,
    %66 = arith.truncf %62 : vector<2x8x128xf32> to vector<2x8x128xbf16>
    %c0_42 = arith.constant 0 : index
    %c0_43 = arith.constant 0 : index
    %c0_44 = arith.constant 0 : index
    %c0_45 = arith.constant 0 : index
    %67 = vector.load %arg10[%c0_42, %c0_43, %c0_44, %c0_45] : memref<1x2x8x128xbf16, #tpu.memory_space<vmem>>, vector<1x2x8x128xbf16>
    %68 = vector.shape_cast %67 : vector<1x2x8x128xbf16> to vector<2x8x128xbf16>
    %69 = vector.shape_cast %66 : vector<2x8x128xbf16> to vector<1x2x8x128xbf16>
    tpu.vector_store %arg10[%c0_42, %c0_43, %c0_44, %c0_45], %69 {strides = array<i32>} : memref<1x2x8x128xbf16, #tpu.memory_space<vmem>>, vector<1x2x8x128xbf16>,
    return
  }
  func.func @transform_0(%arg0: i32, %arg1: i32) -> (i32, i32, i32, i32) {
    %c0_i32 = arith.constant 0 : i32
    %c0_i32_0 = arith.constant 0 : i32
    %c0_i32_1 = arith.constant 0 : i32
    return %arg1, %c0_i32, %c0_i32_0, %arg0 : i32, i32, i32, i32
  }
  func.func @transform_1(%arg0: i32, %arg1: i32) -> (i32, i32) {
    %c0_i32 = arith.constant 0 : i32
    %c0_i32_0 = arith.constant 0 : i32
    return %c0_i32, %arg0 : i32, i32
  }
  func.func @transform_2(%arg0: i32, %arg1: i32) -> (i32, i32) {
    %c0_i32 = arith.constant 0 : i32
    %c0_i32_0 = arith.constant 0 : i32
    return %c0_i32, %arg0 : i32, i32
  }
  func.func @transform_3(%arg0: i32, %arg1: i32) -> (i32, i32) {
    %c0_i32 = arith.constant 0 : i32
    %c0_i32_0 = arith.constant 0 : i32
    return %c0_i32, %arg0 : i32, i32
  }
  func.func @transform_4(%arg0: i32, %arg1: i32) -> (i32, i32) {
    %c0_i32 = arith.constant 0 : i32
    %c0_i32_0 = arith.constant 0 : i32
    return %c0_i32, %arg0 : i32, i32
  }
  func.func @transform_5(%arg0: i32, %arg1: i32) -> (i32, i32) {
    %c0_i32 = arith.constant 0 : i32
    %c0_i32_0 = arith.constant 0 : i32
    return %c0_i32, %arg0 : i32, i32
  }
  func.func @transform_6(%arg0: i32, %arg1: i32) -> (i32, i32) {
    %c0_i32 = arith.constant 0 : i32
    %c0_i32_0 = arith.constant 0 : i32
    return %c0_i32, %arg0 : i32, i32
  }
  func.func @transform_7(%arg0: i32, %arg1: i32) -> (i32, i32) {
    %c0_i32 = arith.constant 0 : i32
    %c0_i32_0 = arith.constant 0 : i32
    return %c0_i32, %arg0 : i32, i32
  }
  func.func @transform_8(%arg0: i32, %arg1: i32) -> (i32, i32, i32, i32) {
    %c0_i32 = arith.constant 0 : i32
    %c0_i32_0 = arith.constant 0 : i32
    %c0_i32_1 = arith.constant 0 : i32
    return %arg1, %c0_i32, %c0_i32_0, %arg0 : i32, i32, i32, i32
  }
}

module attributes {stable_mosaic.version = 11 : i64} {
  func.func @_matmul_kernel(%arg0: i32, %arg1: i32, %arg2: i32, %arg3: memref<16x128xbf16, #tpu.memory_space<vmem>>, %arg4: memref<128x128xbf16, #tpu.memory_space<vmem>>, %arg5: memref<1x128xf32, #tpu.memory_space<vmem>>, %arg6: memref<16x128xbf16, #tpu.memory_space<vmem>>, %arg7: memref<16x128xf32, #tpu.memory_space<vmem>>) attributes {dimension_semantics = [#tpu.dimension_semantics<parallel>, #tpu.dimension_semantics<parallel>, #tpu.dimension_semantics<arbitrary>], iteration_bounds = array<i64: 1, 1, 1>, scalar_prefetch = 0 : i64, scratch_operands = 1 : i64, tpu.core_type = #tpu.core_type<tc>, window_params = [{transform_indices = @transform_0, window_bounds = array<i64: 16, 128>}, {transform_indices = @transform_1, window_bounds = array<i64: 128, 128>}, {transform_indices = @transform_2, window_bounds = array<i64: 1, 128>}, {transform_indices = @transform_3, window_bounds = array<i64: 16, 128>}]} {
    %c0_i32 = arith.constant 0 : i32
    %0 = arith.cmpi eq, %arg2, %c0_i32 : i32
    %1 = arith.extui %0 : i1 to i32
    %c0_i32_0 = arith.constant 0 : i32
    %2 = arith.cmpi ne, %1, %c0_i32_0 : i32
    scf.if %2 {
      %cst_10 = arith.constant 0.000000e+00 : f32
      %12 = vector.broadcast %cst_10 : f32 to vector<16x128xf32>
      %c0_11 = arith.constant 0 : index
      %c0_12 = arith.constant 0 : index
      %13 = vector.load %arg7[%c0_11, %c0_12] : memref<16x128xf32, #tpu.memory_space<vmem>>, vector<16x128xf32>
      tpu.vector_store %arg7[%c0_11, %c0_12], %12 {strides = array<i32>} : memref<16x128xf32, #tpu.memory_space<vmem>>, vector<16x128xf32>,
    } else {
    }
    %c0 = arith.constant 0 : index
    %c0_1 = arith.constant 0 : index
    %3 = vector.load %arg7[%c0, %c0_1] : memref<16x128xf32, #tpu.memory_space<vmem>>, vector<16x128xf32>
    %c0_2 = arith.constant 0 : index
    %c0_3 = arith.constant 0 : index
    %4 = vector.load %arg3[%c0_2, %c0_3] : memref<16x128xbf16, #tpu.memory_space<vmem>>, vector<16x128xbf16>
    %c0_4 = arith.constant 0 : index
    %c0_5 = arith.constant 0 : index
    %5 = vector.load %arg4[%c0_4, %c0_5] : memref<128x128xbf16, #tpu.memory_space<vmem>>, vector<128x128xbf16>
    %cst = arith.constant dense<0.000000e+00> : vector<16x128xf32>
    %6 = tpu.matmul %4, %5, %cst {dimension_numbers = #tpu.dot_dimension_numbers<[1], [0], [0], [1], [0, 0, 1, 1], [], []>} : vector<16x128xbf16>, vector<128x128xbf16>, vector<16x128xf32> -> vector<16x128xf32>
    %7 = arith.addf %3, %6 : vector<16x128xf32>
    %c0_6 = arith.constant 0 : index
    %c0_7 = arith.constant 0 : index
    %8 = vector.load %arg7[%c0_6, %c0_7] : memref<16x128xf32, #tpu.memory_space<vmem>>, vector<16x128xf32>
    tpu.vector_store %arg7[%c0_6, %c0_7], %7 {strides = array<i32>} : memref<16x128xf32, #tpu.memory_space<vmem>>, vector<16x128xf32>,
    %c0_i32_8 = arith.constant 0 : i32
    %9 = arith.cmpi eq, %arg2, %c0_i32_8 : i32
    %10 = arith.extui %9 : i1 to i32
    %c0_i32_9 = arith.constant 0 : i32
    %11 = arith.cmpi ne, %10, %c0_i32_9 : i32
    scf.if %11 {
      %c0_10 = arith.constant 0 : index
      %c0_11 = arith.constant 0 : index
      %12 = vector.load %arg7[%c0_10, %c0_11] : memref<16x128xf32, #tpu.memory_space<vmem>>, vector<16x128xf32>
      %c0_12 = arith.constant 0 : index
      %c0_13 = arith.constant 0 : index
      %13 = vector.load %arg5[%c0_12, %c0_13] : memref<1x128xf32, #tpu.memory_space<vmem>>, vector<1x128xf32>
      %14 = vector.broadcast %13 : vector<1x128xf32> to vector<16x128xf32>
      %15 = arith.addf %12, %14 : vector<16x128xf32>
      %16 = arith.truncf %15 : vector<16x128xf32> to vector<16x128xbf16>
      %c0_14 = arith.constant 0 : index
      %c0_15 = arith.constant 0 : index
      %17 = vector.load %arg6[%c0_14, %c0_15] : memref<16x128xbf16, #tpu.memory_space<vmem>>, vector<16x128xbf16>
      tpu.vector_store %arg6[%c0_14, %c0_15], %16 {strides = array<i32>} : memref<16x128xbf16, #tpu.memory_space<vmem>>, vector<16x128xbf16>,
    } else {
    }
    return
  }
  func.func @transform_0(%arg0: i32, %arg1: i32, %arg2: i32) -> (i32, i32) {
    %c0_i32 = arith.constant 0 : i32
    return %arg0, %arg2 : i32, i32
  }
  func.func @transform_1(%arg0: i32, %arg1: i32, %arg2: i32) -> (i32, i32) {
    %c0_i32 = arith.constant 0 : i32
    return %arg2, %arg1 : i32, i32
  }
  func.func @transform_2(%arg0: i32, %arg1: i32, %arg2: i32) -> (i32, i32) {
    %c0_i32 = arith.constant 0 : i32
    %c0_i32_0 = arith.constant 0 : i32
    return %c0_i32, %arg1 : i32, i32
  }
  func.func @transform_3(%arg0: i32, %arg1: i32, %arg2: i32) -> (i32, i32) {
    %c0_i32 = arith.constant 0 : i32
    return %arg0, %arg1 : i32, i32
  }
}

module attributes {stable_mosaic.version = 11 : i64} {
  func.func @kernel(%arg0: i32, %arg1: i32, %arg2: memref<1x2x8x128xbf16, #tpu.memory_space<vmem>>, %arg3: memref<1x128xf32, #tpu.memory_space<vmem>>, %arg4: memref<1x128xf32, #tpu.memory_space<vmem>>, %arg5: memref<1x128xf32, #tpu.memory_space<vmem>>, %arg6: memref<1x128xf32, #tpu.memory_space<vmem>>, %arg7: memref<1x128xf32, #tpu.memory_space<vmem>>, %arg8: memref<1x128xf32, #tpu.memory_space<vmem>>, %arg9: memref<2x128xf32, #tpu.memory_space<vmem>>, %arg10: memref<1x2x8x128xbf16, #tpu.memory_space<vmem>>, %arg11: memref<2x8x128xf32, #tpu.memory_space<vmem>>, %arg12: memref<2x8x128xf32, #tpu.memory_space<vmem>>, %arg13: memref<2x8x128xf32, #tpu.memory_space<vmem>>, %arg14: memref<8x128xf32, #tpu.memory_space<vmem>>, %arg15: memref<2x8x128xf32, #tpu.memory_space<vmem>>, %arg16: memref<2x8x128xf32, #tpu.memory_space<vmem>>, %arg17: memref<8x128xf32, #tpu.memory_space<vmem>>) attributes {dimension_semantics = [#tpu.dimension_semantics<parallel>, #tpu.dimension_semantics<arbitrary>], iteration_bounds = array<i64: 1, 4>, scalar_prefetch = 0 : i64, scratch_operands = 7 : i64, tpu.core_type = #tpu.core_type<tc>, window_params = [{transform_indices = @transform_0, window_bounds = array<i64: 1, 2, 8, 128>}, {transform_indices = @transform_1, window_bounds = array<i64: 1, 128>}, {transform_indices = @transform_2, window_bounds = array<i64: 1, 128>}, {transform_indices = @transform_3, window_bounds = array<i64: 1, 128>}, {transform_indices = @transform_4, window_bounds = array<i64: 1, 128>}, {transform_indices = @transform_5, window_bounds = array<i64: 1, 128>}, {transform_indices = @transform_6, window_bounds = array<i64: 1, 128>}, {transform_indices = @transform_7, window_bounds = array<i64: 2, 128>}, {transform_indices = @transform_8, window_bounds = array<i64: 1, 2, 8, 128>}]} {
    %c0 = arith.constant 0 : index
    %c0_0 = arith.constant 0 : index
    %0 = vector.load %arg3[%c0, %c0_0] : memref<1x128xf32, #tpu.memory_space<vmem>>, vector<1x128xf32>
    %c0_1 = arith.constant 0 : index
    %c0_2 = arith.constant 0 : index
    %1 = vector.load %arg4[%c0_1, %c0_2] : memref<1x128xf32, #tpu.memory_space<vmem>>, vector<1x128xf32>
    %c0_3 = arith.constant 0 : index
    %c0_4 = arith.constant 0 : index
    %2 = vector.load %arg5[%c0_3, %c0_4] : memref<1x128xf32, #tpu.memory_space<vmem>>, vector<1x128xf32>
    %c0_5 = arith.constant 0 : index
    %c0_6 = arith.constant 0 : index
    %3 = vector.load %arg6[%c0_5, %c0_6] : memref<1x128xf32, #tpu.memory_space<vmem>>, vector<1x128xf32>
    %c0_7 = arith.constant 0 : index
    %c0_8 = arith.constant 0 : index
    %4 = vector.load %arg7[%c0_7, %c0_8] : memref<1x128xf32, #tpu.memory_space<vmem>>, vector<1x128xf32>
    %c0_9 = arith.constant 0 : index
    %c0_10 = arith.constant 0 : index
    %5 = vector.load %arg8[%c0_9, %c0_10] : memref<1x128xf32, #tpu.memory_space<vmem>>, vector<1x128xf32>
    %c0_11 = arith.constant 0 : index
    %c0_12 = arith.constant 0 : index
    %6 = vector.load %arg9[%c0_11, %c0_12] : memref<2x128xf32, #tpu.memory_space<vmem>>, vector<2x128xf32>
    %c0_13 = arith.constant 0 : index
    %c0_14 = arith.constant 0 : index
    %c0_15 = arith.constant 0 : index
    %c0_16 = arith.constant 0 : index
    %7 = vector.load %arg2[%c0_13, %c0_14, %c0_15, %c0_16] : memref<1x2x8x128xbf16, #tpu.memory_space<vmem>>, vector<1x2x8x128xbf16>
    %8 = vector.shape_cast %7 : vector<1x2x8x128xbf16> to vector<2x8x128xbf16>
    %9 = arith.extf %8 : vector<2x8x128xbf16> to vector<2x8x128xf32>
    %10 = vector.shape_cast %0 : vector<1x128xf32> to vector<1x1x128xf32>
    %11 = vector.broadcast %10 : vector<1x1x128xf32> to vector<2x8x128xf32>
    %12 = arith.mulf %9, %11 : vector<2x8x128xf32>
    %13 = vector.shape_cast %1 : vector<1x128xf32> to vector<1x1x128xf32>
    %14 = vector.broadcast %13 : vector<1x1x128xf32> to vector<2x8x128xf32>
    %15 = arith.addf %12, %14 : vector<2x8x128xf32>
    %c0_i32 = arith.constant 0 : i32
    %16 = arith.cmpi eq, %arg1, %c0_i32 : i32
    %17 = arith.extui %16 : i1 to i32
    %c0_i32_17 = arith.constant 0 : i32
    %18 = arith.cmpi ne, %17, %c0_i32_17 : i32
    scf.if %18 {
      %c0_46 = arith.constant 0 : index
      %c0_47 = arith.constant 0 : index
      %c0_48 = arith.constant 0 : index
      %70 = vector.load %arg16[%c0_46, %c0_47, %c0_48] : memref<2x8x128xf32, #tpu.memory_space<vmem>>, vector<2x8x128xf32>
      tpu.vector_store %arg16[%c0_46, %c0_47, %c0_48], %15 {strides = array<i32>} : memref<2x8x128xf32, #tpu.memory_space<vmem>>, vector<2x8x128xf32>,
      %cst_49 = arith.constant 0.000000e+00 : f32
      %71 = vector.broadcast %cst_49 : f32 to vector<8x128xf32>
      %c0_50 = arith.constant 0 : index
      %c0_51 = arith.constant 0 : index
      %72 = vector.load %arg17[%c0_50, %c0_51] : memref<8x128xf32, #tpu.memory_space<vmem>>, vector<8x128xf32>
      tpu.vector_store %arg17[%c0_50, %c0_51], %71 {strides = array<i32>} : memref<8x128xf32, #tpu.memory_space<vmem>>, vector<8x128xf32>,
      %cst_52 = arith.constant 1.000000e+00 : f32
      %73 = vector.broadcast %cst_52 : f32 to vector<2x8x128xf32>
      %c0_53 = arith.constant 0 : index
      %c0_54 = arith.constant 0 : index
      %c0_55 = arith.constant 0 : index
      %74 = vector.load %arg15[%c0_53, %c0_54, %c0_55] : memref<2x8x128xf32, #tpu.memory_space<vmem>>, vector<2x8x128xf32>
      tpu.vector_store %arg15[%c0_53, %c0_54, %c0_55], %73 {strides = array<i32>} : memref<2x8x128xf32, #tpu.memory_space<vmem>>, vector<2x8x128xf32>,
      %cst_56 = arith.constant 0.000000e+00 : f32
      %75 = vector.broadcast %cst_56 : f32 to vector<2x8x128xf32>
      %c0_57 = arith.constant 0 : index
      %c0_58 = arith.constant 0 : index
      %c0_59 = arith.constant 0 : index
      %76 = vector.load %arg13[%c0_57, %c0_58, %c0_59] : memref<2x8x128xf32, #tpu.memory_space<vmem>>, vector<2x8x128xf32>
      tpu.vector_store %arg13[%c0_57, %c0_58, %c0_59], %75 {strides = array<i32>} : memref<2x8x128xf32, #tpu.memory_space<vmem>>, vector<2x8x128xf32>,
    } else {
    }
    %c0_i32_18 = arith.constant 0 : i32
    %19 = arith.cmpi sgt, %arg1, %c0_i32_18 : i32
    %20 = arith.extui %19 : i1 to i32
    %c0_i32_19 = arith.constant 0 : i32
    %21 = arith.cmpi ne, %20, %c0_i32_19 : i32
    scf.if %21 {
      %c0_46 = arith.constant 0 : index
      %c0_47 = arith.constant 0 : index
      %c0_48 = arith.constant 0 : index
      %70 = vector.load %arg11[%c0_46, %c0_47, %c0_48] : memref<2x8x128xf32, #tpu.memory_space<vmem>>, vector<2x8x128xf32>
      %c0_49 = arith.constant 0 : index
      %c0_50 = arith.constant 0 : index
      %c0_51 = arith.constant 0 : index
      %71 = vector.load %arg12[%c0_49, %c0_50, %c0_51] : memref<2x8x128xf32, #tpu.memory_space<vmem>>, vector<2x8x128xf32>
      %c0_52 = arith.constant 0 : index
      %c0_53 = arith.constant 0 : index
      %c0_54 = arith.constant 0 : index
      %72 = vector.load %arg13[%c0_52, %c0_53, %c0_54] : memref<2x8x128xf32, #tpu.memory_space<vmem>>, vector<2x8x128xf32>
      %c0_55 = arith.constant 0 : index
      %c0_56 = arith.constant 0 : index
      %73 = vector.load %arg14[%c0_55, %c0_56] : memref<8x128xf32, #tpu.memory_space<vmem>>, vector<8x128xf32>
      %cst_57 = arith.constant dense<0xFF800000> : vector<8x128xf32>
      %74 = vector.multi_reduction <maximumf>, %70, %cst_57 [0] : vector<2x8x128xf32> to vector<8x128xf32>
      %cst_58 = arith.constant 0.000000e+00 : f32
      %75 = vector.broadcast %cst_58 : f32 to vector<8x128xf32>
      %76 = arith.cmpf ogt, %74, %75 : vector<8x128xf32>
      %77 = arith.extui %76 : vector<8x128xi1> to vector<8x128xi32>
      %78 = arith.sitofp %77 : vector<8x128xi32> to vector<8x128xf32>
      %79 = vector.shape_cast %78 : vector<8x128xf32> to vector<1x8x128xf32>
      %80 = vector.broadcast %79 : vector<1x8x128xf32> to vector<2x8x128xf32>
      %81 = arith.cmpf olt, %71, %80 : vector<2x8x128xf32>
      %cst_59 = arith.constant 0.000000e+00 : f32
      %82 = vector.broadcast %cst_59 : f32 to vector<2x8x128xf32>
      %83 = arith.select %81, %15, %82 : vector<2x8x128xi1>, vector<2x8x128xf32>
      %84 = arith.subf %15, %83 : vector<2x8x128xf32>
      %c0_60 = arith.constant 0 : index
      %c0_61 = arith.constant 0 : index
      %c0_62 = arith.constant 0 : index
      %85 = vector.load %arg16[%c0_60, %c0_61, %c0_62] : memref<2x8x128xf32, #tpu.memory_space<vmem>>, vector<2x8x128xf32>
      tpu.vector_store %arg16[%c0_60, %c0_61, %c0_62], %84 {strides = array<i32>} : memref<2x8x128xf32, #tpu.memory_space<vmem>>, vector<2x8x128xf32>,
      %cst_63 = arith.constant 1.000000e+00 : f32
      %86 = vector.broadcast %cst_63 : f32 to vector<8x128xf32>
      %87 = arith.subf %86, %78 : vector<8x128xf32>
      %88 = arith.mulf %73, %87 : vector<8x128xf32>
      %c0_64 = arith.constant 0 : index
      %c0_65 = arith.constant 0 : index
      %89 = vector.load %arg17[%c0_64, %c0_65] : memref<8x128xf32, #tpu.memory_space<vmem>>, vector<8x128xf32>
      tpu.vector_store %arg17[%c0_64, %c0_65], %88 {strides = array<i32>} : memref<8x128xf32, #tpu.memory_space<vmem>>, vector<8x128xf32>,
      %90 = arith.mulf %72, %70 : vector<2x8x128xf32>
      %cst_66 = arith.constant dense<0.000000e+00> : vector<8x128xf32>
      %91 = vector.multi_reduction <add>, %90, %cst_66 [0] : vector<2x8x128xf32> to vector<8x128xf32>
      %92 = vector.broadcast %4 : vector<1x128xf32> to vector<8x128xf32>
      %93 = arith.addf %91, %92 : vector<8x128xf32>
      %cst_67 = arith.constant 1.000000e+00 : f32
      %94 = vector.broadcast %cst_67 : f32 to vector<2x8x128xf32>
      %95 = arith.cmpf ogt, %71, %94 : vector<2x8x128xf32>
      %96 = arith.extui %95 : vector<2x8x128xi1> to vector<2x8x128xi32>
      %97 = arith.sitofp %96 : vector<2x8x128xi32> to vector<2x8x128xf32>
      %cst_68 = arith.constant dense<0.000000e+00> : vector<8x128xf32>
      %98 = vector.multi_reduction <add>, %97, %cst_68 [0] : vector<2x8x128xf32> to vector<8x128xf32>
      %99 = vector.broadcast %5 : vector<1x128xf32> to vector<8x128xf32>
      %100 = arith.mulf %98, %99 : vector<8x128xf32>
      %101 = math.exp %100 : vector<8x128xf32>
      %102 = arith.mulf %93, %101 : vector<8x128xf32>
      %103 = vector.extract_strided_slice %72 {offsets = [1, 0, 0], sizes = [1, 8, 128], strides = [1, 1, 1]} : vector<2x8x128xf32> to vector<1x8x128xf32>
      %104 = vector.shape_cast %103 : vector<1x8x128xf32> to vector<8x128xf32>
      %cst_69 = arith.constant 1.000000e+00 : f32
      %105 = vector.broadcast %cst_69 : f32 to vector<8x128xf32>
      %106 = arith.subf %105, %78 : vector<8x128xf32>
      %107 = arith.mulf %104, %106 : vector<8x128xf32>
      %108 = arith.mulf %102, %78 : vector<8x128xf32>
      %109 = arith.addf %107, %108 : vector<8x128xf32>
      %110 = vector.shape_cast %6 : vector<2x128xf32> to vector<2x1x128xf32>
      %111 = vector.shape_cast %109 : vector<8x128xf32> to vector<1x8x128xf32>
      %112 = vector.broadcast %110 : vector<2x1x128xf32> to vector<2x8x128xf32>
      %113 = vector.broadcast %111 : vector<1x8x128xf32> to vector<2x8x128xf32>
      %114 = arith.mulf %112, %113 : vector<2x8x128xf32>
      %c0_70 = arith.constant 0 : index
      %c0_71 = arith.constant 0 : index
      %c0_72 = arith.constant 0 : index
      %115 = vector.load %arg13[%c0_70, %c0_71, %c0_72] : memref<2x8x128xf32, #tpu.memory_space<vmem>>, vector<2x8x128xf32>
      tpu.vector_store %arg13[%c0_70, %c0_71, %c0_72], %114 {strides = array<i32>} : memref<2x8x128xf32, #tpu.memory_space<vmem>>, vector<2x8x128xf32>,
      %116 = vector.shape_cast %3 : vector<1x128xf32> to vector<1x1x128xf32>
      %117 = vector.broadcast %116 : vector<1x1x128xf32> to vector<2x8x128xf32>
      %118 = arith.mulf %117, %114 : vector<2x8x128xf32>
      %cst_73 = arith.constant 1.000000e+00 : f32
      %119 = vector.broadcast %cst_73 : f32 to vector<2x8x128xf32>
      %120 = arith.addf %119, %118 : vector<2x8x128xf32>
      %c0_74 = arith.constant 0 : index
      %c0_75 = arith.constant 0 : index
      %c0_76 = arith.constant 0 : index
      %121 = vector.load %arg15[%c0_74, %c0_75, %c0_76] : memref<2x8x128xf32, #tpu.memory_space<vmem>>, vector<2x8x128xf32>
      tpu.vector_store %arg15[%c0_74, %c0_75, %c0_76], %120 {strides = array<i32>} : memref<2x8x128xf32, #tpu.memory_space<vmem>>, vector<2x8x128xf32>,
    } else {
    }
    %c0_20 = arith.constant 0 : index
    %c0_21 = arith.constant 0 : index
    %c0_22 = arith.constant 0 : index
    %22 = vector.load %arg16[%c0_20, %c0_21, %c0_22] : memref<2x8x128xf32, #tpu.memory_space<vmem>>, vector<2x8x128xf32>
    %c0_23 = arith.constant 0 : index
    %c0_24 = arith.constant 0 : index
    %23 = vector.load %arg17[%c0_23, %c0_24] : memref<8x128xf32, #tpu.memory_space<vmem>>, vector<8x128xf32>
    %c0_25 = arith.constant 0 : index
    %c0_26 = arith.constant 0 : index
    %c0_27 = arith.constant 0 : index
    %24 = vector.load %arg15[%c0_25, %c0_26, %c0_27] : memref<2x8x128xf32, #tpu.memory_space<vmem>>, vector<2x8x128xf32>
    %25 = vector.extract_strided_slice %22 {offsets = [0, 0, 0], sizes = [1, 8, 128], strides = [1, 1, 1]} : vector<2x8x128xf32> to vector<1x8x128xf32>
    %26 = vector.shape_cast %25 : vector<1x8x128xf32> to vector<8x128xf32>
    %27 = vector.broadcast %2 : vector<1x128xf32> to vector<8x128xf32>
    %28 = arith.mulf %27, %23 : vector<8x128xf32>
    %29 = arith.addf %26, %28 : vector<8x128xf32>
    %30 = vector.broadcast %2 : vector<1x128xf32> to vector<8x128xf32>
    %31 = arith.mulf %30, %29 : vector<8x128xf32>
    %32 = vector.extract_strided_slice %22 {offsets = [1, 0, 0], sizes = [1, 8, 128], strides = [1, 1, 1]} : vector<2x8x128xf32> to vector<1x8x128xf32>
    %33 = vector.shape_cast %32 : vector<1x8x128xf32> to vector<8x128xf32>
    %34 = arith.addf %31, %33 : vector<8x128xf32>
    %cst = arith.constant 0.000000e+00 : f32
    %35 = vector.broadcast %cst : f32 to vector<8x128xf32>
    %cst_28 = arith.constant 0.000000e+00 : f32
    %36 = vector.broadcast %cst_28 : f32 to vector<8x128xf32>
    %37 = vector.extract_strided_slice %24 {offsets = [0, 0, 0], sizes = [1, 8, 128], strides = [1, 1, 1]} : vector<2x8x128xf32> to vector<1x8x128xf32>
    %38 = vector.shape_cast %37 : vector<1x8x128xf32> to vector<8x128xf32>
    %39 = arith.subf %29, %38 : vector<8x128xf32>
    %cst_29 = arith.constant 0.000000e+00 : f32
    %40 = vector.broadcast %cst_29 : f32 to vector<8x128xf32>
    %41 = arith.cmpf ogt, %39, %40 : vector<8x128xf32>
    %42 = arith.extui %41 : vector<8x128xi1> to vector<8x128xi32>
    %43 = arith.sitofp %42 : vector<8x128xi32> to vector<8x128xf32>
    %44 = arith.addf %35, %43 : vector<8x128xf32>
    %45 = arith.addf %36, %44 : vector<8x128xf32>
    %46 = vector.extract_strided_slice %24 {offsets = [1, 0, 0], sizes = [1, 8, 128], strides = [1, 1, 1]} : vector<2x8x128xf32> to vector<1x8x128xf32>
    %47 = vector.shape_cast %46 : vector<1x8x128xf32> to vector<8x128xf32>
    %48 = arith.subf %34, %47 : vector<8x128xf32>
    %cst_30 = arith.constant 0.000000e+00 : f32
    %49 = vector.broadcast %cst_30 : f32 to vector<8x128xf32>
    %50 = arith.cmpf ogt, %48, %49 : vector<8x128xf32>
    %51 = arith.extui %50 : vector<8x128xi1> to vector<8x128xi32>
    %52 = arith.sitofp %51 : vector<8x128xi32> to vector<8x128xf32>
    %53 = arith.addf %44, %52 : vector<8x128xf32>
    %54 = arith.addf %45, %53 : vector<8x128xf32>
    %55 = vector.shape_cast %45 : vector<8x128xf32> to vector<1x8x128xf32>
    %56 = vector.shape_cast %54 : vector<8x128xf32> to vector<1x8x128xf32>
    %57 = tpu.concatenate %55, %56 in 0 : vector<1x8x128xf32>, vector<1x8x128xf32> -> vector<2x8x128xf32>
    %cst_31 = arith.constant 1.000000e+00 : f32
    %58 = vector.broadcast %cst_31 : f32 to vector<2x8x128xf32>
    %59 = arith.cmpf oeq, %57, %58 : vector<2x8x128xf32>
    %cst_32 = arith.constant 1.000000e+00 : f32
    %cst_33 = arith.constant 0.000000e+00 : f32
    %60 = vector.broadcast %cst_32 : f32 to vector<2x8x128xf32>
    %61 = vector.broadcast %cst_33 : f32 to vector<2x8x128xf32>
    %62 = arith.select %59, %60, %61 : vector<2x8x128xi1>, vector<2x8x128xf32>
    %c0_34 = arith.constant 0 : index
    %c0_35 = arith.constant 0 : index
    %c0_36 = arith.constant 0 : index
    %63 = vector.load %arg11[%c0_34, %c0_35, %c0_36] : memref<2x8x128xf32, #tpu.memory_space<vmem>>, vector<2x8x128xf32>
    tpu.vector_store %arg11[%c0_34, %c0_35, %c0_36], %62 {strides = array<i32>} : memref<2x8x128xf32, #tpu.memory_space<vmem>>, vector<2x8x128xf32>,
    %c0_37 = arith.constant 0 : index
    %c0_38 = arith.constant 0 : index
    %c0_39 = arith.constant 0 : index
    %64 = vector.load %arg12[%c0_37, %c0_38, %c0_39] : memref<2x8x128xf32, #tpu.memory_space<vmem>>, vector<2x8x128xf32>
    tpu.vector_store %arg12[%c0_37, %c0_38, %c0_39], %57 {strides = array<i32>} : memref<2x8x128xf32, #tpu.memory_space<vmem>>, vector<2x8x128xf32>,
    %c0_40 = arith.constant 0 : index
    %c0_41 = arith.constant 0 : index
    %65 = vector.load %arg14[%c0_40, %c0_41] : memref<8x128xf32, #tpu.memory_space<vmem>>, vector<8x128xf32>
    tpu.vector_store %arg14[%c0_40, %c0_41], %34 {strides = array<i32>} : memref<8x128xf32, #tpu.memory_space<vmem>>, vector<8x128xf32>,
    %66 = arith.truncf %62 : vector<2x8x128xf32> to vector<2x8x128xbf16>
    %c0_42 = arith.constant 0 : index
    %c0_43 = arith.constant 0 : index
    %c0_44 = arith.constant 0 : index
    %c0_45 = arith.constant 0 : index
    %67 = vector.load %arg10[%c0_42, %c0_43, %c0_44, %c0_45] : memref<1x2x8x128xbf16, #tpu.memory_space<vmem>>, vector<1x2x8x128xbf16>
    %68 = vector.shape_cast %67 : vector<1x2x8x128xbf16> to vector<2x8x128xbf16>
    %69 = vector.shape_cast %66 : vector<2x8x128xbf16> to vector<1x2x8x128xbf16>
    tpu.vector_store %arg10[%c0_42, %c0_43, %c0_44, %c0_45], %69 {strides = array<i32>} : memref<1x2x8x128xbf16, #tpu.memory_space<vmem>>, vector<1x2x8x128xbf16>,
    return
  }
  func.func @transform_0(%arg0: i32, %arg1: i32) -> (i32, i32, i32, i32) {
    %c0_i32 = arith.constant 0 : i32
    %c0_i32_0 = arith.constant 0 : i32
    %c0_i32_1 = arith.constant 0 : i32
    return %arg1, %c0_i32, %c0_i32_0, %arg0 : i32, i32, i32, i32
  }
  func.func @transform_1(%arg0: i32, %arg1: i32) -> (i32, i32) {
    %c0_i32 = arith.constant 0 : i32
    %c0_i32_0 = arith.constant 0 : i32
    return %c0_i32, %arg0 : i32, i32
  }
  func.func @transform_2(%arg0: i32, %arg1: i32) -> (i32, i32) {
    %c0_i32 = arith.constant 0 : i32
    %c0_i32_0 = arith.constant 0 : i32
    return %c0_i32, %arg0 : i32, i32
  }
  func.func @transform_3(%arg0: i32, %arg1: i32) -> (i32, i32) {
    %c0_i32 = arith.constant 0 : i32
    %c0_i32_0 = arith.constant 0 : i32
    return %c0_i32, %arg0 : i32, i32
  }
  func.func @transform_4(%arg0: i32, %arg1: i32) -> (i32, i32) {
    %c0_i32 = arith.constant 0 : i32
    %c0_i32_0 = arith.constant 0 : i32
    return %c0_i32, %arg0 : i32, i32
  }
  func.func @transform_5(%arg0: i32, %arg1: i32) -> (i32, i32) {
    %c0_i32 = arith.constant 0 : i32
    %c0_i32_0 = arith.constant 0 : i32
    return %c0_i32, %arg0 : i32, i32
  }
  func.func @transform_6(%arg0: i32, %arg1: i32) -> (i32, i32) {
    %c0_i32 = arith.constant 0 : i32
    %c0_i32_0 = arith.constant 0 : i32
    return %c0_i32, %arg0 : i32, i32
  }
  func.func @transform_7(%arg0: i32, %arg1: i32) -> (i32, i32) {
    %c0_i32 = arith.constant 0 : i32
    %c0_i32_0 = arith.constant 0 : i32
    return %c0_i32, %arg0 : i32, i32
  }
  func.func @transform_8(%arg0: i32, %arg1: i32) -> (i32, i32, i32, i32) {
    %c0_i32 = arith.constant 0 : i32
    %c0_i32_0 = arith.constant 0 : i32
    %c0_i32_1 = arith.constant 0 : i32
    return %arg1, %c0_i32, %c0_i32_0, %arg0 : i32, i32, i32, i32
  }
}

module attributes {stable_mosaic.version = 11 : i64} {
  func.func @_matmul_kernel(%arg0: i32, %arg1: i32, %arg2: i32, %arg3: memref<16x128xbf16, #tpu.memory_space<vmem>>, %arg4: memref<128x128xbf16, #tpu.memory_space<vmem>>, %arg5: memref<1x128xf32, #tpu.memory_space<vmem>>, %arg6: memref<16x128xf32, #tpu.memory_space<vmem>>, %arg7: memref<16x128xf32, #tpu.memory_space<vmem>>) attributes {dimension_semantics = [#tpu.dimension_semantics<parallel>, #tpu.dimension_semantics<parallel>, #tpu.dimension_semantics<arbitrary>], iteration_bounds = array<i64: 1, 1, 1>, scalar_prefetch = 0 : i64, scratch_operands = 1 : i64, tpu.core_type = #tpu.core_type<tc>, window_params = [{transform_indices = @transform_0, window_bounds = array<i64: 16, 128>}, {transform_indices = @transform_1, window_bounds = array<i64: 128, 128>}, {transform_indices = @transform_2, window_bounds = array<i64: 1, 128>}, {transform_indices = @transform_3, window_bounds = array<i64: 16, 128>}]} {
    %c0_i32 = arith.constant 0 : i32
    %0 = arith.cmpi eq, %arg2, %c0_i32 : i32
    %1 = arith.extui %0 : i1 to i32
    %c0_i32_0 = arith.constant 0 : i32
    %2 = arith.cmpi ne, %1, %c0_i32_0 : i32
    scf.if %2 {
      %cst_10 = arith.constant 0.000000e+00 : f32
      %12 = vector.broadcast %cst_10 : f32 to vector<16x128xf32>
      %c0_11 = arith.constant 0 : index
      %c0_12 = arith.constant 0 : index
      %13 = vector.load %arg7[%c0_11, %c0_12] : memref<16x128xf32, #tpu.memory_space<vmem>>, vector<16x128xf32>
      tpu.vector_store %arg7[%c0_11, %c0_12], %12 {strides = array<i32>} : memref<16x128xf32, #tpu.memory_space<vmem>>, vector<16x128xf32>,
    } else {
    }
    %c0 = arith.constant 0 : index
    %c0_1 = arith.constant 0 : index
    %3 = vector.load %arg7[%c0, %c0_1] : memref<16x128xf32, #tpu.memory_space<vmem>>, vector<16x128xf32>
    %c0_2 = arith.constant 0 : index
    %c0_3 = arith.constant 0 : index
    %4 = vector.load %arg3[%c0_2, %c0_3] : memref<16x128xbf16, #tpu.memory_space<vmem>>, vector<16x128xbf16>
    %c0_4 = arith.constant 0 : index
    %c0_5 = arith.constant 0 : index
    %5 = vector.load %arg4[%c0_4, %c0_5] : memref<128x128xbf16, #tpu.memory_space<vmem>>, vector<128x128xbf16>
    %cst = arith.constant dense<0.000000e+00> : vector<16x128xf32>
    %6 = tpu.matmul %4, %5, %cst {dimension_numbers = #tpu.dot_dimension_numbers<[1], [0], [0], [1], [0, 0, 1, 1], [], []>} : vector<16x128xbf16>, vector<128x128xbf16>, vector<16x128xf32> -> vector<16x128xf32>
    %7 = arith.addf %3, %6 : vector<16x128xf32>
    %c0_6 = arith.constant 0 : index
    %c0_7 = arith.constant 0 : index
    %8 = vector.load %arg7[%c0_6, %c0_7] : memref<16x128xf32, #tpu.memory_space<vmem>>, vector<16x128xf32>
    tpu.vector_store %arg7[%c0_6, %c0_7], %7 {strides = array<i32>} : memref<16x128xf32, #tpu.memory_space<vmem>>, vector<16x128xf32>,
    %c0_i32_8 = arith.constant 0 : i32
    %9 = arith.cmpi eq, %arg2, %c0_i32_8 : i32
    %10 = arith.extui %9 : i1 to i32
    %c0_i32_9 = arith.constant 0 : i32
    %11 = arith.cmpi ne, %10, %c0_i32_9 : i32
    scf.if %11 {
      %c0_10 = arith.constant 0 : index
      %c0_11 = arith.constant 0 : index
      %12 = vector.load %arg7[%c0_10, %c0_11] : memref<16x128xf32, #tpu.memory_space<vmem>>, vector<16x128xf32>
      %c0_12 = arith.constant 0 : index
      %c0_13 = arith.constant 0 : index
      %13 = vector.load %arg5[%c0_12, %c0_13] : memref<1x128xf32, #tpu.memory_space<vmem>>, vector<1x128xf32>
      %14 = vector.broadcast %13 : vector<1x128xf32> to vector<16x128xf32>
      %15 = arith.addf %12, %14 : vector<16x128xf32>
      %c0_14 = arith.constant 0 : index
      %c0_15 = arith.constant 0 : index
      %16 = vector.load %arg6[%c0_14, %c0_15] : memref<16x128xf32, #tpu.memory_space<vmem>>, vector<16x128xf32>
      tpu.vector_store %arg6[%c0_14, %c0_15], %15 {strides = array<i32>} : memref<16x128xf32, #tpu.memory_space<vmem>>, vector<16x128xf32>,
    } else {
    }
    return
  }
  func.func @transform_0(%arg0: i32, %arg1: i32, %arg2: i32) -> (i32, i32) {
    %c0_i32 = arith.constant 0 : i32
    return %arg0, %arg2 : i32, i32
  }
  func.func @transform_1(%arg0: i32, %arg1: i32, %arg2: i32) -> (i32, i32) {
    %c0_i32 = arith.constant 0 : i32
    return %arg2, %arg1 : i32, i32
  }
  func.func @transform_2(%arg0: i32, %arg1: i32, %arg2: i32) -> (i32, i32) {
    %c0_i32 = arith.constant 0 : i32
    %c0_i32_0 = arith.constant 0 : i32
    return %c0_i32, %arg1 : i32, i32
  }
  func.func @transform_3(%arg0: i32, %arg1: i32, %arg2: i32) -> (i32, i32) {
    %c0_i32 = arith.constant 0 : i32
    return %arg0, %arg1 : i32, i32
  }
}

</mosaic_0001>

<bundles_post_ra>
// kernel: cifar10net_forward.15
= control target key start
LH: loop header
LB: loop body
LE: loop exit
PB: predicated region body
PF: predicated region fallthrough
CT: control target
= control target key end

     0   :  { %s1467_s12 = smov 0   ;;  %s1469_s13 = smov 0   ;;  %s1604_s0 = inlined_call_operand.vmem [shape: bf16[4096,128], index: 0, kind: input, shape index: {}]   ;;  %s1605_s1 = inlined_call_operand.vmem [shape: bf16[128,128], index: 1, kind: input, shape index: {}]   ;;  %s1606_s2 = inlined_call_operand.vmem [shape: f32[1,128], index: 2, kind: input, shape index: {}]   ;;  %s1607_s3 = inlined_call_operand.vmem [shape: bf16[4096,128], index: 3, kind: output, shape index: {}]  }
   0x1   :  { %s1471_s14 = smov 0  }
   0x2 LB: > { %s32_s15 = sadd.s32 1, %s1441_s13  ;;  %p1096_p0 = scmp.ge.s32.totalorder %s1445_s14, 1  ;;  %s1445_s14 = sphi %s1471_s14, %s13_s14   ;;  %s1441_s13 = sphi %s1469_s13, %s1609_s13   ;;  %s1437_s12 = sphi %s1467_s12, %s1608_s12  }
   0x3   : > { %p34_p1 = scmp.ge.s32.totalorder %s32_s15, 16  ;;  %p188_p2 = scmp.lt.s32.totalorder %s1445_s14, 17 }
   0x5   : > { %s1611_s15 = smov (%p34_p1, %s32_s15), 0  ;;  %p189_p3 = pnand %p1096_p0, %p188_p2 }
   0x6   : > { %v1399_v0 = vld [vmem:[%s1605_s1] sm:$0xff] (!%p189_p3)   ;;  %s1097_s18 = sshll.u32 (!%p189_p3), %s1437_s12, 5  ;;  %v1400_v1 = vld [vmem:[%s1605_s1 + $0x8] sm:$0xff] (!%p189_p3)   ;;  %v1401_v2 = vld [vmem:[%s1605_s1 + $0x10] sm:$0xff] (!%p189_p3)  }
   0x7   : > { %192 = sbr.rel (%p189_p3) target bundleno = 283 (0x11b), region = 32  ;;  %p230_p4 = scmp.lt.s32.totalorder (!%p189_p3), %s1097_s18, 511  ;;  %1311 = vmatprep.subr.bf16.mxu0 (!%p189_p3), %v1399_v0  ;;  %1359 = vmatprep.subr.bf16.mxu1 (!%p189_p3), %v1399_v0  ;;  %v1402_v3 = vld [vmem:[%s1605_s1 + $0x18] sm:$0xff] (!%p189_p3)   ;;  %v1403_v6 = vld [vmem:[%s1605_s1 + $0x20] sm:$0xff] (!%p189_p3)   ;;  %v1404_v7 = vld [vmem:[%s1605_s1 + $0x28] sm:$0xff] (!%p189_p3)  }
   0x8   : > { %1312 = vmatpush3.bf16.msra.mxu0 (!%p189_p3), %v1399_v0  ;;  %1367 = vmatpush3.bf16.msra.mxu1 (!%p189_p3), %v1399_v0  ;;  %v1405_v8 = vld [vmem:[%s1605_s1 + $0x30] sm:$0xff] (!%p189_p3)   ;;  %v1406_v9 = vld [vmem:[%s1605_s1 + $0x38] sm:$0xff] (!%p189_p3)   ;;  %v1538_v25 = vld [vmem:[%s1606_s2] ss:$0 sm:$0xff] (!%p189_p3) }
   0x9   : > { %1313 = vmatprep.subr.bf16.mxu0 (!%p189_p3), %v1400_v1  ;;  %1360 = vmatprep.subr.bf16.mxu1 (!%p189_p3), %v1400_v1 }
   0xc   : > { %1314 = vmatpush3.bf16.msra.mxu0 (!%p189_p3), %v1400_v1  ;;  %1368 = vmatpush3.bf16.msra.mxu1 (!%p189_p3), %v1400_v1 }
   0xd   : > { %1315 = vmatprep.subr.bf16.mxu0 (!%p189_p3), %v1401_v2  ;;  %1361 = vmatprep.subr.bf16.mxu1 (!%p189_p3), %v1401_v2 }
   0xe   : > { %s1613_s18 = smov (!%p230_p4, %s1097_s18), 511 }
   0xf   : > { %s1098_s23 = sshll.u32 %s1613_s18, 2 }
  0x10   : > { %s1502_s26 = scalar_lea.vmem %s1604_s0, %s1098_s23  ;;  %1316 = vmatpush3.bf16.msra.mxu0 %v1401_v2  ;;  %1369 = vmatpush3.bf16.msra.mxu1 %v1401_v2  ;;  %s1551_s17 = scalar_lea.vmem %s1607_s3, %s1098_s23 }
  0x11   : > { %v1407_v4 = vld [vmem:[%s1502_s26] sm:$0xff]   ;;  %1317 = vmatprep.subr.bf16.mxu0 %v1402_v3  ;;  %1362 = vmatprep.subr.bf16.mxu1 %v1402_v3  ;;  %v1409_v10 = vld [vmem:[%s1502_s26 + $0x8] sm:$0xff]   ;;  %v1411_v12 = vld [vmem:[%s1502_s26 + $0x10] sm:$0xff]  }
  0x12   : > { %v1408_v5 = vld [vmem:[%s1502_s26 + $0x40] sm:$0xff]   ;;  %1327 = vmatprep.mubr.bf16.mxu0 %v1407_v4  ;;  %v1410_v11 = vld [vmem:[%s1502_s26 + $0x48] sm:$0xff]   ;;  %v1412_v13 = vld [vmem:[%s1502_s26 + $0x50] sm:$0xff]  }
  0x13   : > { %1343 = vmatprep.mubr.bf16.mxu1 %v1408_v5  ;;  %v1413_v14 = vld [vmem:[%s1502_s26 + $0x18] sm:$0xff]   ;;  %v1415_v16 = vld [vmem:[%s1502_s26 + $0x20] sm:$0xff]   ;;  %v1417_v18 = vld [vmem:[%s1502_s26 + $0x28] sm:$0xff]  }
  0x14   : > { %1318 = vmatpush3.bf16.msra.mxu0 %v1402_v3  ;;  %1370 = vmatpush3.bf16.msra.mxu1 %v1402_v3  ;;  %v1414_v15 = vld [vmem:[%s1502_s26 + $0x58] sm:$0xff]   ;;  %v1416_v17 = vld [vmem:[%s1502_s26 + $0x60] sm:$0xff]   ;;  %v1418_v19 = vld [vmem:[%s1502_s26 + $0x68] sm:$0xff]  }
  0x15   : > { %1319 = vmatprep.subr.bf16.mxu0 %v1403_v6  ;;  %1363 = vmatprep.subr.bf16.mxu1 %v1403_v6  ;;  %v1419_v20 = vld [vmem:[%s1502_s26 + $0x30] sm:$0xff]   ;;  %v1421_v22 = vld [vmem:[%s1502_s26 + $0x38] sm:$0xff]  }
  0x16   : > { %v1420_v21 = vld [vmem:[%s1502_s26 + $0x70] sm:$0xff]   ;;  %v1422_v23 = vld [vmem:[%s1502_s26 + $0x78] sm:$0xff]  }
  0x18   : > { %1320 = vmatpush3.bf16.msra.mxu0 %v1403_v6  ;;  %1371 = vmatpush3.bf16.msra.mxu1 %v1403_v6 }
  0x19   : > { %1321 = vmatprep.subr.bf16.mxu0 %v1404_v7  ;;  %1364 = vmatprep.subr.bf16.mxu1 %v1404_v7 }
  0x1c   : > { %1322 = vmatpush3.bf16.msra.mxu0 %v1404_v7  ;;  %1372 = vmatpush3.bf16.msra.mxu1 %v1404_v7 }
  0x1d   : > { %1323 = vmatprep.subr.bf16.mxu0 %v1405_v8  ;;  %1365 = vmatprep.subr.bf16.mxu1 %v1405_v8 }
  0x20   : > { %1324 = vmatpush3.bf16.msra.mxu0 %v1405_v8  ;;  %1373 = vmatpush3.bf16.msra.mxu1 %v1405_v8 }
  0x21   : > { %1325 = vmatprep.subr.bf16.mxu0 %v1406_v9  ;;  %1366 = vmatprep.subr.bf16.mxu1 %v1406_v9 }
  0x24   : > { %1326 = vmatpush3.bf16.msra.mxu0 %v1406_v9  ;;  %1374 = vmatpush3.bf16.msra.mxu1 %v1406_v9 }
  0x27   : > { %1328 = vmatmul.mubr.bf16.vlgmr.msra.gmra.mrb[0].mxu0 %v1409_v10  ;;  %1344 = vmatmul.mubr.bf16.vlgmr.msra.gmra.mrb[0].mxu1 %v1410_v11 }
  0x28   : > { %1331 = vmatprep.mubr.bf16.mxu0 %v1411_v12  ;;  %1347 = vmatprep.mubr.bf16.mxu1 %v1412_v13 }
  0x2f   : > { %1332 = vmatmul.mubr.bf16.gmra.mrb[4].mxu0 %v1413_v14  ;;  %1348 = vmatmul.mubr.bf16.gmra.mrb[4].mxu1 %v1414_v15 }
  0x30   : > { %1335 = vmatprep.mubr.bf16.mxu0 %v1415_v16  ;;  %1351 = vmatprep.mubr.bf16.mxu1 %v1416_v17 }
  0x37   : > { %1336 = vmatmul.mubr.bf16.gmra.mrb[8].mxu0 %v1417_v18  ;;  %1352 = vmatmul.mubr.bf16.gmra.mrb[8].mxu1 %v1418_v19 }
  0x38   : > { %1339 = vmatprep.mubr.bf16.mxu0 %v1419_v20  ;;  %1355 = vmatprep.mubr.bf16.mxu1 %v1420_v21 }
  0x3f   : > { %1340 = vmatmul.mubr.bf16.gmra.mrb[12].mxu0 %v1421_v22  ;;  %1356 = vmatmul.mubr.bf16.gmra.mrb[12].mxu1 %v1422_v23 }
  0xfa   : > { %v1329_v24 = vpop.f32.mrb[0].mxu0  ;;  %v1345_v26 = vpop.f32.mrb[0].mxu1 }
  0xfb   : > { %v554_v27 = vpop.f32.mrb[1].mxu0  ;;  %v618_v28 = vpop.f32.mrb[1].mxu1  ;;  %v789_v31 = vadd.f32 %v1329_v24, %v1538_v25  ;;  %v805_v32 = vadd.f32 %v1345_v26, %v1538_v25 }
  0xfc   : > { %v1330_v29 = vpop.f32.mrb[2].mxu0  ;;  %v1346_v30 = vpop.f32.mrb[2].mxu1  ;;  %v787_v37 = vadd.f32 %v1538_v25, %v554_v27  ;;  %v803_v38 = vadd.f32 %v1538_v25, %v618_v28 }
  0xfd   : > { %v790_v33 = vadd.f32 %v1330_v29, %v1538_v25  ;;  %v806_v34 = vadd.f32 %v1346_v30, %v1538_v25  ;;  %v557_v35 = vpop.f32.mrb[3].mxu0  ;;  %v621_v36 = vpop.f32.mrb[3].mxu1 }
  0xfe   : > { %v788_v39 = vadd.f32 %v1538_v25, %v557_v35  ;;  %v804_v40 = vadd.f32 %v1538_v25, %v621_v36 }
  0xff   : > { %v1200_v41 = vpack.c.bf16 %v790_v33, %v789_v31  ;;  %v1240_v42 = vpack.c.bf16 %v806_v34, %v805_v32 }
 0x100   : > { %v1195_v43 = vpack.c.bf16 %v788_v39, %v787_v37  ;;  %v1235_v44 = vpack.c.bf16 %v804_v40, %v803_v38 }
 0x101   : > { %1272 = vst [vmem:[%s1551_s17 + $0x8] sm:$0xff] %v1200_v41   ;;  %1280 = vst [vmem:[%s1551_s17 + $0x48] sm:$0xff] %v1240_v42  }
 0x102   : > { %1196 = vst [vmem:[%s1551_s17] sm:$0xff] %v1195_v43   ;;  %1279 = vst [vmem:[%s1551_s17 + $0x40] sm:$0xff] %v1235_v44   ;;  %v1333_v45 = vpop.f32.mrb[4].mxu0  ;;  %v1349_v46 = vpop.f32.mrb[4].mxu1 }
 0x103   : > { %v570_v47 = vpop.f32.mrb[5].mxu0  ;;  %v634_v48 = vpop.f32.mrb[5].mxu1  ;;  %v793_v51 = vadd.f32 %v1333_v45, %v1538_v25  ;;  %v809_v52 = vadd.f32 %v1349_v46, %v1538_v25 }
 0x104   : > { %v1334_v49 = vpop.f32.mrb[6].mxu0  ;;  %v1350_v50 = vpop.f32.mrb[6].mxu1  ;;  %v791_v57 = vadd.f32 %v1538_v25, %v570_v47  ;;  %v807_v58 = vadd.f32 %v1538_v25, %v634_v48 }
 0x105   : > { %v794_v53 = vadd.f32 %v1334_v49, %v1538_v25  ;;  %v810_v54 = vadd.f32 %v1350_v50, %v1538_v25  ;;  %v573_v55 = vpop.f32.mrb[7].mxu0  ;;  %v637_v56 = vpop.f32.mrb[7].mxu1 }
 0x106   : > { %v792_v59 = vadd.f32 %v1538_v25, %v573_v55  ;;  %v808_v60 = vadd.f32 %v1538_v25, %v637_v56 }
 0x107   : > { %v1210_v61 = vpack.c.bf16 %v794_v53, %v793_v51  ;;  %v1250_v62 = vpack.c.bf16 %v810_v54, %v809_v52 }
 0x108   : > { %v1205_v63 = vpack.c.bf16 %v792_v59, %v791_v57  ;;  %v1245_v0 = vpack.c.bf16 %v808_v60, %v807_v58 }
 0x109   : > { %1274 = vst [vmem:[%s1551_s17 + $0x18] sm:$0xff] %v1210_v61   ;;  %1282 = vst [vmem:[%s1551_s17 + $0x58] sm:$0xff] %v1250_v62  }
 0x10a   : > { %1273 = vst [vmem:[%s1551_s17 + $0x10] sm:$0xff] %v1205_v63   ;;  %1281 = vst [vmem:[%s1551_s17 + $0x50] sm:$0xff] %v1245_v0   ;;  %v1337_v1 = vpop.f32.mrb[8].mxu0  ;;  %v1353_v2 = vpop.f32.mrb[8].mxu1 }
 0x10b   : > { %v586_v3 = vpop.f32.mrb[9].mxu0  ;;  %v650_v4 = vpop.f32.mrb[9].mxu1  ;;  %v797_v7 = vadd.f32 %v1337_v1, %v1538_v25  ;;  %v813_v8 = vadd.f32 %v1353_v2, %v1538_v25 }
 0x10c   : > { %v1338_v5 = vpop.f32.mrb[10].mxu0  ;;  %v1354_v6 = vpop.f32.mrb[10].mxu1  ;;  %v795_v13 = vadd.f32 %v1538_v25, %v586_v3  ;;  %v811_v14 = vadd.f32 %v1538_v25, %v650_v4 }
 0x10d   : > { %v798_v9 = vadd.f32 %v1338_v5, %v1538_v25  ;;  %v814_v10 = vadd.f32 %v1354_v6, %v1538_v25  ;;  %v589_v11 = vpop.f32.mrb[11].mxu0  ;;  %v653_v12 = vpop.f32.mrb[11].mxu1 }
 0x10e   : > { %v796_v15 = vadd.f32 %v1538_v25, %v589_v11  ;;  %v812_v16 = vadd.f32 %v1538_v25, %v653_v12 }
 0x10f   : > { %v1220_v17 = vpack.c.bf16 %v798_v9, %v797_v7  ;;  %v1260_v18 = vpack.c.bf16 %v814_v10, %v813_v8 }
 0x110   : > { %v1215_v19 = vpack.c.bf16 %v796_v15, %v795_v13  ;;  %v1255_v20 = vpack.c.bf16 %v812_v16, %v811_v14 }
 0x111   : > { %1276 = vst [vmem:[%s1551_s17 + $0x28] sm:$0xff] %v1220_v17   ;;  %1284 = vst [vmem:[%s1551_s17 + $0x68] sm:$0xff] %v1260_v18  }
 0x112   : > { %1275 = vst [vmem:[%s1551_s17 + $0x20] sm:$0xff] %v1215_v19   ;;  %1283 = vst [vmem:[%s1551_s17 + $0x60] sm:$0xff] %v1255_v20   ;;  %v1341_v21 = vpop.f32.mrb[12].mxu0  ;;  %v1357_v22 = vpop.f32.mrb[12].mxu1 }
 0x113   : > { %v602_v23 = vpop.f32.mrb[13].mxu0  ;;  %v666_v24 = vpop.f32.mrb[13].mxu1  ;;  %v801_v28 = vadd.f32 %v1341_v21, %v1538_v25  ;;  %v817_v29 = vadd.f32 %v1357_v22, %v1538_v25 }
 0x114   : > { %v1342_v26 = vpop.f32.mrb[14].mxu0  ;;  %v1358_v27 = vpop.f32.mrb[14].mxu1  ;;  %v799_v34 = vadd.f32 %v1538_v25, %v602_v23  ;;  %v815_v35 = vadd.f32 %v1538_v25, %v666_v24 }
 0x115   : > { %v802_v30 = vadd.f32 %v1342_v26, %v1538_v25  ;;  %v818_v31 = vadd.f32 %v1358_v27, %v1538_v25  ;;  %v605_v32 = vpop.f32.mrb[15].mxu0  ;;  %v669_v33 = vpop.f32.mrb[15].mxu1 }
 0x116   : > { %v800_v36 = vadd.f32 %v1538_v25, %v605_v32  ;;  %v816_v37 = vadd.f32 %v1538_v25, %v669_v33 }
 0x117   : > { %v1230_v38 = vpack.c.bf16 %v802_v30, %v801_v28  ;;  %v1270_v39 = vpack.c.bf16 %v818_v31, %v817_v29 }
 0x118   : > { %v1225_v40 = vpack.c.bf16 %v800_v36, %v799_v34  ;;  %v1265_v41 = vpack.c.bf16 %v816_v37, %v815_v35 }
 0x119   : > { %1278 = vst [vmem:[%s1551_s17 + $0x38] sm:$0xff] %v1230_v38   ;;  %1286 = vst [vmem:[%s1551_s17 + $0x78] sm:$0xff] %v1270_v39  }
 0x11a   : > { %1277 = vst [vmem:[%s1551_s17 + $0x30] sm:$0xff] %v1225_v40   ;;  %1285 = vst [vmem:[%s1551_s17 + $0x70] sm:$0xff] %v1265_v41  }
 0x11b PF: > { %s13_s14 = sadd.s32 1, %s1445_s14   ;;  %s1608_s12 = smov %s1441_s13 }
 0x11c   : > { %p10_p5 = scmp.ge.s32.totalorder %s13_s14, 18   ;;  %s1609_s13 = smov %s1611_s15 }
 0x11e   :  { %12 = sbr.rel (!%p10_p5) target bundleno = 2 (0x2), region = 76 }

// kernel: tile.63
= control target key start
LH: loop header
LB: loop body
LE: loop exit
PB: predicated region body
PF: predicated region fallthrough
CT: control target
= control target key end

     0   :  { %s208_s0 = inlined_call_operand.vmem [shape: f32[4], index: 0, kind: input, shape index: {}]   ;;  %s209_s1 = inlined_call_operand.vmem [shape: f32[256,4], index: 1, kind: output, shape index: {}]  }
   0x1   :  { %v4_v0 = vld [vmem:[%s208_s0] ss:$0 sm:$0xff] }
   0x2   :  { %5 = vst [vmem:[%s209_s1] sm:$0xff] %v4_v0  ;;  %68 = vst [vmem:[%s209_s1 + $0x8] sm:$0xff] %v4_v0 }
   0x3   :  { %69 = vst [vmem:[%s209_s1 + $0x10] sm:$0xff] %v4_v0  ;;  %70 = vst [vmem:[%s209_s1 + $0x18] sm:$0xff] %v4_v0 }
   0x4   :  { %71 = vst [vmem:[%s209_s1 + $0x20] sm:$0xff] %v4_v0  ;;  %72 = vst [vmem:[%s209_s1 + $0x28] sm:$0xff] %v4_v0 }
   0x5   :  { %73 = vst [vmem:[%s209_s1 + $0x30] sm:$0xff] %v4_v0  ;;  %74 = vst [vmem:[%s209_s1 + $0x38] sm:$0xff] %v4_v0 }
   0x6   :  { %75 = vst [vmem:[%s209_s1 + $0x40] sm:$0xff] %v4_v0  ;;  %76 = vst [vmem:[%s209_s1 + $0x48] sm:$0xff] %v4_v0 }
   0x7   :  { %77 = vst [vmem:[%s209_s1 + $0x50] sm:$0xff] %v4_v0  ;;  %78 = vst [vmem:[%s209_s1 + $0x58] sm:$0xff] %v4_v0 }
   0x8   :  { %79 = vst [vmem:[%s209_s1 + $0x60] sm:$0xff] %v4_v0  ;;  %80 = vst [vmem:[%s209_s1 + $0x68] sm:$0xff] %v4_v0 }
   0x9   :  { %81 = vst [vmem:[%s209_s1 + $0x70] sm:$0xff] %v4_v0  ;;  %82 = vst [vmem:[%s209_s1 + $0x78] sm:$0xff] %v4_v0 }
   0xa   :  { %83 = vst [vmem:[%s209_s1 + $0x80] sm:$0xff] %v4_v0  ;;  %84 = vst [vmem:[%s209_s1 + $0x88] sm:$0xff] %v4_v0 }
   0xb   :  { %85 = vst [vmem:[%s209_s1 + $0x90] sm:$0xff] %v4_v0  ;;  %86 = vst [vmem:[%s209_s1 + $0x98] sm:$0xff] %v4_v0 }
   0xc   :  { %87 = vst [vmem:[%s209_s1 + $0xa0] sm:$0xff] %v4_v0  ;;  %88 = vst [vmem:[%s209_s1 + $0xa8] sm:$0xff] %v4_v0 }
   0xd   :  { %89 = vst [vmem:[%s209_s1 + $0xb0] sm:$0xff] %v4_v0  ;;  %90 = vst [vmem:[%s209_s1 + $0xb8] sm:$0xff] %v4_v0 }
   0xe   :  { %91 = vst [vmem:[%s209_s1 + $0xc0] sm:$0xff] %v4_v0  ;;  %92 = vst [vmem:[%s209_s1 + $0xc8] sm:$0xff] %v4_v0 }
   0xf   :  { %93 = vst [vmem:[%s209_s1 + $0xd0] sm:$0xff] %v4_v0  ;;  %94 = vst [vmem:[%s209_s1 + $0xd8] sm:$0xff] %v4_v0 }
  0x10   :  { %95 = vst [vmem:[%s209_s1 + $0xe0] sm:$0xff] %v4_v0  ;;  %96 = vst [vmem:[%s209_s1 + $0xe8] sm:$0xff] %v4_v0 }
  0x11   :  { %97 = vst [vmem:[%s209_s1 + $0xf0] sm:$0xff] %v4_v0  ;;  %98 = vst [vmem:[%s209_s1 + $0xf8] sm:$0xff] %v4_v0 }

// kernel: cifar10net_forward.16
= control target key start
LH: loop header
LB: loop body
LE: loop exit
PB: predicated region body
PF: predicated region fallthrough
CT: control target
= control target key end

     0   :  { %s1843_s0 = inlined_call_operand.vmem [shape: bf16[4,2,8,1024], index: 0, kind: input, shape index: {}]   ;;  %s1844_s1 = inlined_call_operand.vmem [shape: f32[1,1024], index: 1, kind: input, shape index: {}]   ;;  %s1845_s2 = inlined_call_operand.vmem [shape: f32[1,1024], index: 2, kind: input, shape index: {}]   ;;  %s1846_s3 = inlined_call_operand.vmem [shape: f32[1,1024], index: 3, kind: input, shape index: {}]   ;;  %s1847_s4 = inlined_call_operand.vmem [shape: f32[1,1024], index: 4, kind: input, shape index: {}]   ;;  %s1848_s5 = inlined_call_operand.vmem [shape: f32[1,1024], index: 5, kind: input, shape index: {}]   ;;  %s1849_s6 = inlined_call_operand.vmem [shape: f32[1,1024], index: 6, kind: input, shape index: {}]   ;;  %s1850_s7 = inlined_call_operand.vmem [shape: f32[2,1024], index: 7, kind: input, shape index: {}]   ;;  %s1851_s8 = inlined_call_operand.vmem [shape: bf16[4,2,8,1024], index: 8, kind: output, shape index: {}]  }
   0x1   :  { %1853 = sst [smem:[#allocation12_spill]] %s1843_s0 }
   0x2   :  { %s1488_s27 = smov 0   ;;  %s1490_s28 = smov 0  }
   0x3   :  { %s1492_s29 = smov 0   ;;  %s1494_s30 = smov 0  }
   0x4   :  { %s1496_s9 = smov 0   ;;  %s1498_s10 = smov 0  }
   0x5   :  { %s1500_s11 = smov 0  }
   0x6 LB: > { %s27_s12 = sadd.s32 1, %s1429_s9  ;;  %s30_s13 = sadd.s32 1, %s1433_s10  ;;  %s1437_s11 = sphi %s1500_s11, %s18_s11   ;;  %s1433_s10 = sphi %s1498_s10, %s1863_s10   ;;  %s1429_s9 = sphi %s1496_s9, %s1862_s9   ;;  %s1425_s30 = sphi %s1494_s30, %s1861_s30   ;;  %s1421_s29 = sphi %s1492_s29, %s1860_s29   ;;  %s1417_s28 = sphi %s1490_s28, %s1859_s28   ;;  %s1413_s27 = sphi %s1488_s27, %s1858_s27  }
   0x7   : > { %p28_p0 = scmp.ge.s32.totalorder %s27_s12, 4  ;;  %s1259_s14 = sadd.s32 4294967295, %s1437_s11  }
   0x8   : > { %p46_p1 = scmp.ne.s32.totalorder %s1417_s28, %s1413_s27  ;;  %p47_p2 = scmp.eq.s32.totalorder %s1437_s11, 0 }
   0x9   : > { %s1865_s12 = smov (%p28_p0, %s27_s12), 0  ;;  %s1867_s13 = smov (!%p28_p0, %s30_s13), %s1433_s10 }
   0xa   : > { %p32_p3 = scmp.ge.s32.totalorder %s1867_s13, 2  ;;  %p260_p4 = scmp.eq.s32.totalorder %s1259_s14, 7 }
   0xb   : > { %s34_s15 = ssub.s32 %s1429_s9, %s1865_s12  ;;  %p48_p5 = por %p47_p2, %p46_p1 }
   0xc   : > { %s1869_s13 = smov (%p32_p3, %s1867_s13), 0  ;;  %p1536_p6 = por %p260_p4, %p46_p1 }
   0xd   : > { %1854 = sst [smem:[#allocation11_spill]] %s1869_s13  ;;  %s35_s17 = ssub.s32 %s1433_s10, %s1869_s13 }
   0xe   : > { %s36_s18 = sor.u32 %s35_s17, %s34_s15  ;;  %s39_s19 = sadd.s32 1, %s1417_s28 }
   0xf   : > { %p37_p7 = scmp.eq.s32.totalorder %s36_s18, 0  ;;  %p1262_p8 = scmp.ge.s32.totalorder %s1437_s11, 8 }
  0x11   : > { %s1544_s20 = scalar_select %p37_p7, %s1417_s28, %s39_s19  }
  0x12   : > { %282 = sbr.rel (%p1262_p8) target bundleno = 37 (0x25), region = 16 }
  0x19   : > { %285 = sbr.rel (!%p48_p5) target bundleno = 37 (0x25), region = 20  ;;  %s287_s21 = sand.u32 (%p48_p5), 1, %s1417_s28  }
  0x1a   : > { %s1264_s22 = sshll.u32 (%p48_p5), %s1433_s10, 2  ;;  %s1263_s23 = sshll.u32 (%p48_p5), %s287_s21, 5 }
  0x1b   : > { %s1265_s24 = sshll.u32 (%p48_p5), %s1429_s9, 4  ;;  %s1856_s0 = sld [smem:[#allocation12_spill]] (%p48_p5) }
  0x1c   : > { %s292_s25 = sadd.s32 (%p48_p5), %s1265_s24, %s1264_s22  ;;  %s289_s17 = scalar_lea.vmem (%p48_p5), [#allocation9], %s1263_s23 }
  0x1d   : > { %s1266_s26 = sshll.u32 (%p48_p5), %s292_s25, 2 }
  0x21   : > { %s294_s15 = scalar_lea.vmem %s1856_s0, %s1266_s26 }
  0x22   : > { %v307_v0 = vld [vmem:[%s294_s15] sm:$0xff]  ;;  %v309_v1 = vld [vmem:[%s294_s15 + $0x8] sm:$0xff] }
  0x23   : > { %v311_v2 = vld [vmem:[%s294_s15 + $0x20] sm:$0xff]  ;;  %308 = vst [vmem:[%s289_s17] sm:$0xff] %v307_v0  ;;  %310 = vst [vmem:[%s289_s17 + $0x8] sm:$0xff] %v309_v1  ;;  %v313_v3 = vld [vmem:[%s294_s15 + $0x28] sm:$0xff] }
  0x24   : > { %312 = vst [vmem:[%s289_s17 + $0x10] sm:$0xff] %v311_v2  ;;  %314 = vst [vmem:[%s289_s17 + $0x18] sm:$0xff] %v313_v3 }
  0x25 PF: > { %p1267_p9 = scmp.ge.s32.totalorder %s1437_s11, 1  ;;  %p376_p10 = scmp.lt.s32.totalorder %s1437_s11, 9 }
  0x27   : > { %p377_p11 = pnand %p1267_p9, %p376_p10 }
  0x28   : > { %s383_s13 = sand.u32 (!%p377_p11), 1, %s1413_s27   ;;  %s1557_s18 = sshll.u32 (!%p377_p11), %s1425_s30, 2  ;;  %v502_v4 = vlaneseq (!%p377_p11) }
  0x29   : > { %380 = sbr.rel (%p377_p11) target bundleno = 151 (0x97), region = 71  ;;  %s1559_s19 = sshll.u32 (!%p377_p11), %s383_s13, 5 }
  0x2a   : > { %p446_p12 = scmp.lt.s32.totalorder (!%p377_p11), %s1557_s18, 7  ;;  %v503_v5 = vshrl.u32 (!%p377_p11), %v502_v4, 7  ;;  %s385_s22 = scalar_lea.vmem (!%p377_p11), [#allocation9], %s1559_s19 }
  0x2b   : > { %v489_v6 = vld [vmem:[%s385_s22] sm:$0xff] (!%p377_p11)  ;;  %v490_v7 = vld [vmem:[%s385_s22 + $0x8] sm:$0xff] (!%p377_p11)  ;;  %v491_v8 = vld [vmem:[%s385_s22 + $0x10] sm:$0xff] (!%p377_p11)  ;;  %p1278_p13 = scmp.ne.s32.totalorder (!%p377_p11), %s1421_s29, 0 }
  0x2c   : > { %v492_v9 = vld [vmem:[%s385_s22 + $0x18] sm:$0xff] (!%p377_p11)  ;;  %v493_v10 = vunpack.c.l.bf16 (!%p377_p11), %v489_v6  ;;  %v494_v11 = vunpack.c.h.bf16 (!%p377_p11), %v489_v6  ;;  %v495_v12 = vunpack.c.l.bf16 (!%p377_p11), %v490_v7  ;;  %v496_v13 = vunpack.c.h.bf16 (!%p377_p11), %v490_v7 }
  0x2d   : > { %v497_v16 = vunpack.c.l.bf16 (!%p377_p11), %v491_v8  ;;  %v498_v17 = vunpack.c.h.bf16 (!%p377_p11), %v491_v8  ;;  %v1582_v18 = vsub.s32 (!%p377_p11), 0, %v503_v5  ;;  %v1584_v19 = vsub.s32 (!%p377_p11), 1, %v503_v5 }
  0x2e   : > { %v499_v22 = vunpack.c.l.bf16 (!%p377_p11), %v492_v9  ;;  %v500_v23 = vunpack.c.h.bf16 (!%p377_p11), %v492_v9  ;;  %v1598_v24 = vsub.s32 (!%p377_p11), 2, %v503_v5  ;;  %v1600_v25 = vsub.s32 (!%p377_p11), 3, %v503_v5 }
  0x30   : > { %s1563_s21 = scalar_select %p446_p12, %s1557_s18, 7 }
  0x31   : > { %v1439_v53 = vmov (!%p1278_p13), 0.0   ;;  %v1440_v54 = vmov (!%p1278_p13), 1.0  }
  0x32   : > { %s448_s23 = scalar_lea.vmem %s1844_s1, %s1563_s21  ;;  %s453_s26 = scalar_lea.vmem %s1845_s2, %s1563_s21  ;;  %571 = vst [vmem:[#allocation8] sm:$0xff] (!%p1278_p13), %v1439_v53  ;;  %572 = vst [vmem:[#allocation8 + $0x8] sm:$0xff] (!%p1278_p13), %v1439_v53 }
  0x33   : > { %s458_s17 = scalar_lea.vmem %s1846_s3, %s1563_s21  ;;  %s463_s22 = scalar_lea.vmem %s1847_s4, %s1563_s21  ;;  %v482_v14 = vld [vmem:[%s448_s23] sm:$0xf]  ;;  %573 = vst [vmem:[#allocation8 + $0x10] sm:$0xff] (!%p1278_p13), %v1439_v53  ;;  %574 = vst [vmem:[#allocation8 + $0x18] sm:$0xff] (!%p1278_p13), %v1439_v53 }
  0x34   : > { %v483_v15 = vld [vmem:[%s453_s26] sm:$0xf]  ;;  %s468_s24 = scalar_lea.vmem %s1848_s5, %s1563_s21  ;;  %s473_s15 = scalar_lea.vmem %s1849_s6, %s1563_s21  ;;  %v505_v28 = vrot.slane %v482_v14, %v1582_v18  ;;  %v509_v29 = vrot.slane %v482_v14, %v1584_v19  ;;  %v513_v32 = vrot.slane %v482_v14, %v1598_v24  ;;  %v517_v33 = vrot.slane %v482_v14, %v1600_v25  ;;  %583 = vst [vmem:[#allocation4] sm:$0xff] (!%p1278_p13), %v1439_v53 }
  0x35   : > { %v1594_v20 = vld [vmem:[%s458_s17] sm:$0xf]  ;;  %s1277_s0 = sshll.u32 %s1563_s21, 1  ;;  %v534_v30 = vrot.slane %v483_v15, %v1582_v18  ;;  %v538_v31 = vrot.slane %v483_v15, %v1584_v19  ;;  %v542_v34 = vrot.slane %v483_v15, %v1598_v24  ;;  %v546_v35 = vrot.slane %v483_v15, %v1600_v25  ;;  %s1637_s21 = scalar_lea.vmem [#allocation10], %s1559_s19  ;;  %584 = vst [vmem:[#allocation4 + $0x8] sm:$0xff] (!%p1278_p13), %v1439_v53 }
  0x36   : > { %v1596_v21 = vld [vmem:[%s463_s22] sm:$0xf]  ;;  %s479_s17 = scalar_lea.vmem %s1850_s7, %s1277_s0  ;;  %v522_v37 = vmul.f32 %v505_v28, %v493_v10  ;;  %v523_v38 = vmul.f32 %v509_v29, %v494_v11  ;;  %v526_v39 = vmul.f32 %v505_v28, %v497_v16  ;;  %v527_v40 = vmul.f32 %v509_v29, %v498_v17  ;;  %562 = sbr.rel (%p1278_p13) target bundleno = 67 (0x43), region = 79  ;;  %585 = vst [vmem:[#allocation4 + $0x10] sm:$0xff] (!%p1278_p13), %v1439_v53 }
  0x37   : > { %v1603_v26 = vld [vmem:[%s468_s24] sm:$0xf]  ;;  %v524_v41 = vmul.f32 %v513_v32, %v495_v12  ;;  %v525_v42 = vmul.f32 %v517_v33, %v496_v13  ;;  %v528_v43 = vmul.f32 %v513_v32, %v499_v22  ;;  %v529_v44 = vmul.f32 %v517_v33, %v500_v23  ;;  %586 = vst [vmem:[#allocation4 + $0x18] sm:$0xff] (!%p1278_p13), %v1439_v53 }
  0x38   : > { %v1605_v27 = vld [vmem:[%s473_s15] sm:$0xf]  ;;  %v1620_v45 = vadd.f32 %v534_v30, %v522_v37  ;;  %v1622_v46 = vadd.f32 %v538_v31, %v523_v38  ;;  %v1624_v47 = vadd.f32 %v534_v30, %v526_v39  ;;  %v1626_v48 = vadd.f32 %v538_v31, %v527_v40  ;;  %587 = vst [vmem:[#allocation4 + $0x20] sm:$0xff] (!%p1278_p13), %v1439_v53 }
  0x39   : > { %v1618_v36 = vld.sshfl [vmem:[%s479_s17] sm:$0xff pattern:$0x75316420]  ;;  %v1628_v49 = vadd.f32 %v542_v34, %v524_v41  ;;  %v1630_v50 = vadd.f32 %v546_v35, %v525_v42  ;;  %v1632_v51 = vadd.f32 %v542_v34, %v528_v43  ;;  %v1634_v52 = vadd.f32 %v546_v35, %v529_v44  ;;  %588 = vst [vmem:[#allocation4 + $0x28] sm:$0xff] (!%p1278_p13), %v1439_v53 }
  0x3a   : > { %563 = vst [vmem:[#allocation7] sm:$0xff] (!%p1278_p13), %v1620_v45  ;;  %564 = vst [vmem:[#allocation7 + $0x8] sm:$0xff] (!%p1278_p13), %v1622_v46 }
  0x3b   : > { %565 = vst [vmem:[#allocation7 + $0x10] sm:$0xff] (!%p1278_p13), %v1628_v49  ;;  %566 = vst [vmem:[#allocation7 + $0x18] sm:$0xff] (!%p1278_p13), %v1630_v50 }
  0x3c   : > { %567 = vst [vmem:[#allocation7 + $0x20] sm:$0xff] (!%p1278_p13), %v1624_v47  ;;  %568 = vst [vmem:[#allocation7 + $0x28] sm:$0xff] (!%p1278_p13), %v1626_v48 }
  0x3d   : > { %569 = vst [vmem:[#allocation7 + $0x30] sm:$0xff] %v1632_v51  ;;  %570 = vst [vmem:[#allocation7 + $0x38] sm:$0xff] %v1634_v52 }
  0x3e   : > { %589 = vst [vmem:[#allocation4 + $0x30] sm:$0xff] %v1439_v53  ;;  %590 = vst [vmem:[#allocation4 + $0x38] sm:$0xff] %v1439_v53 }
  0x3f   : > { %575 = vst [vmem:[#allocation6] sm:$0xff] %v1440_v54  ;;  %576 = vst [vmem:[#allocation6 + $0x8] sm:$0xff] %v1440_v54 }
  0x40   : > { %577 = vst [vmem:[#allocation6 + $0x10] sm:$0xff] %v1440_v54  ;;  %578 = vst [vmem:[#allocation6 + $0x18] sm:$0xff] %v1440_v54 }
  0x41   : > { %579 = vst [vmem:[#allocation6 + $0x20] sm:$0xff] %v1440_v54  ;;  %580 = vst [vmem:[#allocation6 + $0x28] sm:$0xff] %v1440_v54 }
  0x42   : > { %581 = vst [vmem:[#allocation6 + $0x30] sm:$0xff] %v1440_v54  ;;  %582 = vst [vmem:[#allocation6 + $0x38] sm:$0xff] %v1440_v54 }
  0x43 PF: > { %p1279_p0 = scmp.le.s32.totalorder %s1421_s29, 0 }
  0x44   : > { %v1649_v55 = vld [vmem:[#allocation2] sm:$0xff] (!%p1279_p0)  ;;  %v752_v58 = vrot.slane (!%p1279_p0), %v1605_v27, %v1582_v18  ;;  %v1657_v60 = vld [vmem:[#allocation2 + $0x8] sm:$0xff] (!%p1279_p0)  ;;  %v756_v63 = vrot.slane (!%p1279_p0), %v1605_v27, %v1584_v19  ;;  %v760_v0 = vrot.slane (!%p1279_p0), %v1605_v27, %v1598_v24  ;;  %v1441_v1 = vmov (!%p1279_p0), 0.0   ;;  %v1668_v4 = vld [vmem:[#allocation2 + $0x10] sm:$0xff] (!%p1279_p0) }
  0x45   : > { %594 = sbr.rel (%p1279_p0) target bundleno = 115 (0x73), region = 83  ;;  %v1651_v56 = vld [vmem:[#allocation2 + $0x20] sm:$0xff] (!%p1279_p0)  ;;  %v1659_v61 = vld [vmem:[#allocation2 + $0x28] sm:$0xff] (!%p1279_p0)  ;;  %v1670_v5 = vld [vmem:[#allocation2 + $0x30] sm:$0xff] (!%p1279_p0)  ;;  %v764_v7 = vrot.slane (!%p1279_p0), %v1605_v27, %v1600_v25 }
  0x46   : > { %v603_v57 = vld [vmem:[#allocation3] sm:$0xff] (!%p1279_p0)  ;;  %v623_v59 = vmax.f32 (!%p1279_p0), %v1649_v55, %v1651_v56  ;;  %v604_v62 = vld [vmem:[#allocation3 + $0x8] sm:$0xff] (!%p1279_p0)  ;;  %v624_v3 = vmax.f32 (!%p1279_p0), %v1657_v60, %v1659_v61  ;;  %v605_v6 = vld [vmem:[#allocation3 + $0x10] sm:$0xff] (!%p1279_p0)  ;;  %v625_v9 = vmax.f32 (!%p1279_p0), %v1668_v4, %v1670_v5 }
  0x47   : > { %vm720_vm0 = vcmp.gt.f32.partialorder (!%p1279_p0), %v603_v57, 1.0  ;;  %vm721_vm1 = vcmp.gt.f32.partialorder (!%p1279_p0), %v604_v62, 1.0  ;;  %vm722_vm3 = vcmp.gt.f32.partialorder (!%p1279_p0), %v605_v6, 1.0  ;;  %v1677_v10 = vld [vmem:[#allocation2 + $0x18] sm:$0xff] (!%p1279_p0)  ;;  %v607_v23 = vld [vmem:[#allocation3 + $0x20] sm:$0xff] (!%p1279_p0)  ;;  %v608_v34 = vld [vmem:[#allocation3 + $0x28] sm:$0xff] (!%p1279_p0) }
  0x48   : > { %v1284_v2 = vsel (!%p1279_p0), %vm720_vm0, 1.0, %v1441_v1  ;;  %vm627_vm2 = vcmp.gt.f32.partialorder (!%p1279_p0), %v623_v59, 0.0  ;;  %v1285_v8 = vsel (!%p1279_p0), %vm721_vm1, 1.0, %v1441_v1  ;;  %v1679_v11 = vld [vmem:[#allocation2 + $0x38] sm:$0xff] (!%p1279_p0)  ;;  %vm628_vm4 = vcmp.gt.f32.partialorder (!%p1279_p0), %v624_v3, 0.0  ;;  %v609_v38 = vld [vmem:[#allocation3 + $0x30] sm:$0xff] (!%p1279_p0) }
  0x49   : > { %v606_v12 = vld [vmem:[#allocation3 + $0x18] sm:$0xff] (!%p1279_p0)  ;;  %v1682_v13 = vsel (!%p1279_p0), %vm627_vm2, 1.0, %v1441_v1  ;;  %v1286_v14 = vsel (!%p1279_p0), %vm722_vm3, 1.0, %v1441_v1  ;;  %v626_v15 = vmax.f32 (!%p1279_p0), %v1677_v10, %v1679_v11  ;;  %v1689_v16 = vsel (!%p1279_p0), %vm628_vm4, 1.0, %v1441_v1  ;;  %v619_v3 = vld [vmem:[#allocation5] sm:$0xff] (!%p1279_p0)  ;;  %v617_v27 = vld [vmem:[#allocation4 + $0x30] sm:$0xff] (!%p1279_p0) }
  0x4a   : > { %vm639_vm5 = vcmp.lt.f32.partialorder (!%p1279_p0), %v603_v57, %v1682_v13  ;;  %vm629_vm6 = vcmp.gt.f32.partialorder (!%p1279_p0), %v625_v9, 0.0  ;;  %vm723_vm7 = vcmp.gt.f32.partialorder (!%p1279_p0), %v606_v12, 1.0  ;;  %vm640_vm8 = vcmp.lt.f32.partialorder (!%p1279_p0), %v604_v62, %v1689_v16 }
  0x4b   : > { %v647_v17 = vsel (!%p1279_p0), %vm639_vm5, %v1620_v45, 0.0  ;;  %v1694_v22 = vsel (!%p1279_p0), %vm629_vm6, 1.0, %v1441_v1  ;;  %vm630_vm9 = vcmp.gt.f32.partialorder (!%p1279_p0), %v626_v15, 0.0  ;;  %v648_v29 = vsel (!%p1279_p0), %vm640_vm8, %v1622_v46, 0.0 }
  0x4c   : > { %v655_v28 = vsub.f32 %v1620_v45, %v647_v17  ;;  %vm641_vm10 = vcmp.lt.f32.partialorder %v605_v6, %v1694_v22  ;;  %v1700_v30 = vsel %vm630_vm9, 1.0, %v1441_v1  ;;  %v656_v31 = vsub.f32 %v1622_v46, %v648_v29  ;;  %v610_v45 = vld [vmem:[#allocation3 + $0x38] sm:$0xff]  ;;  %v611_v29 = vld [vmem:[#allocation4] sm:$0xff] }
  0x4d   : > { %v649_v32 = vsel %vm641_vm10, %v1628_v49, 0.0  ;;  %vm642_vm11 = vcmp.lt.f32.partialorder %v606_v12, %v1700_v30  ;;  %v1287_v33 = vsel %vm723_vm7, 1.0, %v1441_v1  ;;  %vm643_vm12 = vcmp.lt.f32.partialorder %v607_v23, %v1682_v13  ;;  %v620_v12 = vld [vmem:[#allocation5 + $0x8] sm:$0xff] }
  0x4e   : > { %663 = vst [vmem:[#allocation7] sm:$0xff] %v655_v28  ;;  %v657_v35 = vsub.f32 %v1628_v49, %v649_v32  ;;  %v650_v37 = vsel %vm642_vm11, %v1630_v50, 0.0  ;;  %vm724_vm13 = vcmp.gt.f32.partialorder %v607_v23, 1.0  ;;  %664 = vst [vmem:[#allocation7 + $0x8] sm:$0xff] %v656_v31  ;;  %v651_v40 = vsel %vm643_vm12, %v1624_v47, 0.0  ;;  %v612_v31 = vld [vmem:[#allocation4 + $0x8] sm:$0xff] }
  0x4f   : > { %v658_v39 = vsub.f32 %v1630_v50, %v650_v37  ;;  %v1288_v41 = vsel %vm724_vm13, 1.0, %v1441_v1  ;;  %vm644_vm14 = vcmp.lt.f32.partialorder %v608_v34, %v1689_v16  ;;  %v659_v42 = vsub.f32 %v1624_v47, %v651_v40 }
  0x50   : > { %665 = vst [vmem:[#allocation7 + $0x10] sm:$0xff] %v657_v35  ;;  %v744_v43 = vadd.f32 %v1288_v41, %v1284_v2  ;;  %v652_v44 = vsel %vm644_vm14, %v1626_v48, 0.0  ;;  %vm725_vm15 = vcmp.gt.f32.partialorder %v608_v34, 1.0  ;;  %vm645_vm0 = vcmp.lt.f32.partialorder %v609_v38, %v1694_v22  ;;  %v622_v34 = vld [vmem:[#allocation5 + $0x18] sm:$0xff] }
  0x51   : > { %666 = vst [vmem:[#allocation7 + $0x18] sm:$0xff] %v658_v39  ;;  %v660_v46 = vsub.f32 %v1626_v48, %v652_v44  ;;  %v1289_v49 = vsel %vm725_vm15, 1.0, %v1441_v1  ;;  %vm726_vm1 = vcmp.gt.f32.partialorder %v609_v38, 1.0  ;;  %667 = vst [vmem:[#allocation7 + $0x20] sm:$0xff] %v659_v42  ;;  %v653_v47 = vsel %vm645_vm0, %v1632_v51, 0.0  ;;  %v613_v39 = vld [vmem:[#allocation4 + $0x10] sm:$0xff] }
  0x52   : > { %v769_v50 = vmul.f32 %v752_v58, %v744_v43  ;;  %v745_v53 = vadd.f32 %v1289_v49, %v1285_v8  ;;  %v1290_v54 = vsel %vm726_vm1, 1.0, %v1441_v1  ;;  %v661_v57 = vsub.f32 %v1632_v51, %v653_v47  ;;  %v614_v43 = vld [vmem:[#allocation4 + $0x18] sm:$0xff] }
  0x53   : > { %668 = vst [vmem:[#allocation7 + $0x28] sm:$0xff] %v660_v46  ;;  %v746_v59 = vadd.f32 %v1290_v54, %v1286_v14  ;;  %vm646_vm2 = vcmp.lt.f32.partialorder %v610_v45, %v1700_v30  ;;  %vm727_vm3 = vcmp.gt.f32.partialorder %v610_v45, 1.0  ;;  %v671_v9 = vsub.f32 1.0, %v1682_v13  ;;  %v621_v14 = vld [vmem:[#allocation5 + $0x10] sm:$0xff]  ;;  %v618_v44 = vld [vmem:[#allocation4 + $0x38] sm:$0xff] }
  0x54   : > { %v773_v48 = vmul.f32 1.442695, %v769_v50  ;;  %v770_v62 = vmul.f32 %v756_v63, %v745_v53  ;;  %v654_v2 = vsel %vm646_vm2, %v1634_v52, 0.0  ;;  %v1291_v58 = vsel %vm727_vm3, 1.0, %v1441_v1  ;;  %669 = vst [vmem:[#allocation7 + $0x30] sm:$0xff] %v661_v57  ;;  %v615_v63 = vld [vmem:[#allocation4 + $0x20] sm:$0xff] }
  0x55   : > { %v771_v6 = vmul.f32 %v760_v0, %v746_v59  ;;  %v662_v51 = vsub.f32 %v1634_v52, %v654_v2  ;;  %v747_v8 = vadd.f32 %v1291_v58, %v1287_v33  ;;  %v672_v17 = vsub.f32 1.0, %v1689_v16  ;;  %v616_v52 = vld [vmem:[#allocation4 + $0x28] sm:$0xff] }
  0x56   : > { %1375 = vpow2.f32 %v773_v48  ;;  %v775_v15 = vmul.f32 1.442695, %v770_v62  ;;  %v673_v1 = vsub.f32 1.0, %v1694_v22  ;;  %v675_v28 = vmul.f32 %v671_v9, %v619_v3 }
  0x57   : > { %v777_v23 = vmul.f32 1.442695, %v771_v6  ;;  %670 = vst [vmem:[#allocation7 + $0x38] sm:$0xff] %v662_v51  ;;  %v772_v0 = vmul.f32 %v764_v7, %v747_v8  ;;  %v676_v32 = vmul.f32 %v672_v17, %v620_v12  ;;  %v674_v37 = vsub.f32 1.0, %v1700_v30 }
  0x58   : > { %1377 = vpow2.f32 %v775_v15  ;;  %v677_v33 = vmul.f32 %v673_v1, %v621_v14  ;;  %679 = vst [vmem:[#allocation8] sm:$0xff] %v675_v28  ;;  %v699_v38 = vrot.slane %v1603_v26, %v1582_v18  ;;  %v683_v7 = vmul.f32 %v611_v29, %v1649_v55 }
  0x59   : > { %1379 = vpow2.f32 %v777_v23  ;;  %v779_v35 = vmul.f32 1.442695, %v772_v0  ;;  %680 = vst [vmem:[#allocation8 + $0x8] sm:$0xff] %v676_v32  ;;  %v687_v40 = vmul.f32 %v615_v63, %v1651_v56  ;;  %v684_v41 = vmul.f32 %v612_v31, %v1657_v60 }
  0x5a   : > { %681 = vst [vmem:[#allocation8 + $0x10] sm:$0xff] %v677_v33  ;;  %v688_v42 = vmul.f32 %v616_v52, %v1659_v61  ;;  %v678_v45 = vmul.f32 %v674_v37, %v622_v34  ;;  %v703_v46 = vrot.slane %v1603_v26, %v1584_v19  ;;  %v685_v53 = vmul.f32 %v613_v39, %v1668_v4 }
  0x5b   : > { %1381 = vpow2.f32 %v779_v35  ;;  %v691_v49 = vadd.f32 %v687_v40, %v683_v7  ;;  %v689_v55 = vmul.f32 %v617_v27, %v1670_v5  ;;  %v707_v56 = vrot.slane %v1603_v26, %v1598_v24 }
  0x5c   : > { %v692_v50 = vadd.f32 %v688_v42, %v684_v41  ;;  %682 = vst [vmem:[#allocation8 + $0x18] sm:$0xff] %v678_v45  ;;  %v686_v60 = vmul.f32 %v614_v43, %v1677_v10  ;;  %v690_v47 = vmul.f32 %v618_v44, %v1679_v11  ;;  %v711_v54 = vrot.slane %v1603_v26, %v1600_v25 }
  0x5d   : > { %v716_v61 = vadd.f32 %v699_v38, %v691_v49  ;;  %v693_v59 = vadd.f32 %v689_v55, %v685_v53  ;;  %v805_v48 = vcombine.high %v1618_v36, %v1618_v36  ;;  %v785_v2 = vmul.f32 %v671_v9, %v615_v63 }
  0x5e   : > { %v717_v57 = vadd.f32 %v703_v46, %v692_v50  ;;  %v694_v62 = vadd.f32 %v690_v47, %v686_v60  ;;  %v786_v6 = vmul.f32 %v672_v17, %v616_v52  ;;  %v809_v10 = vrot.slane %v1618_v36, %v1582_v18 }
  0x5f   : > { %v718_v58 = vadd.f32 %v707_v56, %v693_v59  ;;  %v787_v8 = vmul.f32 %v673_v1, %v617_v27  ;;  %v825_v14 = vrot.slane %v805_v48, %v1582_v18  ;;  %v788_v15 = vmul.f32 %v674_v37, %v618_v44 }
  0x60   : > { %v1376_v4 = vpop.eup %1375  ;;  %v719_v51 = vadd.f32 %v711_v54, %v694_v62  ;;  %v813_v23 = vrot.slane %v1618_v36, %v1584_v19  ;;  %v817_v63 = vrot.slane %v1618_v36, %v1598_v24  ;;  %v829_v52 = vrot.slane %v805_v48, %v1584_v19 }
  0x61   : > { %v781_v5 = vmul.f32 %v1376_v4, %v716_v61  ;;  %v821_v31 = vrot.slane %v1618_v36, %v1600_v25  ;;  %v833_v32 = vrot.slane %v805_v48, %v1598_v24  ;;  %v870_v37 = vrot.slane %v1596_v21, %v1584_v19 }
  0x62   : > { %v1378_v3 = vpop.eup %1377  ;;  %v837_v39 = vrot.slane %v805_v48, %v1600_v25  ;;  %v878_v44 = vrot.slane %v1596_v21, %v1600_v25 }
  0x63   : > { %v1380_v11 = vpop.eup %1379  ;;  %v789_v26 = vmul.f32 %v1682_v13, %v781_v5  ;;  %v782_v12 = vmul.f32 %v1378_v3, %v717_v57  ;;  %v866_v13 = vrot.slane %v1596_v21, %v1582_v18 }
  0x64   : > { %v783_v9 = vmul.f32 %v1380_v11, %v718_v58 }
  0x65   : > { %v1382_v17 = vpop.eup %1381  ;;  %v793_v0 = vadd.f32 %v789_v26, %v785_v2  ;;  %v790_v28 = vmul.f32 %v1689_v16, %v782_v12 }
  0x66   : > { %v791_v1 = vmul.f32 %v1694_v22, %v783_v9  ;;  %v784_v29 = vmul.f32 %v1382_v17, %v719_v51  ;;  %v874_v22 = vrot.slane %v1596_v21, %v1598_v24 }
  0x67   : > { %v846_v33 = vmul.f32 %v809_v10, %v793_v0  ;;  %v794_v34 = vadd.f32 %v790_v28, %v786_v6  ;;  %v850_v35 = vmul.f32 %v825_v14, %v793_v0 }
  0x68   : > { %v795_v16 = vadd.f32 %v791_v1, %v787_v8  ;;  %v792_v38 = vmul.f32 %v1700_v30, %v784_v29 }
  0x69   : > { %854 = vst [vmem:[#allocation4] sm:$0xff] %v846_v33  ;;  %v847_v27 = vmul.f32 %v813_v23, %v794_v34  ;;  %858 = vst [vmem:[#allocation4 + $0x20] sm:$0xff] %v850_v35  ;;  %v851_v36 = vmul.f32 %v829_v52, %v794_v34  ;;  %v883_v7 = vmul.f32 %v866_v13, %v846_v33 }
  0x6a   : > { %v887_v40 = vmul.f32 %v866_v13, %v850_v35  ;;  %v848_v41 = vmul.f32 %v817_v63, %v795_v16  ;;  %v796_v42 = vadd.f32 %v792_v38, %v788_v15  ;;  %v852_v43 = vmul.f32 %v833_v32, %v795_v16 }
  0x6b   : > { %855 = vst [vmem:[#allocation4 + $0x8] sm:$0xff] %v847_v27  ;;  %859 = vst [vmem:[#allocation4 + $0x28] sm:$0xff] %v851_v36  ;;  %v891_v30 = vadd.f32 1.0, %v883_v7  ;;  %v884_v45 = vmul.f32 %v870_v37, %v847_v27  ;;  %v888_v49 = vmul.f32 %v870_v37, %v851_v36 }
  0x6c   : > { %v895_v46 = vadd.f32 1.0, %v887_v40  ;;  %856 = vst [vmem:[#allocation4 + $0x10] sm:$0xff] %v848_v41  ;;  %v849_v50 = vmul.f32 %v821_v31, %v796_v42  ;;  %860 = vst [vmem:[#allocation4 + $0x30] sm:$0xff] %v852_v43  ;;  %v853_v53 = vmul.f32 %v837_v39, %v796_v42  ;;  %v885_v55 = vmul.f32 %v874_v22, %v848_v41 }
  0x6d   : > { %v889_v56 = vmul.f32 %v874_v22, %v852_v43  ;;  %899 = vst [vmem:[#allocation6] sm:$0xff] %v891_v30  ;;  %v892_v60 = vadd.f32 1.0, %v884_v45  ;;  %v896_v61 = vadd.f32 1.0, %v888_v49 }
  0x6e   : > { %903 = vst [vmem:[#allocation6 + $0x20] sm:$0xff] %v895_v46  ;;  %857 = vst [vmem:[#allocation4 + $0x18] sm:$0xff] %v849_v50  ;;  %v893_v47 = vadd.f32 1.0, %v885_v55  ;;  %v886_v21 = vmul.f32 %v878_v44, %v849_v50  ;;  %v890_v57 = vmul.f32 %v878_v44, %v853_v53 }
  0x6f   : > { %861 = vst [vmem:[#allocation4 + $0x38] sm:$0xff] %v853_v53  ;;  %v897_v54 = vadd.f32 1.0, %v889_v56  ;;  %900 = vst [vmem:[#allocation6 + $0x8] sm:$0xff] %v892_v60 }
  0x70   : > { %904 = vst [vmem:[#allocation6 + $0x28] sm:$0xff] %v896_v61  ;;  %901 = vst [vmem:[#allocation6 + $0x10] sm:$0xff] %v893_v47  ;;  %v894_v59 = vadd.f32 1.0, %v886_v21  ;;  %v898_v48 = vadd.f32 1.0, %v890_v57 }
  0x71   : > { %905 = vst [vmem:[#allocation6 + $0x30] sm:$0xff] %v897_v54 }
  0x72   : > { %902 = vst [vmem:[#allocation6 + $0x18] sm:$0xff] %v894_v59  ;;  %906 = vst [vmem:[#allocation6 + $0x38] sm:$0xff] %v898_v48 }
  0x73 PF: > { %v915_v4 = vld [vmem:[#allocation8] sm:$0xff]  ;;  %v931_v62 = vrot.slane %v1594_v20, %v1582_v18  ;;  %v935_v2 = vrot.slane %v1594_v20, %v1584_v19  ;;  %v939_v5 = vrot.slane %v1594_v20, %v1598_v24  ;;  %v908_v3 = vld [vmem:[#allocation7 + $0x8] sm:$0xff]  ;;  %v943_v10 = vrot.slane %v1594_v20, %v1600_v25  ;;  %v909_v8 = vld [vmem:[#allocation7 + $0x10] sm:$0xff]  ;;  %s1307_s19 = sshll.u32 (%p1536_p6), %s1421_s29, 4 }
  0x74   : > { %v907_v58 = vld [vmem:[#allocation7] sm:$0xff]  ;;  %v916_v6 = vld [vmem:[#allocation8 + $0x8] sm:$0xff]  ;;  %v917_v26 = vld [vmem:[#allocation8 + $0x10] sm:$0xff]  ;;  %v1442_v37 = vmov 0.0   ;;  %s1093_s13 = sadd.s32 (%p1536_p6), %s1307_s19, %s1557_s18 }
  0x75   : > { %v948_v51 = vmul.f32 %v931_v62, %v915_v4  ;;  %v949_v11 = vmul.f32 %v935_v2, %v916_v6  ;;  %v919_v12 = vld [vmem:[#allocation6] sm:$0xff]  ;;  %v950_v15 = vmul.f32 %v939_v5, %v917_v26  ;;  %v918_v18 = vld [vmem:[#allocation8 + $0x18] sm:$0xff]  ;;  %v912_v28 = vld [vmem:[#allocation7 + $0x28] sm:$0xff]  ;;  %s1308_s22 = sshll.u32 (%p1536_p6), %s1093_s13, 2 }
  0x76   : > { %v920_v14 = vld [vmem:[#allocation6 + $0x8] sm:$0xff]  ;;  %v910_v63 = vld [vmem:[#allocation7 + $0x18] sm:$0xff]  ;;  %v951_v17 = vmul.f32 %v943_v10, %v918_v18  ;;  %v911_v0 = vld [vmem:[#allocation7 + $0x20] sm:$0xff]  ;;  %s1095_s24 = scalar_lea.vmem (%p1536_p6), %s1851_s8, %s1308_s22 }
  0x77   : > { %v952_v23 = vadd.f32 %v948_v51, %v907_v58  ;;  %v953_v9 = vadd.f32 %v949_v11, %v908_v3  ;;  %v921_v19 = vld [vmem:[#allocation6 + $0x10] sm:$0xff]  ;;  %v954_v24 = vadd.f32 %v950_v15, %v909_v8  ;;  %v923_v33 = vld [vmem:[#allocation6 + $0x20] sm:$0xff]  ;;  %v924_v22 = vld [vmem:[#allocation6 + $0x28] sm:$0xff] }
  0x78   : > { %v955_v32 = vadd.f32 %v951_v17, %v910_v63  ;;  %v913_v27 = vld [vmem:[#allocation7 + $0x30] sm:$0xff]  ;;  %v914_v40 = vld [vmem:[#allocation7 + $0x38] sm:$0xff] }
  0x79   : > { %v956_v52 = vmul.f32 %v952_v23, %v931_v62  ;;  %v964_v13 = vsub.f32 %v952_v23, %v919_v12  ;;  %v957_v1 = vmul.f32 %v953_v9, %v935_v2  ;;  %v965_v20 = vsub.f32 %v953_v9, %v920_v14  ;;  %v922_v31 = vld [vmem:[#allocation6 + $0x18] sm:$0xff]  ;;  %v925_v44 = vld [vmem:[#allocation6 + $0x30] sm:$0xff] }
  0x7a   : > { %v958_v25 = vmul.f32 %v954_v24, %v939_v5  ;;  %v966_v29 = vsub.f32 %v954_v24, %v921_v19  ;;  %v959_v39 = vmul.f32 %v955_v32, %v943_v10  ;;  %v967_v7 = vsub.f32 %v955_v32, %v922_v31  ;;  %v926_v49 = vld [vmem:[#allocation6 + $0x38] sm:$0xff] }
  0x7b   : > { %vm968_vm4 = vcmp.gt.f32.partialorder %v964_v13, 0.0  ;;  %vm969_vm5 = vcmp.gt.f32.partialorder %v965_v20, 0.0  ;;  %v960_v34 = vadd.f32 %v956_v52, %v911_v0  ;;  %v961_v35 = vadd.f32 %v957_v1, %v912_v28 }
  0x7c   : > { %v1293_v16 = vsel %vm968_vm4, 1.0, %v1442_v37  ;;  %v1294_v38 = vsel %vm969_vm5, 1.0, %v1442_v37  ;;  %vm970_vm6 = vcmp.gt.f32.partialorder %v966_v29, 0.0  ;;  %vm971_vm10 = vcmp.gt.f32.partialorder %v967_v7, 0.0 }
  0x7d   : > { %vm1012_vm7 = vcmp.eq.f32.partialorder %v1293_v16, 1.0  ;;  %1036 = vst [vmem:[#allocation3] sm:$0xff] %v1293_v16  ;;  %vm1013_vm8 = vcmp.eq.f32.partialorder %v1294_v38, 1.0  ;;  %1037 = vst [vmem:[#allocation3 + $0x8] sm:$0xff] %v1294_v38  ;;  %v1295_v36 = vsel %vm970_vm6, 1.0, %v1442_v37  ;;  %v988_v43 = vsub.f32 %v960_v34, %v923_v33 }
  0x7e   : > { %1044 = vst [vmem:[#allocation5] sm:$0xff] %v960_v34  ;;  %1045 = vst [vmem:[#allocation5 + $0x8] sm:$0xff] %v961_v35  ;;  %v1020_v41 = vsel %vm1012_vm7, 1.0, %v1442_v37  ;;  %v1021_v42 = vsel %vm1013_vm8, 1.0, %v1442_v37  ;;  %vm1014_vm9 = vcmp.eq.f32.partialorder %v1295_v36, 1.0  ;;  %v989_v45 = vsub.f32 %v961_v35, %v924_v22 }
  0x7f   : > { %1038 = vst [vmem:[#allocation3 + $0x10] sm:$0xff] %v1295_v36  ;;  %1028 = vst [vmem:[#allocation2] sm:$0xff] %v1020_v41  ;;  %v1022_v30 = vsel %vm1014_vm9, 1.0, %v1442_v37  ;;  %v962_v46 = vadd.f32 %v958_v25, %v913_v27  ;;  %v1296_v50 = vsel %vm971_vm10, 1.0, %v1442_v37  ;;  %vm992_vm11 = vcmp.gt.f32.partialorder %v988_v43, 0.0 }
  0x80   : > { %1029 = vst [vmem:[#allocation2 + $0x8] sm:$0xff] %v1021_v42  ;;  %1030 = vst [vmem:[#allocation2 + $0x10] sm:$0xff] %v1022_v30  ;;  %v963_v53 = vadd.f32 %v959_v39, %v914_v40  ;;  %v1311_v55 = vpack.c.bf16 %v1021_v42, %v1020_v41  ;;  %vm1015_vm12 = vcmp.eq.f32.partialorder %v1296_v50, 1.0  ;;  %v1297_v56 = vsel %vm992_vm11, 1.0, %v1442_v37 }
  0x81   : > { %1039 = vst [vmem:[#allocation3 + $0x18] sm:$0xff] %v1296_v50  ;;  %vm993_vm13 = vcmp.gt.f32.partialorder %v989_v45, 0.0  ;;  %v990_v60 = vsub.f32 %v962_v46, %v925_v44  ;;  %1046 = vst [vmem:[#allocation5 + $0x10] sm:$0xff] %v962_v46  ;;  %v1023_v61 = vsel %vm1015_vm12, 1.0, %v1442_v37  ;;  %v1004_v47 = vadd.f32 %v1297_v56, %v1293_v16 }
  0x82   : > { %v1298_v21 = vsel %vm993_vm13, 1.0, %v1442_v37  ;;  %v991_v54 = vsub.f32 %v963_v53, %v926_v49  ;;  %1047 = vst [vmem:[#allocation5 + $0x18] sm:$0xff] %v963_v53  ;;  %1080 = vst [vmem:[%s1637_s21] sm:$0xff] %v1311_v55  ;;  %v1312_v59 = vpack.c.bf16 %v1023_v61, %v1022_v30 }
  0x83   : > { %1031 = vst [vmem:[#allocation2 + $0x18] sm:$0xff] %v1023_v61  ;;  %v1005_v57 = vadd.f32 %v1298_v21, %v1294_v38  ;;  %vm994_vm14 = vcmp.gt.f32.partialorder %v990_v60, 0.0  ;;  %v1008_v48 = vadd.f32 %v1293_v16, %v1004_v47 }
  0x84   : > { %v1299_v4 = vsel %vm994_vm14, 1.0, %v1442_v37  ;;  %vm995_vm15 = vcmp.gt.f32.partialorder %v991_v54, 0.0  ;;  %1081 = vst [vmem:[%s1637_s21 + $0x8] sm:$0xff] %v1312_v59 }
  0x85   : > { %v1009_v62 = vadd.f32 %v1294_v38, %v1005_v57  ;;  %v1006_v2 = vadd.f32 %v1299_v4, %v1295_v36  ;;  %v1300_v5 = vsel %vm995_vm15, 1.0, %v1442_v37  ;;  %vm1016_vm0 = vcmp.eq.f32.partialorder %v1008_v48, 1.0  ;;  %1040 = vst [vmem:[#allocation3 + $0x20] sm:$0xff] %v1008_v48 }
  0x86   : > { %v1007_v58 = vadd.f32 %v1300_v5, %v1296_v50  ;;  %v1024_v3 = vsel %vm1016_vm0, 1.0, %v1442_v37 }
  0x87   : > { %vm1017_vm1 = vcmp.eq.f32.partialorder %v1009_v62, 1.0  ;;  %1041 = vst [vmem:[#allocation3 + $0x28] sm:$0xff] %v1009_v62  ;;  %v1010_v6 = vadd.f32 %v1295_v36, %v1006_v2  ;;  %1032 = vst [vmem:[#allocation2 + $0x20] sm:$0xff] %v1024_v3 }
  0x88   : > { %v1025_v10 = vsel %vm1017_vm1, 1.0, %v1442_v37  ;;  %v1011_v51 = vadd.f32 %v1296_v50, %v1007_v58  ;;  %1090 = sbr.rel (!%p1536_p6) target bundleno = 151 (0x97), region = 87 }
  0x89   : > { %1033 = vst [vmem:[#allocation2 + $0x28] sm:$0xff] %v1025_v10  ;;  %vm1018_vm2 = vcmp.eq.f32.partialorder %v1010_v6, 1.0  ;;  %1042 = vst [vmem:[#allocation3 + $0x30] sm:$0xff] %v1010_v6  ;;  %v1313_v11 = vpack.c.bf16 %v1025_v10, %v1024_v3  ;;  %v1108_v14 = vld [vmem:[%s1637_s21] sm:$0xff] (%p1536_p6) }
  0x8a   : > { %v1026_v8 = vsel %vm1018_vm2, 1.0, %v1442_v37  ;;  %vm1019_vm3 = vcmp.eq.f32.partialorder %v1011_v51, 1.0  ;;  %1043 = vst [vmem:[#allocation3 + $0x38] sm:$0xff] %v1011_v51  ;;  %1109 = vst [vmem:[%s1095_s24] sm:$0xff] (%p1536_p6), %v1108_v14 }
  0x8b   : > { %1034 = vst [vmem:[#allocation2 + $0x30] sm:$0xff] %v1026_v8  ;;  %v1027_v26 = vsel %vm1019_vm3, 1.0, %v1442_v37  ;;  %1082 = vst [vmem:[%s1637_s21 + $0x10] sm:$0xff] %v1313_v11  ;;  %v1110_v15 = vld [vmem:[%s1637_s21 + $0x8] sm:$0xff] (%p1536_p6) }
  0x8c   : > { %1035 = vst [vmem:[#allocation2 + $0x38] sm:$0xff] %v1027_v26  ;;  %v1314_v12 = vpack.c.bf16 %v1027_v26, %v1026_v8  ;;  %1111 = vst [vmem:[%s1095_s24 + $0x8] sm:$0xff] (%p1536_p6), %v1110_v15 }
  0x8e   : > { %1083 = vst [vmem:[%s1637_s21 + $0x18] sm:$0xff] %v1314_v12 }
  0x92   : > { %v1112_v18 = vld [vmem:[%s1637_s21 + $0x10] sm:$0xff] }
  0x93   : > { %1113 = vst [vmem:[%s1095_s24 + $0x20] sm:$0xff] %v1112_v18 }
  0x95   : > { %v1114_v23 = vld [vmem:[%s1637_s21 + $0x18] sm:$0xff] }
  0x96   : > { %1115 = vst [vmem:[%s1095_s24 + $0x28] sm:$0xff] %v1114_v23 }
  0x97 PF: > { %s18_s11 = sadd.s32 1, %s1437_s11   ;;  %s1857_s16 = sld [smem:[#allocation11_spill]] }
  0x98   : > { %p15_p1 = scmp.ge.s32.totalorder %s18_s11, 10   ;;  %s1858_s27 = smov %s1417_s28 }
  0x99   : > { %s1859_s28 = smov %s1544_s20  ;;  %s1860_s29 = smov %s1429_s9 }
  0x9a   : > { %s1861_s30 = smov %s1433_s10  ;;  %s1862_s9 = smov %s1865_s12 }
  0x9b   :  { %17 = sbr.rel (!%p15_p1) target bundleno = 6 (0x6), region = 162 }
  0x9d   : > { %s1863_s10 = smov %s1857_s16 }

// kernel: cifar10net_forward.21
= control target key start
LH: loop header
LB: loop body
LE: loop exit
PB: predicated region body
PF: predicated region fallthrough
CT: control target
= control target key end

     0   :  { %s1467_s12 = smov 0   ;;  %s1469_s13 = smov 0   ;;  %s1604_s0 = inlined_call_operand.vmem [shape: bf16[1024,128], index: 0, kind: input, shape index: {}]   ;;  %s1605_s1 = inlined_call_operand.vmem [shape: bf16[128,128], index: 1, kind: input, shape index: {}]   ;;  %s1606_s2 = inlined_call_operand.vmem [shape: f32[1,128], index: 2, kind: input, shape index: {}]   ;;  %s1607_s3 = inlined_call_operand.vmem [shape: bf16[1024,128], index: 3, kind: output, shape index: {}]  }
   0x1   :  { %s1471_s14 = smov 0  }
   0x2 LB: > { %s32_s15 = sadd.s32 1, %s1441_s13  ;;  %p1096_p0 = scmp.ge.s32.totalorder %s1445_s14, 1  ;;  %s1445_s14 = sphi %s1471_s14, %s13_s14   ;;  %s1441_s13 = sphi %s1469_s13, %s1609_s13   ;;  %s1437_s12 = sphi %s1467_s12, %s1608_s12  }
   0x3   : > { %p34_p1 = scmp.ge.s32.totalorder %s32_s15, 4  ;;  %p188_p2 = scmp.lt.s32.totalorder %s1445_s14, 5 }
   0x5   : > { %s1611_s15 = smov (%p34_p1, %s32_s15), 0  ;;  %p189_p3 = pnand %p1096_p0, %p188_p2 }
   0x6   : > { %v1399_v0 = vld [vmem:[%s1605_s1] sm:$0xff] (!%p189_p3)   ;;  %s1097_s18 = sshll.u32 (!%p189_p3), %s1437_s12, 5  ;;  %v1400_v1 = vld [vmem:[%s1605_s1 + $0x8] sm:$0xff] (!%p189_p3)   ;;  %v1401_v2 = vld [vmem:[%s1605_s1 + $0x10] sm:$0xff] (!%p189_p3)  }
   0x7   : > { %192 = sbr.rel (%p189_p3) target bundleno = 283 (0x11b), region = 32  ;;  %p230_p4 = scmp.lt.s32.totalorder (!%p189_p3), %s1097_s18, 127  ;;  %1311 = vmatprep.subr.bf16.mxu0 (!%p189_p3), %v1399_v0  ;;  %1359 = vmatprep.subr.bf16.mxu1 (!%p189_p3), %v1399_v0  ;;  %v1402_v3 = vld [vmem:[%s1605_s1 + $0x18] sm:$0xff] (!%p189_p3)   ;;  %v1403_v6 = vld [vmem:[%s1605_s1 + $0x20] sm:$0xff] (!%p189_p3)   ;;  %v1404_v7 = vld [vmem:[%s1605_s1 + $0x28] sm:$0xff] (!%p189_p3)  }
   0x8   : > { %1312 = vmatpush3.bf16.msra.mxu0 (!%p189_p3), %v1399_v0  ;;  %1367 = vmatpush3.bf16.msra.mxu1 (!%p189_p3), %v1399_v0  ;;  %v1405_v8 = vld [vmem:[%s1605_s1 + $0x30] sm:$0xff] (!%p189_p3)   ;;  %v1406_v9 = vld [vmem:[%s1605_s1 + $0x38] sm:$0xff] (!%p189_p3)   ;;  %v1538_v25 = vld [vmem:[%s1606_s2] ss:$0 sm:$0xff] (!%p189_p3) }
   0x9   : > { %1313 = vmatprep.subr.bf16.mxu0 (!%p189_p3), %v1400_v1  ;;  %1360 = vmatprep.subr.bf16.mxu1 (!%p189_p3), %v1400_v1 }
   0xc   : > { %1314 = vmatpush3.bf16.msra.mxu0 (!%p189_p3), %v1400_v1  ;;  %1368 = vmatpush3.bf16.msra.mxu1 (!%p189_p3), %v1400_v1 }
   0xd   : > { %1315 = vmatprep.subr.bf16.mxu0 (!%p189_p3), %v1401_v2  ;;  %1361 = vmatprep.subr.bf16.mxu1 (!%p189_p3), %v1401_v2 }
   0xe   : > { %s1613_s18 = smov (!%p230_p4, %s1097_s18), 127 }
   0xf   : > { %s1098_s23 = sshll.u32 %s1613_s18, 2 }
  0x10   : > { %s1502_s26 = scalar_lea.vmem %s1604_s0, %s1098_s23  ;;  %1316 = vmatpush3.bf16.msra.mxu0 %v1401_v2  ;;  %1369 = vmatpush3.bf16.msra.mxu1 %v1401_v2  ;;  %s1551_s17 = scalar_lea.vmem %s1607_s3, %s1098_s23 }
  0x11   : > { %v1407_v4 = vld [vmem:[%s1502_s26] sm:$0xff]   ;;  %1317 = vmatprep.subr.bf16.mxu0 %v1402_v3  ;;  %1362 = vmatprep.subr.bf16.mxu1 %v1402_v3  ;;  %v1409_v10 = vld [vmem:[%s1502_s26 + $0x8] sm:$0xff]   ;;  %v1411_v12 = vld [vmem:[%s1502_s26 + $0x10] sm:$0xff]  }
  0x12   : > { %v1408_v5 = vld [vmem:[%s1502_s26 + $0x40] sm:$0xff]   ;;  %1327 = vmatprep.mubr.bf16.mxu0 %v1407_v4  ;;  %v1410_v11 = vld [vmem:[%s1502_s26 + $0x48] sm:$0xff]   ;;  %v1412_v13 = vld [vmem:[%s1502_s26 + $0x50] sm:$0xff]  }
  0x13   : > { %1343 = vmatprep.mubr.bf16.mxu1 %v1408_v5  ;;  %v1413_v14 = vld [vmem:[%s1502_s26 + $0x18] sm:$0xff]   ;;  %v1415_v16 = vld [vmem:[%s1502_s26 + $0x20] sm:$0xff]   ;;  %v1417_v18 = vld [vmem:[%s1502_s26 + $0x28] sm:$0xff]  }
  0x14   : > { %1318 = vmatpush3.bf16.msra.mxu0 %v1402_v3  ;;  %1370 = vmatpush3.bf16.msra.mxu1 %v1402_v3  ;;  %v1414_v15 = vld [vmem:[%s1502_s26 + $0x58] sm:$0xff]   ;;  %v1416_v17 = vld [vmem:[%s1502_s26 + $0x60] sm:$0xff]   ;;  %v1418_v19 = vld [vmem:[%s1502_s26 + $0x68] sm:$0xff]  }
  0x15   : > { %1319 = vmatprep.subr.bf16.mxu0 %v1403_v6  ;;  %1363 = vmatprep.subr.bf16.mxu1 %v1403_v6  ;;  %v1419_v20 = vld [vmem:[%s1502_s26 + $0x30] sm:$0xff]   ;;  %v1421_v22 = vld [vmem:[%s1502_s26 + $0x38] sm:$0xff]  }
  0x16   : > { %v1420_v21 = vld [vmem:[%s1502_s26 + $0x70] sm:$0xff]   ;;  %v1422_v23 = vld [vmem:[%s1502_s26 + $0x78] sm:$0xff]  }
  0x18   : > { %1320 = vmatpush3.bf16.msra.mxu0 %v1403_v6  ;;  %1371 = vmatpush3.bf16.msra.mxu1 %v1403_v6 }
  0x19   : > { %1321 = vmatprep.subr.bf16.mxu0 %v1404_v7  ;;  %1364 = vmatprep.subr.bf16.mxu1 %v1404_v7 }
  0x1c   : > { %1322 = vmatpush3.bf16.msra.mxu0 %v1404_v7  ;;  %1372 = vmatpush3.bf16.msra.mxu1 %v1404_v7 }
  0x1d   : > { %1323 = vmatprep.subr.bf16.mxu0 %v1405_v8  ;;  %1365 = vmatprep.subr.bf16.mxu1 %v1405_v8 }
  0x20   : > { %1324 = vmatpush3.bf16.msra.mxu0 %v1405_v8  ;;  %1373 = vmatpush3.bf16.msra.mxu1 %v1405_v8 }
  0x21   : > { %1325 = vmatprep.subr.bf16.mxu0 %v1406_v9  ;;  %1366 = vmatprep.subr.bf16.mxu1 %v1406_v9 }
  0x24   : > { %1326 = vmatpush3.bf16.msra.mxu0 %v1406_v9  ;;  %1374 = vmatpush3.bf16.msra.mxu1 %v1406_v9 }
  0x27   : > { %1328 = vmatmul.mubr.bf16.vlgmr.msra.gmra.mrb[0].mxu0 %v1409_v10  ;;  %1344 = vmatmul.mubr.bf16.vlgmr.msra.gmra.mrb[0].mxu1 %v1410_v11 }
  0x28   : > { %1331 = vmatprep.mubr.bf16.mxu0 %v1411_v12  ;;  %1347 = vmatprep.mubr.bf16.mxu1 %v1412_v13 }
  0x2f   : > { %1332 = vmatmul.mubr.bf16.gmra.mrb[4].mxu0 %v1413_v14  ;;  %1348 = vmatmul.mubr.bf16.gmra.mrb[4].mxu1 %v1414_v15 }
  0x30   : > { %1335 = vmatprep.mubr.bf16.mxu0 %v1415_v16  ;;  %1351 = vmatprep.mubr.bf16.mxu1 %v1416_v17 }
  0x37   : > { %1336 = vmatmul.mubr.bf16.gmra.mrb[8].mxu0 %v1417_v18  ;;  %1352 = vmatmul.mubr.bf16.gmra.mrb[8].mxu1 %v1418_v19 }
  0x38   : > { %1339 = vmatprep.mubr.bf16.mxu0 %v1419_v20  ;;  %1355 = vmatprep.mubr.bf16.mxu1 %v1420_v21 }
  0x3f   : > { %1340 = vmatmul.mubr.bf16.gmra.mrb[12].mxu0 %v1421_v22  ;;  %1356 = vmatmul.mubr.bf16.gmra.mrb[12].mxu1 %v1422_v23 }
  0xfa   : > { %v1329_v24 = vpop.f32.mrb[0].mxu0  ;;  %v1345_v26 = vpop.f32.mrb[0].mxu1 }
  0xfb   : > { %v554_v27 = vpop.f32.mrb[1].mxu0  ;;  %v618_v28 = vpop.f32.mrb[1].mxu1  ;;  %v789_v31 = vadd.f32 %v1329_v24, %v1538_v25  ;;  %v805_v32 = vadd.f32 %v1345_v26, %v1538_v25 }
  0xfc   : > { %v1330_v29 = vpop.f32.mrb[2].mxu0  ;;  %v1346_v30 = vpop.f32.mrb[2].mxu1  ;;  %v787_v37 = vadd.f32 %v1538_v25, %v554_v27  ;;  %v803_v38 = vadd.f32 %v1538_v25, %v618_v28 }
  0xfd   : > { %v790_v33 = vadd.f32 %v1330_v29, %v1538_v25  ;;  %v806_v34 = vadd.f32 %v1346_v30, %v1538_v25  ;;  %v557_v35 = vpop.f32.mrb[3].mxu0  ;;  %v621_v36 = vpop.f32.mrb[3].mxu1 }
  0xfe   : > { %v788_v39 = vadd.f32 %v1538_v25, %v557_v35  ;;  %v804_v40 = vadd.f32 %v1538_v25, %v621_v36 }
  0xff   : > { %v1200_v41 = vpack.c.bf16 %v790_v33, %v789_v31  ;;  %v1240_v42 = vpack.c.bf16 %v806_v34, %v805_v32 }
 0x100   : > { %v1195_v43 = vpack.c.bf16 %v788_v39, %v787_v37  ;;  %v1235_v44 = vpack.c.bf16 %v804_v40, %v803_v38 }
 0x101   : > { %1272 = vst [vmem:[%s1551_s17 + $0x8] sm:$0xff] %v1200_v41   ;;  %1280 = vst [vmem:[%s1551_s17 + $0x48] sm:$0xff] %v1240_v42  }
 0x102   : > { %1196 = vst [vmem:[%s1551_s17] sm:$0xff] %v1195_v43   ;;  %1279 = vst [vmem:[%s1551_s17 + $0x40] sm:$0xff] %v1235_v44   ;;  %v1333_v45 = vpop.f32.mrb[4].mxu0  ;;  %v1349_v46 = vpop.f32.mrb[4].mxu1 }
 0x103   : > { %v570_v47 = vpop.f32.mrb[5].mxu0  ;;  %v634_v48 = vpop.f32.mrb[5].mxu1  ;;  %v793_v51 = vadd.f32 %v1333_v45, %v1538_v25  ;;  %v809_v52 = vadd.f32 %v1349_v46, %v1538_v25 }
 0x104   : > { %v1334_v49 = vpop.f32.mrb[6].mxu0  ;;  %v1350_v50 = vpop.f32.mrb[6].mxu1  ;;  %v791_v57 = vadd.f32 %v1538_v25, %v570_v47  ;;  %v807_v58 = vadd.f32 %v1538_v25, %v634_v48 }
 0x105   : > { %v794_v53 = vadd.f32 %v1334_v49, %v1538_v25  ;;  %v810_v54 = vadd.f32 %v1350_v50, %v1538_v25  ;;  %v573_v55 = vpop.f32.mrb[7].mxu0  ;;  %v637_v56 = vpop.f32.mrb[7].mxu1 }
 0x106   : > { %v792_v59 = vadd.f32 %v1538_v25, %v573_v55  ;;  %v808_v60 = vadd.f32 %v1538_v25, %v637_v56 }
 0x107   : > { %v1210_v61 = vpack.c.bf16 %v794_v53, %v793_v51  ;;  %v1250_v62 = vpack.c.bf16 %v810_v54, %v809_v52 }
 0x108   : > { %v1205_v63 = vpack.c.bf16 %v792_v59, %v791_v57  ;;  %v1245_v0 = vpack.c.bf16 %v808_v60, %v807_v58 }
 0x109   : > { %1274 = vst [vmem:[%s1551_s17 + $0x18] sm:$0xff] %v1210_v61   ;;  %1282 = vst [vmem:[%s1551_s17 + $0x58] sm:$0xff] %v1250_v62  }
 0x10a   : > { %1273 = vst [vmem:[%s1551_s17 + $0x10] sm:$0xff] %v1205_v63   ;;  %1281 = vst [vmem:[%s1551_s17 + $0x50] sm:$0xff] %v1245_v0   ;;  %v1337_v1 = vpop.f32.mrb[8].mxu0  ;;  %v1353_v2 = vpop.f32.mrb[8].mxu1 }
 0x10b   : > { %v586_v3 = vpop.f32.mrb[9].mxu0  ;;  %v650_v4 = vpop.f32.mrb[9].mxu1  ;;  %v797_v7 = vadd.f32 %v1337_v1, %v1538_v25  ;;  %v813_v8 = vadd.f32 %v1353_v2, %v1538_v25 }
 0x10c   : > { %v1338_v5 = vpop.f32.mrb[10].mxu0  ;;  %v1354_v6 = vpop.f32.mrb[10].mxu1  ;;  %v795_v13 = vadd.f32 %v1538_v25, %v586_v3  ;;  %v811_v14 = vadd.f32 %v1538_v25, %v650_v4 }
 0x10d   : > { %v798_v9 = vadd.f32 %v1338_v5, %v1538_v25  ;;  %v814_v10 = vadd.f32 %v1354_v6, %v1538_v25  ;;  %v589_v11 = vpop.f32.mrb[11].mxu0  ;;  %v653_v12 = vpop.f32.mrb[11].mxu1 }
 0x10e   : > { %v796_v15 = vadd.f32 %v1538_v25, %v589_v11  ;;  %v812_v16 = vadd.f32 %v1538_v25, %v653_v12 }
 0x10f   : > { %v1220_v17 = vpack.c.bf16 %v798_v9, %v797_v7  ;;  %v1260_v18 = vpack.c.bf16 %v814_v10, %v813_v8 }
 0x110   : > { %v1215_v19 = vpack.c.bf16 %v796_v15, %v795_v13  ;;  %v1255_v20 = vpack.c.bf16 %v812_v16, %v811_v14 }
 0x111   : > { %1276 = vst [vmem:[%s1551_s17 + $0x28] sm:$0xff] %v1220_v17   ;;  %1284 = vst [vmem:[%s1551_s17 + $0x68] sm:$0xff] %v1260_v18  }
 0x112   : > { %1275 = vst [vmem:[%s1551_s17 + $0x20] sm:$0xff] %v1215_v19   ;;  %1283 = vst [vmem:[%s1551_s17 + $0x60] sm:$0xff] %v1255_v20   ;;  %v1341_v21 = vpop.f32.mrb[12].mxu0  ;;  %v1357_v22 = vpop.f32.mrb[12].mxu1 }
 0x113   : > { %v602_v23 = vpop.f32.mrb[13].mxu0  ;;  %v666_v24 = vpop.f32.mrb[13].mxu1  ;;  %v801_v28 = vadd.f32 %v1341_v21, %v1538_v25  ;;  %v817_v29 = vadd.f32 %v1357_v22, %v1538_v25 }
 0x114   : > { %v1342_v26 = vpop.f32.mrb[14].mxu0  ;;  %v1358_v27 = vpop.f32.mrb[14].mxu1  ;;  %v799_v34 = vadd.f32 %v1538_v25, %v602_v23  ;;  %v815_v35 = vadd.f32 %v1538_v25, %v666_v24 }
 0x115   : > { %v802_v30 = vadd.f32 %v1342_v26, %v1538_v25  ;;  %v818_v31 = vadd.f32 %v1358_v27, %v1538_v25  ;;  %v605_v32 = vpop.f32.mrb[15].mxu0  ;;  %v669_v33 = vpop.f32.mrb[15].mxu1 }
 0x116   : > { %v800_v36 = vadd.f32 %v1538_v25, %v605_v32  ;;  %v816_v37 = vadd.f32 %v1538_v25, %v669_v33 }
 0x117   : > { %v1230_v38 = vpack.c.bf16 %v802_v30, %v801_v28  ;;  %v1270_v39 = vpack.c.bf16 %v818_v31, %v817_v29 }
 0x118   : > { %v1225_v40 = vpack.c.bf16 %v800_v36, %v799_v34  ;;  %v1265_v41 = vpack.c.bf16 %v816_v37, %v815_v35 }
 0x119   : > { %1278 = vst [vmem:[%s1551_s17 + $0x38] sm:$0xff] %v1230_v38   ;;  %1286 = vst [vmem:[%s1551_s17 + $0x78] sm:$0xff] %v1270_v39  }
 0x11a   : > { %1277 = vst [vmem:[%s1551_s17 + $0x30] sm:$0xff] %v1225_v40   ;;  %1285 = vst [vmem:[%s1551_s17 + $0x70] sm:$0xff] %v1265_v41  }
 0x11b PF: > { %s13_s14 = sadd.s32 1, %s1445_s14   ;;  %s1608_s12 = smov %s1441_s13 }
 0x11c   : > { %p10_p5 = scmp.ge.s32.totalorder %s13_s14, 6   ;;  %s1609_s13 = smov %s1611_s15 }
 0x11e   :  { %12 = sbr.rel (!%p10_p5) target bundleno = 2 (0x2), region = 76 }

// kernel: tile.93
= control target key start
LH: loop header
LB: loop body
LE: loop exit
PB: predicated region body
PF: predicated region fallthrough
CT: control target
= control target key end

     0   :  { %s64_s0 = inlined_call_operand.vmem [shape: f32[4], index: 0, kind: input, shape index: {}]   ;;  %s65_s1 = inlined_call_operand.vmem [shape: f32[64,4], index: 1, kind: output, shape index: {}]  }
   0x1   :  { %v4_v0 = vld [vmem:[%s64_s0] ss:$0 sm:$0xff] }
   0x2   :  { %5 = vst [vmem:[%s65_s1] sm:$0xff] %v4_v0  ;;  %20 = vst [vmem:[%s65_s1 + $0x8] sm:$0xff] %v4_v0 }
   0x3   :  { %21 = vst [vmem:[%s65_s1 + $0x10] sm:$0xff] %v4_v0  ;;  %22 = vst [vmem:[%s65_s1 + $0x18] sm:$0xff] %v4_v0 }
   0x4   :  { %23 = vst [vmem:[%s65_s1 + $0x20] sm:$0xff] %v4_v0  ;;  %24 = vst [vmem:[%s65_s1 + $0x28] sm:$0xff] %v4_v0 }
   0x5   :  { %25 = vst [vmem:[%s65_s1 + $0x30] sm:$0xff] %v4_v0  ;;  %26 = vst [vmem:[%s65_s1 + $0x38] sm:$0xff] %v4_v0 }

// kernel: cifar10net_forward.22
= control target key start
LH: loop header
LB: loop body
LE: loop exit
PB: predicated region body
PF: predicated region fallthrough
CT: control target
= control target key end

     0   :  { %s1184_s0 = inlined_call_operand.vmem [shape: bf16[4,2,8,256], index: 0, kind: input, shape index: {}]   ;;  %s1185_s1 = inlined_call_operand.vmem [shape: f32[1,256], index: 1, kind: input, shape index: {}]   ;;  %s1186_s2 = inlined_call_operand.vmem [shape: f32[1,256], index: 2, kind: input, shape index: {}]   ;;  %s1187_s3 = inlined_call_operand.vmem [shape: f32[1,256], index: 3, kind: input, shape index: {}]   ;;  %s1188_s4 = inlined_call_operand.vmem [shape: f32[1,256], index: 4, kind: input, shape index: {}]   ;;  %s1189_s5 = inlined_call_operand.vmem [shape: f32[1,256], index: 5, kind: input, shape index: {}]   ;;  %s1190_s6 = inlined_call_operand.vmem [shape: f32[1,256], index: 6, kind: input, shape index: {}]   ;;  %s1191_s7 = inlined_call_operand.vmem [shape: f32[2,256], index: 7, kind: input, shape index: {}]   ;;  %s1192_s8 = inlined_call_operand.vmem [shape: bf16[4,2,8,256], index: 8, kind: output, shape index: {}]  }
   0x1   :  { %1197 = sst [smem:[#allocation15_spill]] %s1184_s0 }
   0x2   :  { %1198 = sst [smem:[#allocation16_spill]] %s1185_s1 }
   0x3   :  { %s1045_s27 = smov 0   ;;  %s1047_s28 = smov 0  }
   0x4   :  { %s1049_s29 = smov 0   ;;  %s1051_s30 = smov 0  }
   0x5   :  { %s1053_s9 = smov 0   ;;  %s1055_s10 = smov 0  }
   0x6   :  { %s1057_s11 = smov 0  }
   0x7 LB: > { %1199 = sst [smem:[#allocation11_spill]] %s985_s9  ;;  %s27_s12 = sadd.s32 1, %s985_s9  ;;  %s993_s11 = sphi %s1057_s11, %s18_s11   ;;  %s989_s10 = sphi %s1055_s10, %s1209_s10   ;;  %s985_s9 = sphi %s1053_s9, %s1208_s9   ;;  %s981_s30 = sphi %s1051_s30, %s1207_s30   ;;  %s977_s29 = sphi %s1049_s29, %s1206_s29   ;;  %s973_s28 = sphi %s1047_s28, %s1211_s28   ;;  %s969_s27 = sphi %s1045_s27, %s1210_s27  }
   0x8   : > { %1200 = sst [smem:[#allocation12_spill]] %s989_s10  ;;  %p28_p0 = scmp.ge.s32.totalorder %s27_s12, 4 }
   0x9   : > { %s30_s13 = sadd.s32 1, %s989_s10  ;;  %s839_s14 = sadd.s32 4294967295, %s993_s11  }
   0xa   : > { %p46_p1 = scmp.ne.s32.totalorder %s973_s28, %s969_s27  ;;  %s1213_s12 = smov (%p28_p0, %s27_s12), 0 }
   0xb   : > { %1201 = sst [smem:[#allocation13_spill]] %s1213_s12  ;;  %s1215_s13 = smov (!%p28_p0, %s30_s13), %s989_s10 }
   0xc   : > { %p47_p2 = scmp.eq.s32.totalorder %s993_s11, 0  ;;  %p32_p3 = scmp.ge.s32.totalorder %s1215_s13, 2 }
   0xd   : > { %p260_p4 = scmp.eq.s32.totalorder %s839_s14, 7  ;;  %s34_s15 = ssub.s32 %s985_s9, %s1213_s12 }
   0xe   : > { %p48_p5 = por %p47_p2, %p46_p1  ;;  %s1217_s13 = smov (%p32_p3, %s1215_s13), 0 }
   0xf   : > { %1202 = sst [smem:[#allocation14_spill]] %s1217_s13  ;;  %p1093_p6 = por %p260_p4, %p46_p1 }
  0x10   : > { %s35_s17 = ssub.s32 %s989_s10, %s1217_s13  ;;  %s39_s19 = sadd.s32 1, %s973_s28 }
  0x11   : > { %s36_s18 = sor.u32 %s35_s17, %s34_s15  ;;  %p842_p8 = scmp.ge.s32.totalorder %s993_s11, 8 }
  0x12   : > { %p37_p7 = scmp.eq.s32.totalorder %s36_s18, 0 }
  0x13   : > { %282 = sbr.rel (%p842_p8) target bundleno = 37 (0x25), region = 16 }
  0x14   : > { %s1101_s20 = scalar_select %p37_p7, %s973_s28, %s39_s19  }
  0x1a   : > { %285 = sbr.rel (!%p48_p5) target bundleno = 37 (0x25), region = 20  ;;  %s287_s21 = sand.u32 (%p48_p5), 1, %s973_s28  }
  0x1b   : > { %s844_s22 = sshll.u32 (%p48_p5), %s985_s9, 2  ;;  %s843_s23 = sshll.u32 (%p48_p5), %s287_s21, 3 }
  0x1c   : > { %s291_s24 = sadd.s32 (%p48_p5), %s989_s10, %s844_s22  ;;  %s1204_s0 = sld [smem:[#allocation15_spill]] (%p48_p5) }
  0x1d   : > { %s845_s25 = sshll.u32 (%p48_p5), %s291_s24, 2  ;;  %s289_s17 = scalar_lea.vmem (%p48_p5), [#allocation9], %s843_s23 }
  0x22   : > { %s293_s15 = scalar_lea.vmem %s1204_s0, %s845_s25 }
  0x23   : > { %v309_v0 = vld [vmem:[%s293_s15] sm:$0xf]  ;;  %v311_v1 = vld [vmem:[%s293_s15 + $0x8] sm:$0xf] }
  0x24   : > { %310 = vst [vmem:[%s289_s17] sm:$0xf] %v309_v0  ;;  %312 = vst [vmem:[%s289_s17 + $0x4] sm:$0xf] %v311_v1 }
  0x25 PF: > { %p846_p9 = scmp.ge.s32.totalorder %s993_s11, 1  ;;  %p381_p10 = scmp.lt.s32.totalorder %s993_s11, 9 }
  0x27   : > { %p382_p11 = pnand %p846_p9, %p381_p10 }
  0x28   : > { %s388_s18 = sand.u32 (!%p382_p11), 1, %s969_s27   ;;  %p442_p12 = scmp.lt.s32.totalorder (!%p382_p11), %s981_s30, 1 }
  0x29   : > { %385 = sbr.rel (%p382_p11) target bundleno = 125 (0x7d), region = 89  ;;  %s847_s19 = sshll.u32 (!%p382_p11), %s388_s18, 3 }
  0x2a   : > { %s390_s22 = scalar_lea.vmem (!%p382_p11), [#allocation9], %s847_s19  ;;  %s1205_s1 = sld [smem:[#allocation16_spill]] (!%p382_p11) }
  0x2b   : > { %v870_v2 = vld [vmem:[%s390_s22] sm:$0xff] (!%p382_p11)   ;;  %s1142_s10 = scalar_lea.vmem (!%p382_p11), [#allocation10], %s847_s19  ;;  %p852_p13 = scmp.ne.s32.totalorder (!%p382_p11), %s977_s29, 0 }
  0x2c   : > { %v871_v3 = vunpack.c.l.bf16 (!%p382_p11), %v870_v2  ;;  %v872_v4 = vunpack.c.h.bf16 (!%p382_p11), %v870_v2 }
  0x30   : > { %s443_s21 = scalar_select %p442_p12, %s981_s30, 1 }
  0x31   : > { %v995_v16 = vmov (!%p852_p13), 0.0   ;;  %v996_v17 = vmov (!%p852_p13), 1.0  }
  0x32   : > { %s444_s25 = scalar_lea.vmem %s1205_s1, %s443_s21  ;;  %s447_s15 = scalar_lea.vmem %s1186_s2, %s443_s21  ;;  %497 = vst [vmem:[#allocation8] sm:$0xff] (!%p852_p13), %v995_v16  ;;  %500 = vst [vmem:[#allocation4] sm:$0xff] (!%p852_p13), %v995_v16 }
  0x33   : > { %s450_s13 = scalar_lea.vmem %s1187_s3, %s443_s21  ;;  %s453_s18 = scalar_lea.vmem %s1188_s4, %s443_s21  ;;  %v850_v5 = vld [vmem:[%s444_s25] ss:$0 sm:$0xff]  ;;  %501 = vst [vmem:[#allocation4 + $0x8] sm:$0xff] (!%p852_p13), %v995_v16  ;;  %498 = vst [vmem:[#allocation6] sm:$0xff] (!%p852_p13), %v996_v17 }
  0x34   : > { %v851_v6 = vld [vmem:[%s447_s15] ss:$0 sm:$0xff]  ;;  %s456_s9 = scalar_lea.vmem %s1189_s5, %s443_s21  ;;  %s459_s1 = scalar_lea.vmem %s1190_s6, %s443_s21  ;;  %v481_v9 = vmul.f32 %v871_v3, %v850_v5  ;;  %v482_v10 = vmul.f32 %v872_v4, %v850_v5  ;;  %499 = vst [vmem:[#allocation6 + $0x8] sm:$0xff] (!%p852_p13), %v996_v17 }
  0x35   : > { %v1133_v7 = vld [vmem:[%s450_s13] ss:$0 sm:$0xff]  ;;  %s849_s0 = sshll.u32 %s443_s21, 1  ;;  %494 = sbr.rel (%p852_p13) target bundleno = 60 (0x3c), region = 97 }
  0x36   : > { %v1135_v8 = vld [vmem:[%s453_s18] ss:$0 sm:$0xff]  ;;  %s463_s26 = scalar_lea.vmem %s1191_s7, %s849_s0  ;;  %v489_v13 = vadd.f32 %v851_v6, %v481_v9  ;;  %v490_v14 = vadd.f32 %v851_v6, %v482_v10 }
  0x37   : > { %v855_v11 = vld [vmem:[%s456_s9] ss:$0 sm:$0xff] }
  0x38   : > { %v858_v12 = vld [vmem:[%s459_s1] ss:$0 sm:$0xff]  ;;  %495 = vst [vmem:[#allocation7] sm:$0xff] (!%p852_p13), %v489_v13  ;;  %496 = vst [vmem:[#allocation7 + $0x8] sm:$0xff] (!%p852_p13), %v490_v14 }
  0x39   : > { %v1140_v15 = vld.sshfl [vmem:[%s463_s26] sm:$0x11 pattern:$0x75316420] }
  0x3c PF: > { %p853_p0 = scmp.le.s32.totalorder %s977_s29, 0 }
  0x3d   : > { %v506_v18 = vld [vmem:[#allocation2] sm:$0xff] (!%p853_p0)  ;;  %v507_v19 = vld [vmem:[#allocation2 + $0x8] sm:$0xff] (!%p853_p0)  ;;  %v508_v20 = vld [vmem:[#allocation3] sm:$0xff] (!%p853_p0)  ;;  %v997_v23 = vmov (!%p853_p0), 0.0   ;;  %v570_v35 = vlaneseq (!%p853_p0)  ;;  %v998_v39 = vmov (!%p853_p0), 1966171168   ;;  %v566_v48 = vcombine.high (!%p853_p0), %v1140_v15, %v1140_v15 }
  0x3e   : > { %505 = sbr.rel (%p853_p0) target bundleno = 95 (0x5f), region = 101  ;;  %v513_v21 = vmax.f32 (!%p853_p0), %v506_v18, %v507_v19  ;;  %vm538_vm0 = vcmp.gt.f32.partialorder (!%p853_p0), %v508_v20, 1.0  ;;  %v509_v22 = vld [vmem:[#allocation3 + $0x8] sm:$0xff] (!%p853_p0)  ;;  %v512_v28 = vld [vmem:[#allocation5] sm:$0xff] (!%p853_p0)  ;;  %v511_v33 = vld [vmem:[#allocation4 + $0x8] sm:$0xff] (!%p853_p0)  ;;  %v568_v40 = vunpack.c.l.s4 (!%p853_p0), %v998_v39 }
  0x3f   : > { %v856_v24 = vsel (!%p853_p0), %vm538_vm0, 1.0, %v997_v23  ;;  %vm539_vm1 = vcmp.gt.f32.partialorder (!%p853_p0), %v509_v22, 1.0  ;;  %v510_v34 = vld [vmem:[#allocation4] sm:$0xff] (!%p853_p0)  ;;  %v529_v43 = vmul.f32 (!%p853_p0), %v511_v33, %v507_v19  ;;  %v571_v45 = vshrl.u32 (!%p853_p0), %v570_v35, 7 }
  0x40   : > { %vm514_vm2 = vcmp.gt.f32.partialorder (!%p853_p0), %v513_v21, 0.0  ;;  %v857_v25 = vsel (!%p853_p0), %vm539_vm1, 1.0, %v997_v23  ;;  %v528_v42 = vmul.f32 (!%p853_p0), %v510_v34, %v506_v18  ;;  %v569_v44 = vunpack.c.0.s8 (!%p853_p0), %v568_v40 }
  0x41   : > { %v854_v26 = vsel (!%p853_p0), %vm514_vm2, 1.0, %v997_v23  ;;  %v544_v27 = vadd.f32 (!%p853_p0), %v857_v25, %v856_v24  ;;  %v583_v51 = vsub.s32 (!%p853_p0), 0, %v571_v45 }
  0x42   : > { %vm517_vm3 = vcmp.lt.f32.partialorder (!%p853_p0), %v508_v20, %v854_v26  ;;  %vm518_vm4 = vcmp.lt.f32.partialorder (!%p853_p0), %v509_v22, %v854_v26  ;;  %v525_v29 = vsub.f32 (!%p853_p0), 1.0, %v854_v26  ;;  %v530_v46 = vadd.f32 (!%p853_p0), %v529_v43, %v528_v42 }
  0x43   : > { %v519_v30 = vsel (!%p853_p0), %vm517_vm3, %v489_v13, 0.0  ;;  %v520_v31 = vsel (!%p853_p0), %vm518_vm4, %v490_v14, 0.0  ;;  %v551_v32 = vmul.f32 (!%p853_p0), %v858_v12, %v544_v27  ;;  %v572_v47 = vsub.s32 (!%p853_p0), %v569_v44, %v571_v45 }
  0x44   : > { %v521_v36 = vsub.f32 (!%p853_p0), %v489_v13, %v519_v30  ;;  %v522_v37 = vsub.f32 (!%p853_p0), %v490_v14, %v520_v31  ;;  %v526_v38 = vmul.f32 (!%p853_p0), %v525_v29, %v512_v28  ;;  %v537_v49 = vadd.f32 (!%p853_p0), %v855_v11, %v530_v46 }
  0x45   : > { %v552_v41 = vmul.f32 1.442695, %v551_v32  ;;  %v573_v50 = vrot.slane %v1140_v15, %v572_v47  ;;  %v580_v52 = vrot.slane %v566_v48, %v572_v47  ;;  %v555_v54 = vmul.f32 %v525_v29, %v511_v33 }
  0x46   : > { %523 = vst [vmem:[#allocation7] sm:$0xff] %v521_v36  ;;  %524 = vst [vmem:[#allocation7 + $0x8] sm:$0xff] %v522_v37 }
  0x47   : > { %527 = vst [vmem:[#allocation8] sm:$0xff] %v526_v38  ;;  %937 = vpow2.f32 %v552_v41  ;;  %v584_v57 = vrot.slane %v573_v50, %v583_v51  ;;  %v588_v58 = vrot.slane %v580_v52, %v583_v51 }
  0x51   : > { %v938_v53 = vpop.eup %937 }
  0x52   : > { %v554_v55 = vmul.f32 %v938_v53, %v537_v49 }
  0x54   : > { %v556_v56 = vmul.f32 %v854_v26, %v554_v55 }
  0x56   : > { %v557_v59 = vadd.f32 %v556_v56, %v555_v54 }
  0x58   : > { %v591_v60 = vmul.f32 %v584_v57, %v557_v59  ;;  %v592_v61 = vmul.f32 %v588_v58, %v557_v59 }
  0x5a   : > { %593 = vst [vmem:[#allocation4] sm:$0xff] %v591_v60  ;;  %594 = vst [vmem:[#allocation4 + $0x8] sm:$0xff] %v592_v61  ;;  %v601_v62 = vmul.f32 %v1135_v8, %v591_v60  ;;  %v602_v63 = vmul.f32 %v1135_v8, %v592_v61 }
  0x5c   : > { %v603_v0 = vadd.f32 1.0, %v601_v62  ;;  %v604_v1 = vadd.f32 1.0, %v602_v63 }
  0x5e   : > { %605 = vst [vmem:[#allocation6] sm:$0xff] %v603_v0  ;;  %606 = vst [vmem:[#allocation6 + $0x8] sm:$0xff] %v604_v1 }
  0x5f PF: > { %v607_v2 = vld [vmem:[#allocation7] sm:$0xff]  ;;  %v609_v3 = vld [vmem:[#allocation8] sm:$0xff]  ;;  %v608_v9 = vld [vmem:[#allocation7 + $0x8] sm:$0xff]  ;;  %v999_v14 = vmov 0.0   ;;  %s865_s1 = sshll.u32 (%p1093_p6), %s977_s29, 2 }
  0x60   : > { %v618_v4 = vmul.f32 %v1133_v7, %v609_v3  ;;  %s655_s9 = sadd.s32 (%p1093_p6), %s981_s30, %s865_s1 }
  0x61   : > { %s866_s13 = sshll.u32 (%p1093_p6), %s655_s9, 2 }
  0x62   : > { %v619_v6 = vadd.f32 %v618_v4, %v607_v2  ;;  %s657_s14 = scalar_lea.vmem (%p1093_p6), %s1192_s8, %s866_s13 }
  0x64   : > { %v620_v10 = vmul.f32 %v1133_v7, %v619_v6 }
  0x65   : > { %v610_v5 = vld [vmem:[#allocation6] sm:$0xff]  ;;  %v611_v12 = vld [vmem:[#allocation6 + $0x8] sm:$0xff] }
  0x66   : > { %v622_v11 = vsub.f32 %v619_v6, %v610_v5  ;;  %v621_v13 = vadd.f32 %v620_v10, %v608_v9 }
  0x68   : > { %vm623_vm5 = vcmp.gt.f32.partialorder %v622_v11, 0.0  ;;  %v628_v15 = vsub.f32 %v621_v13, %v611_v12  ;;  %642 = vst [vmem:[#allocation5] sm:$0xff] %v621_v13 }
  0x69   : > { %v862_v8 = vsel %vm623_vm5, 1.0, %v999_v14 }
  0x6a   : > { %vm634_vm6 = vcmp.eq.f32.partialorder %v862_v8, 1.0  ;;  %640 = vst [vmem:[#allocation3] sm:$0xff] %v862_v8  ;;  %vm629_vm7 = vcmp.gt.f32.partialorder %v628_v15, 0.0 }
  0x6b   : > { %v636_v16 = vsel %vm634_vm6, 1.0, %v999_v14  ;;  %v863_v17 = vsel %vm629_vm7, 1.0, %v999_v14 }
  0x6c   : > { %638 = vst [vmem:[#allocation2] sm:$0xff] %v636_v16  ;;  %v632_v18 = vadd.f32 %v863_v17, %v862_v8 }
  0x6e   : > { %v633_v19 = vadd.f32 %v862_v8, %v632_v18  ;;  %653 = sbr.rel (!%p1093_p6) target bundleno = 125 (0x7d), region = 105 }
  0x70   : > { %vm635_vm8 = vcmp.eq.f32.partialorder %v633_v19, 1.0  ;;  %641 = vst [vmem:[#allocation3 + $0x8] sm:$0xff] %v633_v19 }
  0x71   : > { %v637_v7 = vsel %vm635_vm8, 1.0, %v999_v14 }
  0x72   : > { %639 = vst [vmem:[#allocation2 + $0x8] sm:$0xff] %v637_v7  ;;  %v874_v20 = vpack.c.bf16 %v637_v7, %v636_v16 }
  0x74   : > { %875 = vst [vmem:[%s1142_s10] sm:$0xff] %v874_v20  }
  0x7b   : > { %v673_v21 = vld [vmem:[%s1142_s10] sm:$0xf]  ;;  %v675_v22 = vld [vmem:[%s1142_s10 + $0x4] sm:$0xf] }
  0x7c   : > { %674 = vst [vmem:[%s657_s14] sm:$0xf] %v673_v21  ;;  %676 = vst [vmem:[%s657_s14 + $0x8] sm:$0xf] %v675_v22 }
  0x7d PF: > { %s18_s11 = sadd.s32 1, %s993_s11   ;;  %s1206_s29 = sld [smem:[#allocation11_spill]] }
  0x7e   : > { %p15_p1 = scmp.ge.s32.totalorder %s18_s11, 10   ;;  %s1207_s30 = sld [smem:[#allocation12_spill]] }
  0x7f   : > { %s1208_s9 = sld [smem:[#allocation13_spill]]  ;;  %s1209_s10 = sld [smem:[#allocation14_spill]] }
  0x80   : > { %s1210_s27 = smov %s973_s28  ;;  %s1211_s28 = smov %s1101_s20 }
  0x81   :  { %17 = sbr.rel (!%p15_p1) target bundleno = 7 (0x7), region = 198 }

// kernel: cifar10net_forward.27
= control target key start
LH: loop header
LB: loop body
LE: loop exit
PB: predicated region body
PF: predicated region fallthrough
CT: control target
= control target key end

     0   :  { %v227_v0 = vmov 0.0   ;;  %vm228_vm0 = vmmov 0   ;;  %s282_s1 = inlined_call_operand.vmem [shape: bf16[128,128], index: 1, kind: input, shape index: {}]   ;;  %s283_s0 = inlined_call_operand.vmem [shape: bf16[16,128], index: 0, kind: input, shape index: {}]   ;;  %s284_s2 = inlined_call_operand.vmem [shape: f32[1,128], index: 2, kind: input, shape index: {}]   ;;  %s285_s3 = inlined_call_operand.vmem [shape: bf16[16,128], index: 3, kind: output, shape index: {}]  }
   0x1   :  { %196 = vmatprep.subr.bf16.mxu0 %v227_v0  ;;  %v218_v1 = vld [vmem:[%s282_s1] sm:$0xff]   ;;  %212 = vmatprep.mubr.msk.bf16.mxu0 %vm228_vm0, %v227_v0  ;;  %v219_v2 = vld [vmem:[%s282_s1 + $0x8] sm:$0xff]   ;;  %v220_v3 = vld [vmem:[%s282_s1 + $0x10] sm:$0xff]  }
   0x2   :  { %197 = vmatpush3.bf16.msra.mxu0 %v218_v1  ;;  %v221_v4 = vld [vmem:[%s282_s1 + $0x18] sm:$0xff]   ;;  %v222_v5 = vld [vmem:[%s282_s1 + $0x20] sm:$0xff]   ;;  %v223_v6 = vld [vmem:[%s282_s1 + $0x28] sm:$0xff]  }
   0x3   :  { %198 = vmatprep.subr.bf16.mxu0 %v227_v0  ;;  %v224_v7 = vld [vmem:[%s282_s1 + $0x30] sm:$0xff]   ;;  %v225_v8 = vld [vmem:[%s282_s1 + $0x38] sm:$0xff]   ;;  %v226_v9 = vld [vmem:[%s283_s0] sm:$0xff]  }
   0x4   :  { %v177_v11 = vld [vmem:[%s284_s2] ss:$0 sm:$0xff] }
   0x6   :  { %199 = vmatpush3.bf16.msra.mxu0 %v219_v2 }
   0x7   :  { %200 = vmatprep.subr.bf16.mxu0 %v227_v0 }
   0xa   :  { %201 = vmatpush3.bf16.msra.mxu0 %v220_v3 }
   0xb   :  { %202 = vmatprep.subr.bf16.mxu0 %v227_v0 }
   0xe   :  { %203 = vmatpush3.bf16.msra.mxu0 %v221_v4 }
   0xf   :  { %204 = vmatprep.subr.bf16.mxu0 %v227_v0 }
  0x12   :  { %205 = vmatpush3.bf16.msra.mxu0 %v222_v5 }
  0x13   :  { %206 = vmatprep.subr.bf16.mxu0 %v227_v0 }
  0x16   :  { %207 = vmatpush3.bf16.msra.mxu0 %v223_v6 }
  0x17   :  { %208 = vmatprep.subr.bf16.mxu0 %v227_v0 }
  0x1a   :  { %209 = vmatpush3.bf16.msra.mxu0 %v224_v7 }
  0x1b   :  { %210 = vmatprep.subr.bf16.mxu0 %v227_v0 }
  0x1e   :  { %211 = vmatpush3.bf16.msra.mxu0 %v225_v8 }
  0x21   :  { %213 = vmatmul.mubr.bf16.vlgmr.msra.gmra.mrb[0].mxu0 %v226_v9 }
  0xf4   :  { %v129_v10 = vpop.f32.mrb[0].mxu0 }
  0xf5   :  { %v214_v12 = vpop.f32.mrb[1].mxu0  ;;  %v152_v14 = vadd.f32 %v177_v11, %v129_v10 }
  0xf6   :  { %v132_v13 = vpop.f32.mrb[2].mxu0 }
  0xf7   :  { %v153_v15 = vadd.f32 %v177_v11, %v132_v13  ;;  %v215_v16 = vpop.f32.mrb[3].mxu0 }
  0xf9   :  { %v185_v17 = vpack.c.bf16 %v153_v15, %v152_v14 }
  0xfb   :  { %186 = vst [vmem:[%s285_s3] sm:$0xff] %v185_v17  }

// kernel: cifar10net_forward.29
= control target key start
LH: loop header
LB: loop body
LE: loop exit
PB: predicated region body
PF: predicated region fallthrough
CT: control target
= control target key end

     0   :  { %v250_v1 = vmov 0.0   ;;  %vm251_vm0 = vmmov 0   ;;  %s317_s0 = inlined_call_operand.vmem [shape: bf16[16,128], index: 0, kind: input, shape index: {}]   ;;  %s318_s1 = inlined_call_operand.vmem [shape: bf16[128,128], index: 1, kind: input, shape index: {}]   ;;  %s319_s2 = inlined_call_operand.vmem [shape: f32[1,128], index: 2, kind: input, shape index: {}]   ;;  %s320_s3 = inlined_call_operand.hbm [shape: f32[16,128], index: 3, kind: output, shape index: {}]  }
   0x1   :  { %v217_v0 = vld [vmem:[%s318_s1] sm:$0xff]   ;;  %192 = vmatprep.subr.bf16.mxu0 %v250_v1  ;;  %v218_v2 = vld [vmem:[%s318_s1 + $0x8] sm:$0xff]   ;;  %208 = vmatprep.mubr.msk.bf16.mxu0 %vm251_vm0, %v250_v1  ;;  %v219_v3 = vld [vmem:[%s318_s1 + $0x10] sm:$0xff]  }
   0x2   :  { %193 = vmatpush3.bf16.msra.mxu0 %v217_v0 }
   0x3   :  { %194 = vmatprep.subr.bf16.mxu0 %v250_v1 }
   0x6   :  { %195 = vmatpush3.bf16.msra.mxu0 %v218_v2 }
   0x7   :  { %196 = vmatprep.subr.bf16.mxu0 %v250_v1 }
   0x8   :  { %8 = vsyncpa [#allocation4], 0  ;;  %v220_v4 = vld [vmem:[%s318_s1 + $0x18] sm:$0xff]   ;;  %v221_v5 = vld [vmem:[%s318_s1 + $0x20] sm:$0xff]   ;;  %s252_s5 = smov [#allocation3]  }
   0x9   :  { %v222_v6 = vld [vmem:[%s318_s1 + $0x28] sm:$0xff]   ;;  %v223_v7 = vld [vmem:[%s318_s1 + $0x30] sm:$0xff]   ;;  %v224_v8 = vld [vmem:[%s318_s1 + $0x38] sm:$0xff]   ;;  %s162_s6 = sshll.u32 %s252_s5, 4  ;;  %s163_s6 = int_to_ptr.vmem [resolvable:$true] %s162_s6 }
   0xa   :  { %197 = vmatpush3.bf16.msra.mxu0 %v219_v3  ;;  %v225_v9 = vld [vmem:[%s317_s0] sm:$0xff]   ;;  %s226_s1 = scalar_lea.vmem %s163_s6, 256  ;;  %p231_p1 = scmp.lt.s32.totalorder %s163_s6, %s163_s6 }
   0xb   :  { %198 = vmatprep.subr.bf16.mxu0 %v250_v1  ;;  %v182_v10 = vld [vmem:[%s319_s2] ss:$0 sm:$0xff]  ;;  %p227_p0 = scmp.ne.s32.totalorder %s163_s6, %s226_s1  ;;  %p232_p2 = scmp.lt.s32.totalorder %s226_s1, %s226_s1 }
   0xd   :  { %p233_p3 = por %p232_p2, %p231_p1 }
   0xe   :  { %199 = vmatpush3.bf16.msra.mxu0 %v220_v4 }
   0xf   :  { %200 = vmatprep.subr.bf16.mxu0 %v250_v1  ;;  %p234_p4 = pnand %p233_p3, %p227_p0 }
  0x12   :  { %201 = vmatpush3.bf16.msra.mxu0 %v221_v5 }
  0x13   :  { %202 = vmatprep.subr.bf16.mxu0 %v250_v1 }
  0x16   :  { %203 = vmatpush3.bf16.msra.mxu0 %v222_v6 }
  0x17   :  { %204 = vmatprep.subr.bf16.mxu0 %v250_v1 }
  0x1a   :  { %205 = vmatpush3.bf16.msra.mxu0 %v223_v7 }
  0x1b   :  { %206 = vmatprep.subr.bf16.mxu0 %v250_v1 }
  0x1e   :  { %207 = vmatpush3.bf16.msra.mxu0 %v224_v8 }
  0x21   :  { %209 = vmatmul.mubr.bf16.vlgmr.msra.gmra.mrb[0].mxu0 %v225_v9 }
  0xf4   :  { %v130_v11 = vpop.f32.mrb[0].mxu0 }
  0xf5   :  { %v153_v12 = vadd.f32 %v182_v10, %v130_v11  ;;  %v210_v13 = vpop.f32.mrb[1].mxu0 }
  0xf6   :  { %v133_v14 = vpop.f32.mrb[2].mxu0 }
  0xf7   :  { %155 = vst [vmem:[#allocation3] sm:$0xff] %v153_v12  ;;  %v154_v15 = vadd.f32 %v182_v10, %v133_v14  ;;  %v211_v16 = vpop.f32.mrb[3].mxu0 }
  0xf9   :  { %156 = vst [vmem:[#allocation3 + $0x8] sm:$0xff] %v154_v15 }
  0xfa   :  { %237 = shalt.err (!%p234_p4)
}
  0xfb   :  { %s238_s7 = scalar_lea.hbm %s320_s3, 256 }
  0xfc   :  { %p239_p5 = scmp.ne.s32.totalorder %s320_s3, %s238_s7  ;;  %p242_p6 = scmp.lt.u32.totalorder %s238_s7, %s320_s3 }
  0xfe   :  { %p244_p7 = pnand %p242_p6, %p239_p5 }
 0x100   :  { %247 = shalt.err (!%p244_p7)
}
 0x101   :  { %s253_s12 = smov 128   ;;  %s254_s13 = smov 8  }
 0x102   :  { %168 = dma.vmem_to_hbm [thread:$0]  %s163_s6, 256, %s320_s3, [#allocation4], %s253_s12, %s253_s12, %s254_s13  }
 0x103   :  { %248 = dma.done.wait [#allocation4], 256  }
 0x104   :  { %249 = vsyncadd [#allocation4], 4294967040 }
 0x105   :  { %172 = vsyncpa [#allocation4], 1 }

// kernel: cifar10net_forward.28
= control target key start
LH: loop header
LB: loop body
LE: loop exit
PB: predicated region body
PF: predicated region fallthrough
CT: control target
= control target key end

     0   :  { %s938_s27 = smov 0   ;;  %s940_s28 = smov 0   ;;  %s1017_s0 = inlined_call_operand.vmem [shape: bf16[4,2,8,128], index: 0, kind: input, shape index: {}]   ;;  %s1018_s1 = inlined_call_operand.vmem [shape: f32[1,128], index: 1, kind: input, shape index: {}]   ;;  %s1019_s2 = inlined_call_operand.vmem [shape: f32[1,128], index: 2, kind: input, shape index: {}]   ;;  %s1020_s3 = inlined_call_operand.vmem [shape: f32[1,128], index: 3, kind: input, shape index: {}]   ;;  %s1021_s4 = inlined_call_operand.vmem [shape: f32[1,128], index: 4, kind: input, shape index: {}]   ;;  %s1022_s5 = inlined_call_operand.vmem [shape: f32[1,128], index: 5, kind: input, shape index: {}]   ;;  %s1023_s6 = inlined_call_operand.vmem [shape: f32[1,128], index: 6, kind: input, shape index: {}]   ;;  %s1024_s7 = inlined_call_operand.vmem [shape: f32[2,128], index: 7, kind: input, shape index: {}]   ;;  %s1025_s8 = inlined_call_operand.vmem [shape: bf16[4,2,8,128], index: 8, kind: output, shape index: {}]  }
   0x1   :  { %s942_s29 = smov 0  }
   0x2 LB: > { %s27_s30 = sadd.s32 1, %s882_s28  ;;  %p803_p0 = scmp.ge.s32.totalorder %s886_s29, 1  ;;  %s886_s29 = sphi %s942_s29, %s18_s29   ;;  %s882_s28 = sphi %s940_s28, %s1027_s28   ;;  %s878_s27 = sphi %s938_s27, %s1026_s27  }
   0x3   : > { %p28_p1 = scmp.ge.s32.totalorder %s27_s30, 4  ;;  %p338_p2 = scmp.lt.s32.totalorder %s886_s29, 5 }
   0x5   : > { %s1029_s30 = smov (%p28_p1, %s27_s30), 0  ;;  %p339_p3 = pnand %p803_p0, %p338_p2 }
   0x6   : > { %p400_p4 = scmp.lt.s32.totalorder (!%p339_p3), %s878_s27, 3  ;;  %v962_v0 = vld [vmem:[%s1020_s3] ss:$0 sm:$0xff] (!%p339_p3)  ;;  %p810_p5 = scmp.ne.s32.totalorder (!%p339_p3), %s878_s27, 0 }
   0x7   : > { %342 = sbr.rel (%p339_p3) target bundleno = 83 (0x53), region = 52  ;;  %v967_v1 = vld [vmem:[%s1021_s4] ss:$0 sm:$0xff] (!%p339_p3) }
   0x8   : > { %v972_v2 = vld [vmem:[%s1022_s5] ss:$0 sm:$0xff] (!%p339_p3) }
   0x9   : > { %v816_v3 = vld [vmem:[%s1023_s6] ss:$0 sm:$0xff] (!%p339_p3) }
   0xa   : > { %v981_v4 = vld.sshfl [vmem:[%s1024_s7] sm:$0x11 pattern:$0x75316420] (!%p339_p3) }
   0xb   : > { %v808_v5 = vld [vmem:[%s1018_s1] ss:$0 sm:$0xff] (!%p339_p3) }
   0xc   : > { %v809_v9 = vld [vmem:[%s1019_s2] ss:$0 sm:$0xff] (!%p339_p3) }
   0xe   : > { %s401_s15 = scalar_select %p400_p4, %s878_s27, 3 }
   0xf   : > { %v888_v14 = vmov (!%p810_p5), 0.0   ;;  %v889_v15 = vmov (!%p810_p5), 1.0  }
  0x10   : > { %s824_s20 = sshll.u32 %s401_s15, 3  ;;  %471 = vst [vmem:[#allocation8] sm:$0xff] (!%p810_p5), %v888_v14  ;;  %474 = vst [vmem:[#allocation4] sm:$0xff] (!%p810_p5), %v888_v14 }
  0x11   : > { %s407_s23 = scalar_lea.vmem %s1017_s0, %s824_s20  ;;  %s989_s26 = scalar_lea.vmem %s1025_s8, %s824_s20  ;;  %475 = vst [vmem:[#allocation4 + $0x8] sm:$0xff] (!%p810_p5), %v888_v14  ;;  %472 = vst [vmem:[#allocation6] sm:$0xff] (!%p810_p5), %v889_v15 }
  0x12   : > { %v827_v6 = vld [vmem:[%s407_s23] sm:$0xff]   ;;  %468 = sbr.rel (%p810_p5) target bundleno = 26 (0x1a), region = 56  ;;  %473 = vst [vmem:[#allocation6 + $0x8] sm:$0xff] (!%p810_p5), %v889_v15 }
  0x13   : > { %v828_v7 = vunpack.c.l.bf16 %v827_v6  ;;  %v829_v8 = vunpack.c.h.bf16 %v827_v6 }
  0x15   : > { %v455_v10 = vmul.f32 %v828_v7, %v808_v5  ;;  %v456_v11 = vmul.f32 %v829_v8, %v808_v5 }
  0x17   : > { %v463_v12 = vadd.f32 %v809_v9, %v455_v10  ;;  %v464_v13 = vadd.f32 %v809_v9, %v456_v11 }
  0x19   : > { %469 = vst [vmem:[#allocation7] sm:$0xff] %v463_v12  ;;  %470 = vst [vmem:[#allocation7 + $0x8] sm:$0xff] %v464_v13 }
  0x1a PF: > { %p811_p6 = scmp.le.s32.totalorder %s878_s27, 0 }
  0x1b   : > { %v480_v16 = vld [vmem:[#allocation2] sm:$0xff] (!%p811_p6)  ;;  %v481_v17 = vld [vmem:[#allocation2 + $0x8] sm:$0xff] (!%p811_p6)  ;;  %v482_v18 = vld [vmem:[#allocation3] sm:$0xff] (!%p811_p6)  ;;  %v890_v21 = vmov (!%p811_p6), 0.0   ;;  %v544_v33 = vlaneseq (!%p811_p6)  ;;  %v891_v37 = vmov (!%p811_p6), 1966171168   ;;  %v540_v46 = vcombine.high (!%p811_p6), %v981_v4, %v981_v4 }
  0x1c   : > { %479 = sbr.rel (%p811_p6) target bundleno = 61 (0x3d), region = 60  ;;  %v487_v19 = vmax.f32 (!%p811_p6), %v480_v16, %v481_v17  ;;  %vm512_vm0 = vcmp.gt.f32.partialorder (!%p811_p6), %v482_v18, 1.0  ;;  %v483_v20 = vld [vmem:[#allocation3 + $0x8] sm:$0xff] (!%p811_p6)  ;;  %v486_v26 = vld [vmem:[#allocation5] sm:$0xff] (!%p811_p6)  ;;  %v485_v31 = vld [vmem:[#allocation4 + $0x8] sm:$0xff] (!%p811_p6)  ;;  %v542_v38 = vunpack.c.l.s4 (!%p811_p6), %v891_v37 }
  0x1d   : > { %v814_v22 = vsel (!%p811_p6), %vm512_vm0, 1.0, %v890_v21  ;;  %vm513_vm1 = vcmp.gt.f32.partialorder (!%p811_p6), %v483_v20, 1.0  ;;  %v484_v32 = vld [vmem:[#allocation4] sm:$0xff] (!%p811_p6)  ;;  %v503_v41 = vmul.f32 (!%p811_p6), %v485_v31, %v481_v17  ;;  %v545_v43 = vshrl.u32 (!%p811_p6), %v544_v33, 7 }
  0x1e   : > { %vm488_vm2 = vcmp.gt.f32.partialorder (!%p811_p6), %v487_v19, 0.0  ;;  %v815_v23 = vsel (!%p811_p6), %vm513_vm1, 1.0, %v890_v21  ;;  %v502_v40 = vmul.f32 (!%p811_p6), %v484_v32, %v480_v16  ;;  %v543_v42 = vunpack.c.0.s8 (!%p811_p6), %v542_v38 }
  0x1f   : > { %v812_v24 = vsel (!%p811_p6), %vm488_vm2, 1.0, %v890_v21  ;;  %v518_v25 = vadd.f32 (!%p811_p6), %v815_v23, %v814_v22  ;;  %v557_v49 = vsub.s32 (!%p811_p6), 0, %v545_v43 }
  0x20   : > { %vm491_vm3 = vcmp.lt.f32.partialorder (!%p811_p6), %v482_v18, %v812_v24  ;;  %vm492_vm4 = vcmp.lt.f32.partialorder (!%p811_p6), %v483_v20, %v812_v24  ;;  %v499_v27 = vsub.f32 (!%p811_p6), 1.0, %v812_v24  ;;  %v504_v44 = vadd.f32 (!%p811_p6), %v503_v41, %v502_v40 }
  0x21   : > { %v493_v28 = vsel (!%p811_p6), %vm491_vm3, %v463_v12, 0.0  ;;  %v494_v29 = vsel (!%p811_p6), %vm492_vm4, %v464_v13, 0.0  ;;  %v525_v30 = vmul.f32 (!%p811_p6), %v816_v3, %v518_v25  ;;  %v546_v45 = vsub.s32 (!%p811_p6), %v543_v42, %v545_v43 }
  0x22   : > { %v495_v34 = vsub.f32 (!%p811_p6), %v463_v12, %v493_v28  ;;  %v496_v35 = vsub.f32 (!%p811_p6), %v464_v13, %v494_v29  ;;  %v500_v36 = vmul.f32 (!%p811_p6), %v499_v27, %v486_v26  ;;  %v511_v47 = vadd.f32 (!%p811_p6), %v972_v2, %v504_v44 }
  0x23   : > { %v526_v39 = vmul.f32 1.442695, %v525_v30  ;;  %v547_v48 = vrot.slane %v981_v4, %v546_v45  ;;  %v554_v50 = vrot.slane %v540_v46, %v546_v45  ;;  %v529_v52 = vmul.f32 %v499_v27, %v485_v31 }
  0x24   : > { %497 = vst [vmem:[#allocation7] sm:$0xff] %v495_v34  ;;  %498 = vst [vmem:[#allocation7 + $0x8] sm:$0xff] %v496_v35 }
  0x25   : > { %501 = vst [vmem:[#allocation8] sm:$0xff] %v500_v36  ;;  %862 = vpow2.f32 %v526_v39  ;;  %v558_v55 = vrot.slane %v547_v48, %v557_v49  ;;  %v562_v56 = vrot.slane %v554_v50, %v557_v49 }
  0x2f   : > { %v863_v51 = vpop.eup %862 }
  0x30   : > { %v528_v53 = vmul.f32 %v863_v51, %v511_v47 }
  0x32   : > { %v530_v54 = vmul.f32 %v812_v24, %v528_v53 }
  0x34   : > { %v531_v57 = vadd.f32 %v530_v54, %v529_v52 }
  0x36   : > { %v565_v58 = vmul.f32 %v558_v55, %v531_v57  ;;  %v566_v59 = vmul.f32 %v562_v56, %v531_v57 }
  0x38   : > { %567 = vst [vmem:[#allocation4] sm:$0xff] %v565_v58  ;;  %568 = vst [vmem:[#allocation4 + $0x8] sm:$0xff] %v566_v59  ;;  %v575_v60 = vmul.f32 %v967_v1, %v565_v58  ;;  %v576_v61 = vmul.f32 %v967_v1, %v566_v59 }
  0x3a   : > { %v577_v62 = vadd.f32 1.0, %v575_v60  ;;  %v578_v63 = vadd.f32 1.0, %v576_v61 }
  0x3c   : > { %579 = vst [vmem:[#allocation6] sm:$0xff] %v577_v62  ;;  %580 = vst [vmem:[#allocation6 + $0x8] sm:$0xff] %v578_v63 }
  0x3d PF: > { %v581_v2 = vld [vmem:[#allocation7] sm:$0xff]  ;;  %v583_v3 = vld [vmem:[#allocation8] sm:$0xff]  ;;  %v582_v7 = vld [vmem:[#allocation7 + $0x8] sm:$0xff]  ;;  %v892_v12 = vmov 0.0  }
  0x3e   : > { %v592_v4 = vmul.f32 %v962_v0, %v583_v3 }
  0x40   : > { %v593_v6 = vadd.f32 %v592_v4, %v581_v2 }
  0x42   : > { %v594_v8 = vmul.f32 %v962_v0, %v593_v6 }
  0x43   : > { %v584_v5 = vld [vmem:[#allocation6] sm:$0xff]  ;;  %v585_v10 = vld [vmem:[#allocation6 + $0x8] sm:$0xff] }
  0x44   : > { %v596_v9 = vsub.f32 %v593_v6, %v584_v5  ;;  %v595_v11 = vadd.f32 %v594_v8, %v582_v7 }
  0x46   : > { %vm597_vm5 = vcmp.gt.f32.partialorder %v596_v9, 0.0  ;;  %v602_v13 = vsub.f32 %v595_v11, %v585_v10  ;;  %616 = vst [vmem:[#allocation5] sm:$0xff] %v595_v11 }
  0x47   : > { %v820_v1 = vsel %vm597_vm5, 1.0, %v892_v12 }
  0x48   : > { %vm608_vm6 = vcmp.eq.f32.partialorder %v820_v1, 1.0  ;;  %614 = vst [vmem:[#allocation3] sm:$0xff] %v820_v1  ;;  %vm603_vm7 = vcmp.gt.f32.partialorder %v602_v13, 0.0 }
  0x49   : > { %v610_v14 = vsel %vm608_vm6, 1.0, %v892_v12  ;;  %v821_v15 = vsel %vm603_vm7, 1.0, %v892_v12 }
  0x4a   : > { %612 = vst [vmem:[#allocation2] sm:$0xff] %v610_v14  ;;  %v606_v16 = vadd.f32 %v821_v15, %v820_v1 }
  0x4c   : > { %v607_v17 = vadd.f32 %v820_v1, %v606_v16 }
  0x4e   : > { %vm609_vm8 = vcmp.eq.f32.partialorder %v607_v17, 1.0  ;;  %615 = vst [vmem:[#allocation3 + $0x8] sm:$0xff] %v607_v17 }
  0x4f   : > { %v611_v0 = vsel %vm609_vm8, 1.0, %v892_v12 }
  0x50   : > { %613 = vst [vmem:[#allocation2 + $0x8] sm:$0xff] %v611_v0  ;;  %v831_v18 = vpack.c.bf16 %v611_v0, %v610_v14 }
  0x52   : > { %832 = vst [vmem:[%s989_s26] sm:$0xff] %v831_v18  }
  0x53 PF: > { %s18_s29 = sadd.s32 1, %s886_s29   ;;  %s1026_s27 = smov %s882_s28 }
  0x54   : > { %p15_p7 = scmp.ge.s32.totalorder %s18_s29, 6   ;;  %s1027_s28 = smov %s1029_s30 }
  0x56   :  { %17 = sbr.rel (!%p15_p7) target bundleno = 2 (0x2), region = 111 }

</bundles_post_ra>
